<compile_context>
chip_gen: v7x
topology: tpu7x:2x2x1
jax: 0.10.0
libtpu: 0.0.40
codegen_flags: <defaults>
</compile_context>

<pallas_src>
import jax
import jax.numpy as jnp
from jax.experimental import pallas as pl
from jax.experimental.pallas import tpu as pltpu


# ---------------------------------------------------------------------------
# Wrapper-side weight preprocessing (pure JAX, outside the kernel)
# ---------------------------------------------------------------------------

def band_weights(wt, width):
    """Fold the dx (width) taps of a KxK 'SAME' conv into block-band matrices.

    wt: (K, K, Cin, Cout) HWIO conv weights, K odd.
    Returns (K, width*Cin, width*Cout): one matrix per dy row-tap so that with
    activations flattened to rows A[h, w*Cin + ci] = x[h, w, ci]:
        y[h, :] = sum_dy  A_shift(dy)[h, :] @ band[dy]
    where A_shift(dy)[h] = A[h + dy - pad] (zero outside the image).
    """
    K = wt.shape[0]
    assert K % 2 == 1, "'SAME' padding here assumes an odd kernel size"
    pad = (K - 1) // 2
    cin, cout = wt.shape[2], wt.shape[3]
    mats = []
    for dy in range(K):
        m = jnp.zeros((width, cin, width, cout), jnp.float32)
        for dx in range(K):
            # place wt[dy, dx] on the block diagonal where w_in == w_out + dx - pad
            e = jnp.eye(width, k=pad - dx, dtype=jnp.float32)
            m = m + jnp.einsum('ij,co->icjo', e, wt[dy, dx])
        mats.append(m.reshape(width * cin, width * cout))
    return jnp.stack(mats)


def lane_affine(scale, shift, width):
    """Per-channel scale/shift -> per-lane (1, width*C) rows for the flat layout."""
    return (jnp.tile(scale, width).reshape(1, -1),
            jnp.tile(shift, width).reshape(1, -1))


# ---------------------------------------------------------------------------
# Fused encoder kernel
# ---------------------------------------------------------------------------

def _make_encoder_kernel(K, n_blocks, rows_per_image):
    assert K % 2 == 1
    pad = (K - 1) // 2

    def silu(v):
        return v * jax.nn.sigmoid(v)

    def kernel(x_ref, stem_w_ref, bn1_s_ref, bn1_b_ref,
               blk_w_ref, blk_s_ref, blk_b_ref,
               head_w_ref, bn2_s_ref, bn2_b_ref, *o_refs):
        m_rows = x_ref.shape[0]          # Bt * H rows stacked per grid step

        # Hoisted per-image boundary masks for the dy (height) shifts: built
        # once per (offset, lane-width) and reused by every conv layer (JAX
        # does not CSE iota/broadcast, so never re-emit them per tap/layer).
        mask_cache = {}

        def row_mask(off, width):
            key = (off, width)
            if key not in mask_cache:
                rr = jax.lax.broadcasted_iota(jnp.int32, (m_rows, width), 0)
                rr = rr % rows_per_image            # row index within its image
                src = rr + off
                mask_cache[key] = ((src >= 0) & (src < rows_per_image)
                                   ).astype(jnp.float32)
            return mask_cache[key]

        def conv_rows(a, w_taps):
            """KxK 'SAME' conv on lane-dense (Bt*H, W*Cin) activation rows.

            dx shifts are pre-folded into block-band weights (wrapper); the dy
            shift is a sublane roll (XLU) + per-image row mask (VPU); each tap
            is one bf16 MXU matmul accumulated in f32.
            """
            width = a.shape[1]
            out = None
            for dy in range(K):
                off = dy - pad
                if off == 0:
                    a_dy = a
                else:
                    a_dy = pltpu.roll(a, shift=(-off) % m_rows, axis=0)
                    a_dy = a_dy * row_mask(off, width)
                t = jnp.dot(a_dy.astype(jnp.bfloat16), w_taps[dy],
                            preferred_element_type=jnp.float32)
                out = t if out is None else out + t
            return out

        # conv_stem (3x3, bias=False)
        f = conv_rows(x_ref[...], [stem_w_ref[dy] for dy in range(K)])
        o_refs[0][...] = f
        # bn1 (inference BatchNorm folded to per-channel affine)
        f = f * bn1_s_ref[...] + bn1_b_ref[...]
        o_refs[1][...] = f
        # act1 (SiLU)
        f = silu(f)
        o_refs[2][...] = f
        # blocks: each block = fused Conv3x3 + BN + SiLU, one feature per block
        for b in range(n_blocks):
            f = conv_rows(f, [blk_w_ref[b, dy] for dy in range(K)])
            f = silu(f * blk_s_ref[b] + blk_b_ref[b])
            o_refs[3 + b][...] = f
        # conv_head (1x1, bias=False): block-diagonal matmul
        f = jnp.dot(f.astype(jnp.bfloat16), head_w_ref[...],
                    preferred_element_type=jnp.float32)
        o_refs[3 + n_blocks][...] = f
        # bn2
        f = f * bn2_s_ref[...] + bn2_b_ref[...]
        o_refs[4 + n_blocks][...] = f
        # act2 (SiLU)
        f = silu(f)
        o_refs[5 + n_blocks][...] = f

    return kernel


def encoder_forward(x_nchw, params, *, images_per_step=8):
    """Mirrors Encoder.forward: features[0] = x, then one feature per backend
    module ('blocks' flattened).  A single fused pallas_call emits them all."""
    N, Cin, H, W = x_nchw.shape
    K = params['stem_w'].shape[0]
    C1 = params['stem_w'].shape[-1]
    C2 = params['head_w'].shape[-1]
    nb = len(params['blocks'])

    # v5e lane alignment: zero-pad Cin to a multiple of 8 so the input rows are
    # full 128-lane vregs and stem MXU passes are full-depth.
    CinP = ((Cin + 7) // 8) * 8
    WCinP, WC1, WC2 = W * CinP, W * C1, W * C2

    Bt = min(images_per_step, N)
    assert N % Bt == 0, "batch must be divisible by images_per_step"
    M = Bt * H                       # matmul M dim per grid step (target 128+)

    # Lane-dense flat rows: A[n*H + h, w*C + c] = x[n, c, h, w]; images stacked
    # along the row/sublane axis so one grid step feeds M = Bt*H MXU rows.
    x_nhwc = jnp.transpose(x_nchw, (0, 2, 3, 1))
    x_nhwc = jnp.pad(x_nhwc, ((0, 0), (0, 0), (0, 0), (0, CinP - Cin)))
    x2d = x_nhwc.reshape(N * H, WCinP)

    # Pre-fold every conv weight into a dense, lane-dense matmul operand and
    # cast the MXU operands to bf16 (native MXU path on v5e/v6e/v7x);
    # accumulation stays f32 inside the kernel.
    stem_w_p = jnp.pad(params['stem_w'],
                       ((0, 0), (0, 0), (0, CinP - Cin), (0, 0)))
    stem_w = band_weights(stem_w_p, W).astype(jnp.bfloat16)     # (K, WCinP, WC1)
    blk_w = jnp.stack([band_weights(bw, W)
                       for bw, _, _ in params['blocks']]
                      ).astype(jnp.bfloat16)                    # (nb, K, WC1, WC1)
    head_w = band_weights(params['head_w'], W)[0].astype(jnp.bfloat16)  # (WC1, WC2)
    bn1_s, bn1_b = lane_affine(*params['bn1'], W)               # (1, WC1) f32
    bn2_s, bn2_b = lane_affine(*params['bn2'], W)               # (1, WC2) f32
    blk_s = jnp.stack([lane_affine(bs, bb, W)[0]
                       for _, bs, bb in params['blocks']])      # (nb, 1, WC1)
    blk_b = jnp.stack([lane_affine(bs, bb, W)[1]
                       for _, bs, bb in params['blocks']])      # (nb, 1, WC1)

    kernel = _make_encoder_kernel(K, nb, H)

    n_c1_feats = 3 + nb
    out_shape = tuple(
        [jax.ShapeDtypeStruct((N * H, WC1), jnp.float32)] * n_c1_feats
        + [jax.ShapeDtypeStruct((N * H, WC2), jnp.float32)] * 3)
    out_specs = tuple(
        [pl.BlockSpec((M, WC1), lambda n: (n, 0))] * n_c1_feats
        + [pl.BlockSpec((M, WC2), lambda n: (n, 0))] * 3)

    outs = pl.pallas_call(
        kernel,
        out_shape=out_shape,
        grid=(N // Bt,),                 # even grid -> v7x can split over 2 TCs
        in_specs=[
            pl.BlockSpec((M, WCinP), lambda n: (n, 0)),
            pl.BlockSpec((K, WCinP, WC1), lambda n: (0, 0, 0)),
            pl.BlockSpec((1, WC1), lambda n: (0, 0)),
            pl.BlockSpec((1, WC1), lambda n: (0, 0)),
            pl.BlockSpec((nb, K, WC1, WC1), lambda n: (0, 0, 0, 0)),
            pl.BlockSpec((nb, 1, WC1), lambda n: (0, 0, 0)),
            pl.BlockSpec((nb, 1, WC1), lambda n: (0, 0, 0)),
            pl.BlockSpec((WC1, WC2), lambda n: (0, 0)),
            pl.BlockSpec((1, WC2), lambda n: (0, 0)),
            pl.BlockSpec((1, WC2), lambda n: (0, 0)),
        ],
        out_specs=out_specs,
        compiler_params=pltpu.CompilerParams(
            dimension_semantics=("parallel",),
            vmem_limit_bytes=32 * 1024 * 1024),
    )(x2d, stem_w, bn1_s, bn1_b, blk_w, blk_s, blk_b, head_w, bn2_s, bn2_b)

    # Un-flatten and convert back to PyTorch's NCHW only once, at the end.
    def to_nchw(y, c):
        return jnp.transpose(y.reshape(N, H, W, c), (0, 3, 1, 2))

    feats = [x_nchw]
    for i, y in enumerate(outs):
        feats.append(to_nchw(y, C1 if i < n_c1_feats else C2))
    return feats


# ---------------------------------------------------------------------------
# Synthetic backend parameters + pure-JAX reference
# ---------------------------------------------------------------------------

def fold_bn(gamma, beta, mean, var, eps=1e-5):
    scale = gamma / jnp.sqrt(var + eps)
    shift = beta - mean * scale
    return scale, shift


def init_params(key, cin, c1, c2, n_blocks):
    # Exactly 1 (stem) + 4 (bn1) + 5*n_blocks + 1 (head) + 4 (bn2) keys.
    keys = iter(jax.random.split(key, 10 + 5 * n_blocks))

    def nrm(shape, s=0.1):
        return jax.random.normal(next(keys), shape, jnp.float32) * s

    def uni(shape):
        return jax.random.uniform(next(keys), shape, jnp.float32, 0.5, 1.5)

    def bn(c):
        return fold_bn(uni((c,)), nrm((c,)), nrm((c,)), uni((c,)))

    p = {}
    p['stem_w'] = nrm((3, 3, cin, c1))
    p['bn1'] = bn(c1)
    p['blocks'] = [(nrm((3, 3, c1, c1)),) + bn(c1) for _ in range(n_blocks)]
    p['head_w'] = nrm((1, 1, c1, c2))
    p['bn2'] = bn(c2)
    return p


def encoder_reference(x_nchw, params, operand_dtype=None):
    """Pure-JAX reference of the same synthetic backend.

    operand_dtype=None      -> exact f32 semantics (HIGHEST-precision convs).
    operand_dtype=bfloat16  -> conv operands rounded to bf16 (matches the
                               kernel's MXU operand precision) then convolved
                               at HIGHEST with f32 accumulation.
    """
    def rnd(a):
        if operand_dtype is None:
            return a
        return a.astype(operand_dtype).astype(jnp.float32)

    def conv(a, w):
        return jax.lax.conv_general_dilated(
            rnd(a), rnd(w), (1, 1), 'SAME',
            dimension_numbers=('NHWC', 'HWIO', 'NHWC'),
            precision=jax.lax.Precision.HIGHEST)

    feats = [x_nchw]
    cur = jnp.transpose(x_nchw, (0, 2, 3, 1))

    def push(y):
        feats.append(jnp.transpose(y, (0, 3, 1, 2)))
        return y

    cur = push(conv(cur, params['stem_w']))                       # conv_stem
    s, b = params['bn1']
    cur = push(cur * s + b)                                       # bn1
    cur = push(cur * jax.nn.sigmoid(cur))                         # act1
    for bw, bs, bb in params['blocks']:                           # blocks
        y = conv(cur, bw) * bs + bb
        cur = push(y * jax.nn.sigmoid(y))
    cur = push(conv(cur, params['head_w']))                       # conv_head
    s, b = params['bn2']
    cur = push(cur * s + b)                                       # bn2
    cur = push(cur * jax.nn.sigmoid(cur))                         # act2
    return feats


# ---------------------------------------------------------------------------
# Main
# ---------------------------------------------------------------------------

if __name__ == "__main__":
    key = jax.random.PRNGKey(0)
    kx, kp = jax.random.split(key)

    # Batch chosen so each grid step feeds 128-row MXU passes (Bt=8 images x
    # H=16 rows) and the grid (N//Bt = 2) stays even for a v7x 2-TC split.
    N, Cin, H, W = 16, 4, 16, 16
    C1, C2, N_BLOCKS = 8, 16, 2

    x = jax.random.normal(kx, (N, Cin, H, W), jnp.float32)   # NCHW like PyTorch
    params = init_params(kp, Cin, C1, C2, N_BLOCKS)

    feats = jax.jit(encoder_forward)(x, params)
    feats = [jax.block_until_ready(f) for f in feats]

    # Expected feature count: x, stem, bn1, act1, N_BLOCKS blocks, head, bn2, act2.
    assert len(feats) == 4 + N_BLOCKS + 3
    assert feats[0].shape == (N, Cin, H, W)
    assert feats[1].shape == (N, C1, H, W)
    assert feats[-1].shape == (N, C2, H, W)

    # (a) Tight structural check: reference with conv operands rounded to bf16
    #     (same operand precision as the kernel's MXU path, f32 accumulation).
    #     Any indexing/roll/mask/weight-folding bug would show up as O(0.3+).
    ref_bf16 = encoder_reference(x, params, operand_dtype=jnp.bfloat16)
    for i, (a, b) in enumerate(zip(feats, ref_bf16)):
        assert a.shape == b.shape, (i, a.shape, b.shape)
        err = float(jnp.max(jnp.abs(a - b)))
        assert jnp.allclose(a, b, atol=1e-3, rtol=1e-3), ("structural", i, err)

    # (b) End-to-end fidelity vs the exact f32 module semantics: tolerance
    #     reflects the bf16 MXU operand precision used for speed.
    ref_f32 = encoder_reference(x, params)
    for i, (a, b) in enumerate(zip(feats, ref_f32)):
        err = float(jnp.max(jnp.abs(a - b)))
        assert jnp.allclose(a, b, atol=6e-2, rtol=6e-2), ("f32-ref", i, err)

    print("KERNEL_OK")
</pallas_src>

<mosaic_0001>
module attributes {stable_mosaic.version = 11 : i64} {
  func.func @kernel(%arg0: i32, %arg1: memref<128x128xf32, #tpu.memory_space<vmem>>, %arg2: memref<3x128x128xbf16, #tpu.memory_space<vmem>>, %arg3: memref<1x128xf32, #tpu.memory_space<vmem>>, %arg4: memref<1x128xf32, #tpu.memory_space<vmem>>, %arg5: memref<2x3x128x128xbf16, #tpu.memory_space<vmem>>, %arg6: memref<2x1x128xf32, #tpu.memory_space<vmem>>, %arg7: memref<2x1x128xf32, #tpu.memory_space<vmem>>, %arg8: memref<128x256xbf16, #tpu.memory_space<vmem>>, %arg9: memref<1x256xf32, #tpu.memory_space<vmem>>, %arg10: memref<1x256xf32, #tpu.memory_space<vmem>>, %arg11: memref<128x128xf32, #tpu.memory_space<vmem>>, %arg12: memref<128x128xf32, #tpu.memory_space<vmem>>, %arg13: memref<128x128xf32, #tpu.memory_space<vmem>>, %arg14: memref<128x128xf32, #tpu.memory_space<vmem>>, %arg15: memref<128x128xf32, #tpu.memory_space<vmem>>, %arg16: memref<128x256xf32, #tpu.memory_space<vmem>>, %arg17: memref<128x256xf32, #tpu.memory_space<vmem>>, %arg18: memref<128x256xf32, #tpu.memory_space<vmem>>) attributes {dimension_semantics = [#tpu.dimension_semantics<parallel>], iteration_bounds = array<i64: 2>, scalar_prefetch = 0 : i64, scratch_operands = 0 : i64, tpu.core_type = #tpu.core_type<tc>, window_params = [{transform_indices = @transform_0, window_bounds = array<i64: 128, 128>}, {pipeline_mode = #tpu.pipeline_mode<synchronous>, transform_indices = @transform_1, window_bounds = array<i64: 3, 128, 128>}, {pipeline_mode = #tpu.pipeline_mode<synchronous>, transform_indices = @transform_2, window_bounds = array<i64: 1, 128>}, {pipeline_mode = #tpu.pipeline_mode<synchronous>, transform_indices = @transform_3, window_bounds = array<i64: 1, 128>}, {pipeline_mode = #tpu.pipeline_mode<synchronous>, transform_indices = @transform_4, window_bounds = array<i64: 2, 3, 128, 128>}, {pipeline_mode = #tpu.pipeline_mode<synchronous>, transform_indices = @transform_5, window_bounds = array<i64: 2, 1, 128>}, {pipeline_mode = #tpu.pipeline_mode<synchronous>, transform_indices = @transform_6, window_bounds = array<i64: 2, 1, 128>}, {pipeline_mode = #tpu.pipeline_mode<synchronous>, transform_indices = @transform_7, window_bounds = array<i64: 128, 256>}, {pipeline_mode = #tpu.pipeline_mode<synchronous>, transform_indices = @transform_8, window_bounds = array<i64: 1, 256>}, {pipeline_mode = #tpu.pipeline_mode<synchronous>, transform_indices = @transform_9, window_bounds = array<i64: 1, 256>}, {transform_indices = @transform_10, window_bounds = array<i64: 128, 128>}, {transform_indices = @transform_11, window_bounds = array<i64: 128, 128>}, {transform_indices = @transform_12, window_bounds = array<i64: 128, 128>}, {transform_indices = @transform_13, window_bounds = array<i64: 128, 128>}, {transform_indices = @transform_14, window_bounds = array<i64: 128, 128>}, {transform_indices = @transform_15, window_bounds = array<i64: 128, 256>}, {transform_indices = @transform_16, window_bounds = array<i64: 128, 256>}, {transform_indices = @transform_17, window_bounds = array<i64: 128, 256>}]} {
    %c0 = arith.constant 0 : index
    %c0_0 = arith.constant 0 : index
    %0 = vector.load %arg1[%c0, %c0_0] : memref<128x128xf32, #tpu.memory_space<vmem>>, vector<128x128xf32>
    %c0_1 = arith.constant 0 : index
    %c0_2 = arith.constant 0 : index
    %c0_3 = arith.constant 0 : index
    %1 = vector.load %arg2[%c0_1, %c0_2, %c0_3] : memref<3x128x128xbf16, #tpu.memory_space<vmem>>, vector<1x128x128xbf16>
    %2 = vector.shape_cast %1 : vector<1x128x128xbf16> to vector<128x128xbf16>
    %c1 = arith.constant 1 : index
    %c0_4 = arith.constant 0 : index
    %c0_5 = arith.constant 0 : index
    %3 = vector.load %arg2[%c1, %c0_4, %c0_5] : memref<3x128x128xbf16, #tpu.memory_space<vmem>>, vector<1x128x128xbf16>
    %4 = vector.shape_cast %3 : vector<1x128x128xbf16> to vector<128x128xbf16>
    %c2 = arith.constant 2 : index
    %c0_6 = arith.constant 0 : index
    %c0_7 = arith.constant 0 : index
    %5 = vector.load %arg2[%c2, %c0_6, %c0_7] : memref<3x128x128xbf16, #tpu.memory_space<vmem>>, vector<1x128x128xbf16>
    %6 = vector.shape_cast %5 : vector<1x128x128xbf16> to vector<128x128xbf16>
    %c1_i32 = arith.constant 1 : i32
    %7 = tpu.dynamic_rotate %0 by %c1_i32 dim 0 : vector<128x128xf32>, i32 -> vector<128x128xf32>
    %8 = tpu.iota {dimensions = array<i32: 0>} : vector<128x128xi32>
    %c16_i32 = arith.constant 16 : i32
    %c0_i32 = arith.constant 0 : i32
    %9 = arith.cmpi eq, %c16_i32, %c0_i32 : i32
    %c1_i32_8 = arith.constant 1 : i32
    %10 = arith.select %9, %c1_i32_8, %c16_i32 : i32
    %11 = vector.broadcast %10 : i32 to vector<128x128xi32>
    %12 = arith.remsi %8, %11 : vector<128x128xi32>
    %c0_i32_9 = arith.constant 0 : i32
    %13 = vector.broadcast %c0_i32_9 : i32 to vector<128x128xi32>
    %14 = arith.cmpi ne, %12, %13 : vector<128x128xi32>
    %c0_i32_10 = arith.constant 0 : i32
    %15 = vector.broadcast %c0_i32_10 : i32 to vector<128x128xi32>
    %16 = arith.cmpi slt, %12, %15 : vector<128x128xi32>
    %c0_i32_11 = arith.constant 0 : i32
    %17 = arith.cmpi slt, %10, %c0_i32_11 : i32
    %18 = vector.broadcast %17 : i1 to vector<128x128xi1>
    %19 = vector.broadcast %18 : vector<128x128xi1> to vector<128x128xi1>
    %20 = arith.xori %16, %19 : vector<128x128xi1>
    %21 = arith.andi %20, %14 : vector<128x128xi1>
    %22 = vector.broadcast %10 : i32 to vector<128x128xi32>
    %23 = arith.addi %12, %22 : vector<128x128xi32>
    %24 = arith.select %21, %23, %12 : vector<128x128xi1>, vector<128x128xi32>
    %c-1_i32 = arith.constant -1 : i32
    %25 = vector.broadcast %c-1_i32 : i32 to vector<128x128xi32>
    %26 = arith.addi %24, %25 : vector<128x128xi32>
    %c0_i32_12 = arith.constant 0 : i32
    %27 = vector.broadcast %c0_i32_12 : i32 to vector<128x128xi32>
    %28 = arith.cmpi sge, %26, %27 : vector<128x128xi32>
    %c16_i32_13 = arith.constant 16 : i32
    %29 = vector.broadcast %c16_i32_13 : i32 to vector<128x128xi32>
    %30 = arith.cmpi slt, %26, %29 : vector<128x128xi32>
    %31 = arith.andi %28, %30 : vector<128x128xi1>
    %32 = arith.extui %31 : vector<128x128xi1> to vector<128x128xi32>
    %33 = arith.sitofp %32 : vector<128x128xi32> to vector<128x128xf32>
    %34 = arith.mulf %7, %33 : vector<128x128xf32>
    %35 = arith.truncf %34 : vector<128x128xf32> to vector<128x128xbf16>
    %cst = arith.constant dense<0.000000e+00> : vector<128x128xf32>
    %36 = tpu.matmul %35, %2, %cst {dimension_numbers = #tpu.dot_dimension_numbers<[1], [0], [0], [1], [0, 0, 1, 1], [], []>} : vector<128x128xbf16>, vector<128x128xbf16>, vector<128x128xf32> -> vector<128x128xf32>
    %37 = arith.truncf %0 : vector<128x128xf32> to vector<128x128xbf16>
    %cst_14 = arith.constant dense<0.000000e+00> : vector<128x128xf32>
    %38 = tpu.matmul %37, %4, %cst_14 {dimension_numbers = #tpu.dot_dimension_numbers<[1], [0], [0], [1], [0, 0, 1, 1], [], []>} : vector<128x128xbf16>, vector<128x128xbf16>, vector<128x128xf32> -> vector<128x128xf32>
    %39 = arith.addf %36, %38 : vector<128x128xf32>
    %c127_i32 = arith.constant 127 : i32
    %40 = tpu.dynamic_rotate %0 by %c127_i32 dim 0 : vector<128x128xf32>, i32 -> vector<128x128xf32>
    %41 = tpu.iota {dimensions = array<i32: 0>} : vector<128x128xi32>
    %c16_i32_15 = arith.constant 16 : i32
    %c0_i32_16 = arith.constant 0 : i32
    %42 = arith.cmpi eq, %c16_i32_15, %c0_i32_16 : i32
    %c1_i32_17 = arith.constant 1 : i32
    %43 = arith.select %42, %c1_i32_17, %c16_i32_15 : i32
    %44 = vector.broadcast %43 : i32 to vector<128x128xi32>
    %45 = arith.remsi %41, %44 : vector<128x128xi32>
    %c0_i32_18 = arith.constant 0 : i32
    %46 = vector.broadcast %c0_i32_18 : i32 to vector<128x128xi32>
    %47 = arith.cmpi ne, %45, %46 : vector<128x128xi32>
    %c0_i32_19 = arith.constant 0 : i32
    %48 = vector.broadcast %c0_i32_19 : i32 to vector<128x128xi32>
    %49 = arith.cmpi slt, %45, %48 : vector<128x128xi32>
    %c0_i32_20 = arith.constant 0 : i32
    %50 = arith.cmpi slt, %43, %c0_i32_20 : i32
    %51 = vector.broadcast %50 : i1 to vector<128x128xi1>
    %52 = vector.broadcast %51 : vector<128x128xi1> to vector<128x128xi1>
    %53 = arith.xori %49, %52 : vector<128x128xi1>
    %54 = arith.andi %53, %47 : vector<128x128xi1>
    %55 = vector.broadcast %43 : i32 to vector<128x128xi32>
    %56 = arith.addi %45, %55 : vector<128x128xi32>
    %57 = arith.select %54, %56, %45 : vector<128x128xi1>, vector<128x128xi32>
    %c1_i32_21 = arith.constant 1 : i32
    %58 = vector.broadcast %c1_i32_21 : i32 to vector<128x128xi32>
    %59 = arith.addi %57, %58 : vector<128x128xi32>
    %c0_i32_22 = arith.constant 0 : i32
    %60 = vector.broadcast %c0_i32_22 : i32 to vector<128x128xi32>
    %61 = arith.cmpi sge, %59, %60 : vector<128x128xi32>
    %c16_i32_23 = arith.constant 16 : i32
    %62 = vector.broadcast %c16_i32_23 : i32 to vector<128x128xi32>
    %63 = arith.cmpi slt, %59, %62 : vector<128x128xi32>
    %64 = arith.andi %61, %63 : vector<128x128xi1>
    %65 = arith.extui %64 : vector<128x128xi1> to vector<128x128xi32>
    %66 = arith.sitofp %65 : vector<128x128xi32> to vector<128x128xf32>
    %67 = arith.mulf %40, %66 : vector<128x128xf32>
    %68 = arith.truncf %67 : vector<128x128xf32> to vector<128x128xbf16>
    %cst_24 = arith.constant dense<0.000000e+00> : vector<128x128xf32>
    %69 = tpu.matmul %68, %6, %cst_24 {dimension_numbers = #tpu.dot_dimension_numbers<[1], [0], [0], [1], [0, 0, 1, 1], [], []>} : vector<128x128xbf16>, vector<128x128xbf16>, vector<128x128xf32> -> vector<128x128xf32>
    %70 = arith.addf %39, %69 : vector<128x128xf32>
    %c0_25 = arith.constant 0 : index
    %c0_26 = arith.constant 0 : index
    %71 = vector.load %arg11[%c0_25, %c0_26] : memref<128x128xf32, #tpu.memory_space<vmem>>, vector<128x128xf32>
    tpu.vector_store %arg11[%c0_25, %c0_26], %70 {strides = array<i32>} : memref<128x128xf32, #tpu.memory_space<vmem>>, vector<128x128xf32>,
    %c0_27 = arith.constant 0 : index
    %c0_28 = arith.constant 0 : index
    %72 = vector.load %arg3[%c0_27, %c0_28] : memref<1x128xf32, #tpu.memory_space<vmem>>, vector<1x128xf32>
    %73 = vector.broadcast %72 : vector<1x128xf32> to vector<128x128xf32>
    %74 = arith.mulf %70, %73 : vector<128x128xf32>
    %c0_29 = arith.constant 0 : index
    %c0_30 = arith.constant 0 : index
    %75 = vector.load %arg4[%c0_29, %c0_30] : memref<1x128xf32, #tpu.memory_space<vmem>>, vector<1x128xf32>
    %76 = vector.broadcast %75 : vector<1x128xf32> to vector<128x128xf32>
    %77 = arith.addf %74, %76 : vector<128x128xf32>
    %c0_31 = arith.constant 0 : index
    %c0_32 = arith.constant 0 : index
    %78 = vector.load %arg12[%c0_31, %c0_32] : memref<128x128xf32, #tpu.memory_space<vmem>>, vector<128x128xf32>
    tpu.vector_store %arg12[%c0_31, %c0_32], %77 {strides = array<i32>} : memref<128x128xf32, #tpu.memory_space<vmem>>, vector<128x128xf32>,
    %79 = arith.negf %77 : vector<128x128xf32>
    %80 = math.exp %79 : vector<128x128xf32>
    %cst_33 = arith.constant 1.000000e+00 : f32
    %81 = vector.broadcast %cst_33 : f32 to vector<128x128xf32>
    %82 = arith.addf %81, %80 : vector<128x128xf32>
    %83 = arith.divf %81, %82 : vector<128x128xf32>
    %84 = arith.mulf %77, %83 : vector<128x128xf32>
    %c0_34 = arith.constant 0 : index
    %c0_35 = arith.constant 0 : index
    %85 = vector.load %arg13[%c0_34, %c0_35] : memref<128x128xf32, #tpu.memory_space<vmem>>, vector<128x128xf32>
    tpu.vector_store %arg13[%c0_34, %c0_35], %84 {strides = array<i32>} : memref<128x128xf32, #tpu.memory_space<vmem>>, vector<128x128xf32>,
    %c0_36 = arith.constant 0 : index
    %c0_37 = arith.constant 0 : index
    %c0_38 = arith.constant 0 : index
    %c0_39 = arith.constant 0 : index
    %86 = vector.load %arg5[%c0_36, %c0_37, %c0_38, %c0_39] : memref<2x3x128x128xbf16, #tpu.memory_space<vmem>>, vector<1x1x128x128xbf16>
    %87 = vector.shape_cast %86 : vector<1x1x128x128xbf16> to vector<128x128xbf16>
    %c0_40 = arith.constant 0 : index
    %c1_41 = arith.constant 1 : index
    %c0_42 = arith.constant 0 : index
    %c0_43 = arith.constant 0 : index
    %88 = vector.load %arg5[%c0_40, %c1_41, %c0_42, %c0_43] : memref<2x3x128x128xbf16, #tpu.memory_space<vmem>>, vector<1x1x128x128xbf16>
    %89 = vector.shape_cast %88 : vector<1x1x128x128xbf16> to vector<128x128xbf16>
    %c0_44 = arith.constant 0 : index
    %c2_45 = arith.constant 2 : index
    %c0_46 = arith.constant 0 : index
    %c0_47 = arith.constant 0 : index
    %90 = vector.load %arg5[%c0_44, %c2_45, %c0_46, %c0_47] : memref<2x3x128x128xbf16, #tpu.memory_space<vmem>>, vector<1x1x128x128xbf16>
    %91 = vector.shape_cast %90 : vector<1x1x128x128xbf16> to vector<128x128xbf16>
    %c1_i32_48 = arith.constant 1 : i32
    %92 = tpu.dynamic_rotate %84 by %c1_i32_48 dim 0 : vector<128x128xf32>, i32 -> vector<128x128xf32>
    %93 = arith.mulf %92, %33 : vector<128x128xf32>
    %94 = arith.truncf %93 : vector<128x128xf32> to vector<128x128xbf16>
    %cst_49 = arith.constant dense<0.000000e+00> : vector<128x128xf32>
    %95 = tpu.matmul %94, %87, %cst_49 {dimension_numbers = #tpu.dot_dimension_numbers<[1], [0], [0], [1], [0, 0, 1, 1], [], []>} : vector<128x128xbf16>, vector<128x128xbf16>, vector<128x128xf32> -> vector<128x128xf32>
    %96 = arith.truncf %84 : vector<128x128xf32> to vector<128x128xbf16>
    %cst_50 = arith.constant dense<0.000000e+00> : vector<128x128xf32>
    %97 = tpu.matmul %96, %89, %cst_50 {dimension_numbers = #tpu.dot_dimension_numbers<[1], [0], [0], [1], [0, 0, 1, 1], [], []>} : vector<128x128xbf16>, vector<128x128xbf16>, vector<128x128xf32> -> vector<128x128xf32>
    %98 = arith.addf %95, %97 : vector<128x128xf32>
    %c127_i32_51 = arith.constant 127 : i32
    %99 = tpu.dynamic_rotate %84 by %c127_i32_51 dim 0 : vector<128x128xf32>, i32 -> vector<128x128xf32>
    %100 = arith.mulf %99, %66 : vector<128x128xf32>
    %101 = arith.truncf %100 : vector<128x128xf32> to vector<128x128xbf16>
    %cst_52 = arith.constant dense<0.000000e+00> : vector<128x128xf32>
    %102 = tpu.matmul %101, %91, %cst_52 {dimension_numbers = #tpu.dot_dimension_numbers<[1], [0], [0], [1], [0, 0, 1, 1], [], []>} : vector<128x128xbf16>, vector<128x128xbf16>, vector<128x128xf32> -> vector<128x128xf32>
    %103 = arith.addf %98, %102 : vector<128x128xf32>
    %c0_53 = arith.constant 0 : index
    %c0_54 = arith.constant 0 : index
    %c0_55 = arith.constant 0 : index
    %104 = vector.load %arg6[%c0_53, %c0_54, %c0_55] : memref<2x1x128xf32, #tpu.memory_space<vmem>>, vector<1x1x128xf32>
    %105 = vector.shape_cast %104 : vector<1x1x128xf32> to vector<1x128xf32>
    %106 = vector.broadcast %105 : vector<1x128xf32> to vector<128x128xf32>
    %107 = arith.mulf %103, %106 : vector<128x128xf32>
    %c0_56 = arith.constant 0 : index
    %c0_57 = arith.constant 0 : index
    %c0_58 = arith.constant 0 : index
    %108 = vector.load %arg7[%c0_56, %c0_57, %c0_58] : memref<2x1x128xf32, #tpu.memory_space<vmem>>, vector<1x1x128xf32>
    %109 = vector.shape_cast %108 : vector<1x1x128xf32> to vector<1x128xf32>
    %110 = vector.broadcast %109 : vector<1x128xf32> to vector<128x128xf32>
    %111 = arith.addf %107, %110 : vector<128x128xf32>
    %112 = arith.negf %111 : vector<128x128xf32>
    %113 = math.exp %112 : vector<128x128xf32>
    %cst_59 = arith.constant 1.000000e+00 : f32
    %114 = vector.broadcast %cst_59 : f32 to vector<128x128xf32>
    %115 = arith.addf %114, %113 : vector<128x128xf32>
    %116 = arith.divf %114, %115 : vector<128x128xf32>
    %117 = arith.mulf %111, %116 : vector<128x128xf32>
    %c0_60 = arith.constant 0 : index
    %c0_61 = arith.constant 0 : index
    %118 = vector.load %arg14[%c0_60, %c0_61] : memref<128x128xf32, #tpu.memory_space<vmem>>, vector<128x128xf32>
    tpu.vector_store %arg14[%c0_60, %c0_61], %117 {strides = array<i32>} : memref<128x128xf32, #tpu.memory_space<vmem>>, vector<128x128xf32>,
    %c1_62 = arith.constant 1 : index
    %c0_63 = arith.constant 0 : index
    %c0_64 = arith.constant 0 : index
    %c0_65 = arith.constant 0 : index
    %119 = vector.load %arg5[%c1_62, %c0_63, %c0_64, %c0_65] : memref<2x3x128x128xbf16, #tpu.memory_space<vmem>>, vector<1x1x128x128xbf16>
    %120 = vector.shape_cast %119 : vector<1x1x128x128xbf16> to vector<128x128xbf16>
    %c1_66 = arith.constant 1 : index
    %c1_67 = arith.constant 1 : index
    %c0_68 = arith.constant 0 : index
    %c0_69 = arith.constant 0 : index
    %121 = vector.load %arg5[%c1_66, %c1_67, %c0_68, %c0_69] : memref<2x3x128x128xbf16, #tpu.memory_space<vmem>>, vector<1x1x128x128xbf16>
    %122 = vector.shape_cast %121 : vector<1x1x128x128xbf16> to vector<128x128xbf16>
    %c1_70 = arith.constant 1 : index
    %c2_71 = arith.constant 2 : index
    %c0_72 = arith.constant 0 : index
    %c0_73 = arith.constant 0 : index
    %123 = vector.load %arg5[%c1_70, %c2_71, %c0_72, %c0_73] : memref<2x3x128x128xbf16, #tpu.memory_space<vmem>>, vector<1x1x128x128xbf16>
    %124 = vector.shape_cast %123 : vector<1x1x128x128xbf16> to vector<128x128xbf16>
    %c1_i32_74 = arith.constant 1 : i32
    %125 = tpu.dynamic_rotate %117 by %c1_i32_74 dim 0 : vector<128x128xf32>, i32 -> vector<128x128xf32>
    %126 = arith.mulf %125, %33 : vector<128x128xf32>
    %127 = arith.truncf %126 : vector<128x128xf32> to vector<128x128xbf16>
    %cst_75 = arith.constant dense<0.000000e+00> : vector<128x128xf32>
    %128 = tpu.matmul %127, %120, %cst_75 {dimension_numbers = #tpu.dot_dimension_numbers<[1], [0], [0], [1], [0, 0, 1, 1], [], []>} : vector<128x128xbf16>, vector<128x128xbf16>, vector<128x128xf32> -> vector<128x128xf32>
    %129 = arith.truncf %117 : vector<128x128xf32> to vector<128x128xbf16>
    %cst_76 = arith.constant dense<0.000000e+00> : vector<128x128xf32>
    %130 = tpu.matmul %129, %122, %cst_76 {dimension_numbers = #tpu.dot_dimension_numbers<[1], [0], [0], [1], [0, 0, 1, 1], [], []>} : vector<128x128xbf16>, vector<128x128xbf16>, vector<128x128xf32> -> vector<128x128xf32>
    %131 = arith.addf %128, %130 : vector<128x128xf32>
    %c127_i32_77 = arith.constant 127 : i32
    %132 = tpu.dynamic_rotate %117 by %c127_i32_77 dim 0 : vector<128x128xf32>, i32 -> vector<128x128xf32>
    %133 = arith.mulf %132, %66 : vector<128x128xf32>
    %134 = arith.truncf %133 : vector<128x128xf32> to vector<128x128xbf16>
    %cst_78 = arith.constant dense<0.000000e+00> : vector<128x128xf32>
    %135 = tpu.matmul %134, %124, %cst_78 {dimension_numbers = #tpu.dot_dimension_numbers<[1], [0], [0], [1], [0, 0, 1, 1], [], []>} : vector<128x128xbf16>, vector<128x128xbf16>, vector<128x128xf32> -> vector<128x128xf32>
    %136 = arith.addf %131, %135 : vector<128x128xf32>
    %c1_79 = arith.constant 1 : index
    %c0_80 = arith.constant 0 : index
    %c0_81 = arith.constant 0 : index
    %137 = vector.load %arg6[%c1_79, %c0_80, %c0_81] : memref<2x1x128xf32, #tpu.memory_space<vmem>>, vector<1x1x128xf32>
    %138 = vector.shape_cast %137 : vector<1x1x128xf32> to vector<1x128xf32>
    %139 = vector.broadcast %138 : vector<1x128xf32> to vector<128x128xf32>
    %140 = arith.mulf %136, %139 : vector<128x128xf32>
    %c1_82 = arith.constant 1 : index
    %c0_83 = arith.constant 0 : index
    %c0_84 = arith.constant 0 : index
    %141 = vector.load %arg7[%c1_82, %c0_83, %c0_84] : memref<2x1x128xf32, #tpu.memory_space<vmem>>, vector<1x1x128xf32>
    %142 = vector.shape_cast %141 : vector<1x1x128xf32> to vector<1x128xf32>
    %143 = vector.broadcast %142 : vector<1x128xf32> to vector<128x128xf32>
    %144 = arith.addf %140, %143 : vector<128x128xf32>
    %145 = arith.negf %144 : vector<128x128xf32>
    %146 = math.exp %145 : vector<128x128xf32>
    %cst_85 = arith.constant 1.000000e+00 : f32
    %147 = vector.broadcast %cst_85 : f32 to vector<128x128xf32>
    %148 = arith.addf %147, %146 : vector<128x128xf32>
    %149 = arith.divf %147, %148 : vector<128x128xf32>
    %150 = arith.mulf %144, %149 : vector<128x128xf32>
    %c0_86 = arith.constant 0 : index
    %c0_87 = arith.constant 0 : index
    %151 = vector.load %arg15[%c0_86, %c0_87] : memref<128x128xf32, #tpu.memory_space<vmem>>, vector<128x128xf32>
    tpu.vector_store %arg15[%c0_86, %c0_87], %150 {strides = array<i32>} : memref<128x128xf32, #tpu.memory_space<vmem>>, vector<128x128xf32>,
    %152 = arith.truncf %150 : vector<128x128xf32> to vector<128x128xbf16>
    %c0_88 = arith.constant 0 : index
    %c0_89 = arith.constant 0 : index
    %153 = vector.load %arg8[%c0_88, %c0_89] : memref<128x256xbf16, #tpu.memory_space<vmem>>, vector<128x256xbf16>
    %cst_90 = arith.constant dense<0.000000e+00> : vector<128x256xf32>
    %154 = tpu.matmul %152, %153, %cst_90 {dimension_numbers = #tpu.dot_dimension_numbers<[1], [0], [0], [1], [0, 0, 1, 1], [], []>} : vector<128x128xbf16>, vector<128x256xbf16>, vector<128x256xf32> -> vector<128x256xf32>
    %c0_91 = arith.constant 0 : index
    %c0_92 = arith.constant 0 : index
    %155 = vector.load %arg16[%c0_91, %c0_92] : memref<128x256xf32, #tpu.memory_space<vmem>>, vector<128x256xf32>
    tpu.vector_store %arg16[%c0_91, %c0_92], %154 {strides = array<i32>} : memref<128x256xf32, #tpu.memory_space<vmem>>, vector<128x256xf32>,
    %c0_93 = arith.constant 0 : index
    %c0_94 = arith.constant 0 : index
    %156 = vector.load %arg9[%c0_93, %c0_94] : memref<1x256xf32, #tpu.memory_space<vmem>>, vector<1x256xf32>
    %157 = vector.broadcast %156 : vector<1x256xf32> to vector<128x256xf32>
    %158 = arith.mulf %154, %157 : vector<128x256xf32>
    %c0_95 = arith.constant 0 : index
    %c0_96 = arith.constant 0 : index
    %159 = vector.load %arg10[%c0_95, %c0_96] : memref<1x256xf32, #tpu.memory_space<vmem>>, vector<1x256xf32>
    %160 = vector.broadcast %159 : vector<1x256xf32> to vector<128x256xf32>
    %161 = arith.addf %158, %160 : vector<128x256xf32>
    %c0_97 = arith.constant 0 : index
    %c0_98 = arith.constant 0 : index
    %162 = vector.load %arg17[%c0_97, %c0_98] : memref<128x256xf32, #tpu.memory_space<vmem>>, vector<128x256xf32>
    tpu.vector_store %arg17[%c0_97, %c0_98], %161 {strides = array<i32>} : memref<128x256xf32, #tpu.memory_space<vmem>>, vector<128x256xf32>,
    %163 = arith.negf %161 : vector<128x256xf32>
    %164 = math.exp %163 : vector<128x256xf32>
    %cst_99 = arith.constant 1.000000e+00 : f32
    %165 = vector.broadcast %cst_99 : f32 to vector<128x256xf32>
    %166 = arith.addf %165, %164 : vector<128x256xf32>
    %167 = arith.divf %165, %166 : vector<128x256xf32>
    %168 = arith.mulf %161, %167 : vector<128x256xf32>
    %c0_100 = arith.constant 0 : index
    %c0_101 = arith.constant 0 : index
    %169 = vector.load %arg18[%c0_100, %c0_101] : memref<128x256xf32, #tpu.memory_space<vmem>>, vector<128x256xf32>
    tpu.vector_store %arg18[%c0_100, %c0_101], %168 {strides = array<i32>} : memref<128x256xf32, #tpu.memory_space<vmem>>, vector<128x256xf32>,
    return
  }
  func.func @transform_0(%arg0: i32) -> (i32, i32) {
    %c0_i32 = arith.constant 0 : i32
    %c0_i32_0 = arith.constant 0 : i32
    return %arg0, %c0_i32 : i32, i32
  }
  func.func @transform_1(%arg0: i32) -> (i32, i32, i32) {
    %c0_i32 = arith.constant 0 : i32
    %c0_i32_0 = arith.constant 0 : i32
    %c0_i32_1 = arith.constant 0 : i32
    %c0_i32_2 = arith.constant 0 : i32
    return %c0_i32, %c0_i32_0, %c0_i32_1 : i32, i32, i32
  }
  func.func @transform_2(%arg0: i32) -> (i32, i32) {
    %c0_i32 = arith.constant 0 : i32
    %c0_i32_0 = arith.constant 0 : i32
    %c0_i32_1 = arith.constant 0 : i32
    return %c0_i32, %c0_i32_0 : i32, i32
  }
  func.func @transform_3(%arg0: i32) -> (i32, i32) {
    %c0_i32 = arith.constant 0 : i32
    %c0_i32_0 = arith.constant 0 : i32
    %c0_i32_1 = arith.constant 0 : i32
    return %c0_i32, %c0_i32_0 : i32, i32
  }
  func.func @transform_4(%arg0: i32) -> (i32, i32, i32, i32) {
    %c0_i32 = arith.constant 0 : i32
    %c0_i32_0 = arith.constant 0 : i32
    %c0_i32_1 = arith.constant 0 : i32
    %c0_i32_2 = arith.constant 0 : i32
    %c0_i32_3 = arith.constant 0 : i32
    return %c0_i32, %c0_i32_0, %c0_i32_1, %c0_i32_2 : i32, i32, i32, i32
  }
  func.func @transform_5(%arg0: i32) -> (i32, i32, i32) {
    %c0_i32 = arith.constant 0 : i32
    %c0_i32_0 = arith.constant 0 : i32
    %c0_i32_1 = arith.constant 0 : i32
    %c0_i32_2 = arith.constant 0 : i32
    return %c0_i32, %c0_i32_0, %c0_i32_1 : i32, i32, i32
  }
  func.func @transform_6(%arg0: i32) -> (i32, i32, i32) {
    %c0_i32 = arith.constant 0 : i32
    %c0_i32_0 = arith.constant 0 : i32
    %c0_i32_1 = arith.constant 0 : i32
    %c0_i32_2 = arith.constant 0 : i32
    return %c0_i32, %c0_i32_0, %c0_i32_1 : i32, i32, i32
  }
  func.func @transform_7(%arg0: i32) -> (i32, i32) {
    %c0_i32 = arith.constant 0 : i32
    %c0_i32_0 = arith.constant 0 : i32
    %c0_i32_1 = arith.constant 0 : i32
    return %c0_i32, %c0_i32_0 : i32, i32
  }
  func.func @transform_8(%arg0: i32) -> (i32, i32) {
    %c0_i32 = arith.constant 0 : i32
    %c0_i32_0 = arith.constant 0 : i32
    %c0_i32_1 = arith.constant 0 : i32
    return %c0_i32, %c0_i32_0 : i32, i32
  }
  func.func @transform_9(%arg0: i32) -> (i32, i32) {
    %c0_i32 = arith.constant 0 : i32
    %c0_i32_0 = arith.constant 0 : i32
    %c0_i32_1 = arith.constant 0 : i32
    return %c0_i32, %c0_i32_0 : i32, i32
  }
  func.func @transform_10(%arg0: i32) -> (i32, i32) {
    %c0_i32 = arith.constant 0 : i32
    %c0_i32_0 = arith.constant 0 : i32
    return %arg0, %c0_i32 : i32, i32
  }
  func.func @transform_11(%arg0: i32) -> (i32, i32) {
    %c0_i32 = arith.constant 0 : i32
    %c0_i32_0 = arith.constant 0 : i32
    return %arg0, %c0_i32 : i32, i32
  }
  func.func @transform_12(%arg0: i32) -> (i32, i32) {
    %c0_i32 = arith.constant 0 : i32
    %c0_i32_0 = arith.constant 0 : i32
    return %arg0, %c0_i32 : i32, i32
  }
  func.func @transform_13(%arg0: i32) -> (i32, i32) {
    %c0_i32 = arith.constant 0 : i32
    %c0_i32_0 = arith.constant 0 : i32
    return %arg0, %c0_i32 : i32, i32
  }
  func.func @transform_14(%arg0: i32) -> (i32, i32) {
    %c0_i32 = arith.constant 0 : i32
    %c0_i32_0 = arith.constant 0 : i32
    return %arg0, %c0_i32 : i32, i32
  }
  func.func @transform_15(%arg0: i32) -> (i32, i32) {
    %c0_i32 = arith.constant 0 : i32
    %c0_i32_0 = arith.constant 0 : i32
    return %arg0, %c0_i32 : i32, i32
  }
  func.func @transform_16(%arg0: i32) -> (i32, i32) {
    %c0_i32 = arith.constant 0 : i32
    %c0_i32_0 = arith.constant 0 : i32
    return %arg0, %c0_i32 : i32, i32
  }
  func.func @transform_17(%arg0: i32) -> (i32, i32) {
    %c0_i32 = arith.constant 0 : i32
    %c0_i32_0 = arith.constant 0 : i32
    return %arg0, %c0_i32 : i32, i32
  }
}

</mosaic_0001>

<bundles_post_ra>
// kernel: tile.63
= control target key start
LH: loop header
LB: loop body
LE: loop exit
PB: predicated region body
PF: predicated region fallthrough
CT: control target
= control target key end

     0   :  { %s28_s0 = inlined_call_operand.vmem [shape: f32[8], index: 0, kind: input, shape index: {}]   ;;  %s29_s1 = inlined_call_operand.vmem [shape: f32[16,8], index: 1, kind: output, shape index: {}]  }
   0x1   :  { %v4_v0 = vld [vmem:[%s28_s0] ss:$0 sm:$0xff] }
   0x2   :  { %5 = vst [vmem:[%s29_s1] sm:$0xff] %v4_v0  ;;  %8 = vst [vmem:[%s29_s1 + $0x8] sm:$0xff] %v4_v0 }

// kernel: tile.68
= control target key start
LH: loop header
LB: loop body
LE: loop exit
PB: predicated region body
PF: predicated region fallthrough
CT: control target
= control target key end

     0   :  { %s131_s10 = smov 120   ;;  %s132_s11 = smov 104   ;;  %vm3_vm0 = vcmask 64512   ;;  %vm9_vm1 = vcmask 1048512   ;;  %vm15_vm2 = vcmask 982912   ;;  %vm21_vm3 = vcmask 917312   ;;  %s207_s0 = inlined_call_operand.vmem [shape: f32[16,8], index: 0, kind: input, shape index: {}]   ;;  %s208_s1 = inlined_call_operand.vmem [shape: f32[1,1,128], index: 1, kind: output, shape index: {}]  }
   0x1   :  { %v101_v0 = vld [vmem:[%s207_s0 + $0xf] sm:$0x1]   ;;  %v103_v1 = vld [vmem:[%s207_s0 + $0xd] sm:$0x1]   ;;  %v102_v2 = vld [vmem:[%s207_s0 + $0xe] sm:$0x1]  }
   0x2   :  { %7 = vrot.lane.b32.xlu0 %v101_v0, %s131_s10  ;;  %19 = vrot.lane.b32.xlu1 %v103_v1, %s132_s11  ;;  %v104_v3 = vld [vmem:[%s207_s0 + $0xc] sm:$0x1]   ;;  %s133_s16 = smov 112   ;;  %s134_s17 = smov 96   ;;  %v105_v4 = vld [vmem:[%s207_s0 + $0xb] sm:$0x1]  }
   0x3   :  { %v106_v5 = vld [vmem:[%s207_s0 + $0xa] sm:$0x1]   ;;  %v2_v6 = vld [vmem:[%s207_s0] sm:$0x1]   ;;  %s135_s24 = smov 88   ;;  %s136_s25 = smov 80  }
   0x4   :  { %4 = vst.msk [vmem:[#allocation0] sm:$0x1] %vm3_vm0, %v2_v6   ;;  %v107_v7 = vld [vmem:[%s207_s0 + $0x9] sm:$0x1]   ;;  %v108_v8 = vld [vmem:[%s207_s0 + $0x8] sm:$0x1]  }
   0x5   :  { %s137_s30 = smov 72   ;;  %s138_s2 = smov 64   ;;  %v109_v9 = vld [vmem:[%s207_s0 + $0x7] sm:$0x1]   ;;  %v110_v10 = vld [vmem:[%s207_s0 + $0x6] sm:$0x1]  }
   0x6   :  { %13 = vrot.lane.b32.xlu0 %v102_v2, %s133_s16  ;;  %25 = vrot.lane.b32.xlu1 %v104_v3, %s134_s17  ;;  %s139_s7 = smov 56   ;;  %s140_s8 = smov 48   ;;  %v111_v11 = vld [vmem:[%s207_s0 + $0x5] sm:$0x1]   ;;  %v112_v12 = vld [vmem:[%s207_s0 + $0x4] sm:$0x1]  }
   0x7   :  { %s141_s13 = smov 40   ;;  %s142_s14 = smov 32   ;;  %v113_v13 = vld [vmem:[%s207_s0 + $0x3] sm:$0x1]   ;;  %v114_v14 = vld [vmem:[%s207_s0 + $0x2] sm:$0x1]  }
   0x8   :  { %s143_s19 = smov 24   ;;  %s144_s20 = smov 16   ;;  %v115_v15 = vld [vmem:[%s207_s0 + $0x1] sm:$0x1]   ;;  %vm27_vm4 = vcmask 851712   ;;  %vm33_vm5 = vcmask 786112  }
   0x9   :  { %s145_s0 = smov 8   ;;  %vm39_vm6 = vcmask 720512   ;;  %vm45_vm7 = vcmask 654912   ;;  %vm51_vm8 = vcmask 589312   ;;  %vm57_vm9 = vcmask 523712  }
   0xa   :  { %31 = vrot.lane.b32.xlu0 %v105_v4, %s135_s24  ;;  %37 = vrot.lane.b32.xlu1 %v106_v5, %s136_s25  ;;  %vm63_vm10 = vcmask 458112   ;;  %vm69_vm11 = vcmask 392512   ;;  %vm75_vm12 = vcmask 326912   ;;  %vm81_vm13 = vcmask 261312  }
   0xb   :  { %vm87_vm14 = vcmask 195712   ;;  %vm93_vm15 = vcmask 130112  }
   0xe   :  { %43 = vrot.lane.b32.xlu0 %v107_v7, %s137_s30  ;;  %49 = vrot.lane.b32.xlu1 %v108_v8, %s138_s2 }
  0x12   :  { %55 = vrot.lane.b32.xlu0 %v109_v9, %s139_s7  ;;  %61 = vrot.lane.b32.xlu1 %v110_v10, %s140_s8 }
  0x16   :  { %67 = vrot.lane.b32.xlu0 %v111_v11, %s141_s13  ;;  %73 = vrot.lane.b32.xlu1 %v112_v12, %s142_s14 }
  0x1a   :  { %79 = vrot.lane.b32.xlu0 %v113_v13, %s143_s19  ;;  %85 = vrot.lane.b32.xlu1 %v114_v14, %s144_s20 }
  0x1e   :  { %91 = vrot.lane.b32.xlu0 %v115_v15, %s145_s0 }
  0x74   :  { %v8_v16 = vpop.permute.xlu0 %7   ;;  %v20_v17 = vpop.permute.xlu1 %19  }
  0x75   :  { %10 = vst.msk [vmem:[#allocation0] sm:$0x1] %vm9_vm1, %v8_v16  }
  0x78   :  { %v14_v18 = vpop.permute.xlu0 %13   ;;  %v26_v19 = vpop.permute.xlu1 %25  }
  0x79   :  { %16 = vst.msk [vmem:[#allocation0] sm:$0x1] %vm15_vm2, %v14_v18  }
  0x7a   :  { %22 = vst.msk [vmem:[#allocation0] sm:$0x1] %vm21_vm3, %v20_v17  }
  0x7b   :  { %28 = vst.msk [vmem:[#allocation0] sm:$0x1] %vm27_vm4, %v26_v19  }
  0x7c   :  { %v32_v20 = vpop.permute.xlu0 %31   ;;  %v38_v21 = vpop.permute.xlu1 %37  }
  0x7d   :  { %34 = vst.msk [vmem:[#allocation0] sm:$0x1] %vm33_vm5, %v32_v20  }
  0x7e   :  { %40 = vst.msk [vmem:[#allocation0] sm:$0x1] %vm39_vm6, %v38_v21  }
  0x80   :  { %v44_v22 = vpop.permute.xlu0 %43   ;;  %v50_v23 = vpop.permute.xlu1 %49  }
  0x81   :  { %46 = vst.msk [vmem:[#allocation0] sm:$0x1] %vm45_vm7, %v44_v22  }
  0x82   :  { %52 = vst.msk [vmem:[#allocation0] sm:$0x1] %vm51_vm8, %v50_v23  }
  0x84   :  { %v56_v24 = vpop.permute.xlu0 %55   ;;  %v62_v25 = vpop.permute.xlu1 %61  }
  0x85   :  { %58 = vst.msk [vmem:[#allocation0] sm:$0x1] %vm57_vm9, %v56_v24  }
  0x86   :  { %64 = vst.msk [vmem:[#allocation0] sm:$0x1] %vm63_vm10, %v62_v25  }
  0x88   :  { %v68_v26 = vpop.permute.xlu0 %67   ;;  %v74_v27 = vpop.permute.xlu1 %73  }
  0x89   :  { %70 = vst.msk [vmem:[#allocation0] sm:$0x1] %vm69_vm11, %v68_v26  }
  0x8a   :  { %76 = vst.msk [vmem:[#allocation0] sm:$0x1] %vm75_vm12, %v74_v27  }
  0x8c   :  { %v80_v28 = vpop.permute.xlu0 %79   ;;  %v86_v29 = vpop.permute.xlu1 %85  }
  0x8d   :  { %82 = vst.msk [vmem:[#allocation0] sm:$0x1] %vm81_vm13, %v80_v28  }
  0x8e   :  { %88 = vst.msk [vmem:[#allocation0] sm:$0x1] %vm87_vm14, %v86_v29  }
  0x90   :  { %v92_v30 = vpop.permute.xlu0 %91  }
  0x91   :  { %94 = vst.msk [vmem:[#allocation0] sm:$0x1] %vm93_vm15, %v92_v30  }
  0x98   :  { %v98_v31 = vld [vmem:[#allocation0] sm:$0x1] }
  0x99   :  { %100 = vst [vmem:[%s208_s1] sm:$0x1] %v98_v31 }

// kernel: tile.53
= control target key start
LH: loop header
LB: loop body
LE: loop exit
PB: predicated region body
PF: predicated region fallthrough
CT: control target
= control target key end

     0   :  { %s28_s0 = inlined_call_operand.vmem [shape: f32[16], index: 0, kind: input, shape index: {}]   ;;  %s29_s1 = inlined_call_operand.vmem [shape: f32[16,16], index: 1, kind: output, shape index: {}]  }
   0x1   :  { %v4_v0 = vld [vmem:[%s28_s0] ss:$0 sm:$0xff] }
   0x2   :  { %5 = vst [vmem:[%s29_s1] sm:$0xff] %v4_v0  ;;  %8 = vst [vmem:[%s29_s1 + $0x8] sm:$0xff] %v4_v0 }

// kernel: tile.54
= control target key start
LH: loop header
LB: loop body
LE: loop exit
PB: predicated region body
PF: predicated region fallthrough
CT: control target
= control target key end

     0   :  { %s7_s6 = smov 3  ;;  %s21_s9 = smov 3  ;;  %vm4_vm0 = vcmask 130048   ;;  %vm11_vm1 = vcmask 1048448   ;;  %vm18_vm2 = vcmask 917248   ;;  %vm25_vm3 = vcmask 786048   ;;  %s128_s0 = inlined_call_operand.vmem [shape: f32[16,16], index: 0, kind: input, shape index: {}]   ;;  %s129_s1 = inlined_call_operand.vmem [shape: f32[1,256], index: 1, kind: output, shape index: {}]  }
   0x1   :  { %v66_v0 = vld [vmem:[%s128_s0 + $0x7] ss:$8 sm:%s7_s6]   ;;  %s81_s10 = smov 112   ;;  %v68_v1 = vld [vmem:[%s128_s0 + $0x5] ss:$8 sm:%s21_s9]   ;;  %s14_s13 = smov 3 }
   0x2   :  { %9 = vrot.lane.b32.xlu0 %v66_v0, %s81_s10  ;;  %s82_s14 = smov 80   ;;  %v67_v2 = vld [vmem:[%s128_s0 + $0x6] ss:$8 sm:%s14_s13]   ;;  %s28_s17 = smov 3  ;;  %vm32_vm4 = vcmask 654848   ;;  %vm39_vm5 = vcmask 523648  }
   0x3   :  { %23 = vrot.lane.b32.xlu1 %v68_v1, %s82_s14  ;;  %v69_v3 = vld [vmem:[%s128_s0 + $0x4] ss:$8 sm:%s28_s17]   ;;  %s35_s20 = smov 3  ;;  %s42_s21 = smov 3  ;;  %vm46_vm6 = vcmask 392448   ;;  %vm53_vm7 = vcmask 261248  }
   0x4   :  { %s83_s22 = smov 96   ;;  %s84_s23 = smov 64   ;;  %v70_v4 = vld [vmem:[%s128_s0 + $0x3] ss:$8 sm:%s35_s20]   ;;  %v71_v5 = vld [vmem:[%s128_s0 + $0x2] ss:$8 sm:%s42_s21]  }
   0x5   :  { %s2_s26 = smov 3  ;;  %s49_s29 = smov 3 }
   0x6   :  { %16 = vrot.lane.b32.xlu0 %v67_v2, %s83_s22  ;;  %v3_v6 = vld [vmem:[%s128_s0] ss:$8 sm:%s2_s26]   ;;  %s85_s3 = smov 48   ;;  %s86_s4 = smov 32  }
   0x7   :  { %30 = vrot.lane.b32.xlu1 %v69_v3, %s84_s23  ;;  %5 = vst.msk [vmem:[#allocation0] ss:$8 sm:$0x3] %vm4_vm0, %v3_v6   ;;  %v72_v7 = vld [vmem:[%s128_s0 + $0x1] ss:$8 sm:%s49_s29]   ;;  %s87_s0 = smov 16  }
   0xa   :  { %37 = vrot.lane.b32.xlu0 %v70_v4, %s85_s3 }
   0xb   :  { %44 = vrot.lane.b32.xlu1 %v71_v5, %s86_s4 }
   0xe   :  { %51 = vrot.lane.b32.xlu0 %v72_v7, %s87_s0 }
  0x74   :  { %v10_v8 = vpop.permute.xlu0 %9  }
  0x75   :  { %12 = vst.msk [vmem:[#allocation0] ss:$8 sm:$0x3] %vm11_vm1, %v10_v8   ;;  %v24_v9 = vpop.permute.xlu1 %23  }
  0x78   :  { %v17_v10 = vpop.permute.xlu0 %16  }
  0x79   :  { %19 = vst.msk [vmem:[#allocation0] ss:$8 sm:$0x3] %vm18_vm2, %v17_v10   ;;  %v31_v11 = vpop.permute.xlu1 %30  }
  0x7a   :  { %26 = vst.msk [vmem:[#allocation0] ss:$8 sm:$0x3] %vm25_vm3, %v24_v9  }
  0x7b   :  { %33 = vst.msk [vmem:[#allocation0] ss:$8 sm:$0x3] %vm32_vm4, %v31_v11  }
  0x7c   :  { %v38_v12 = vpop.permute.xlu0 %37  }
  0x7d   :  { %40 = vst.msk [vmem:[#allocation0] ss:$8 sm:$0x3] %vm39_vm5, %v38_v12   ;;  %v45_v13 = vpop.permute.xlu1 %44  }
  0x7e   :  { %47 = vst.msk [vmem:[#allocation0] ss:$8 sm:$0x3] %vm46_vm6, %v45_v13  }
  0x80   :  { %v52_v14 = vpop.permute.xlu0 %51  }
  0x81   :  { %54 = vst.msk [vmem:[#allocation0] ss:$8 sm:$0x3] %vm53_vm7, %v52_v14  }
  0x88   :  { %v58_v15 = vld [vmem:[#allocation0] sm:$0x1]  ;;  %v62_v16 = vld [vmem:[#allocation0 + $0x8] sm:$0x1] }
  0x89   :  { %60 = vst [vmem:[%s129_s1] sm:$0x1] %v58_v15  ;;  %73 = vst [vmem:[%s129_s1 + $0x1] sm:$0x1] %v62_v16 }

// kernel: tile.44
= control target key start
LH: loop header
LB: loop body
LE: loop exit
PB: predicated region body
PF: predicated region fallthrough
CT: control target
= control target key end

     0   :  { %s131_s10 = smov 120   ;;  %s132_s11 = smov 104   ;;  %vm3_vm0 = vcmask 64512   ;;  %vm9_vm1 = vcmask 1048512   ;;  %vm15_vm2 = vcmask 982912   ;;  %vm21_vm3 = vcmask 917312   ;;  %s207_s0 = inlined_call_operand.vmem [shape: f32[16,8], index: 0, kind: input, shape index: {}]   ;;  %s208_s1 = inlined_call_operand.vmem [shape: f32[1,128], index: 1, kind: output, shape index: {}]  }
   0x1   :  { %v101_v0 = vld [vmem:[%s207_s0 + $0xf] sm:$0x1]   ;;  %v103_v1 = vld [vmem:[%s207_s0 + $0xd] sm:$0x1]   ;;  %v102_v2 = vld [vmem:[%s207_s0 + $0xe] sm:$0x1]  }
   0x2   :  { %7 = vrot.lane.b32.xlu0 %v101_v0, %s131_s10  ;;  %19 = vrot.lane.b32.xlu1 %v103_v1, %s132_s11  ;;  %v104_v3 = vld [vmem:[%s207_s0 + $0xc] sm:$0x1]   ;;  %s133_s16 = smov 112   ;;  %s134_s17 = smov 96   ;;  %v105_v4 = vld [vmem:[%s207_s0 + $0xb] sm:$0x1]  }
   0x3   :  { %v106_v5 = vld [vmem:[%s207_s0 + $0xa] sm:$0x1]   ;;  %v2_v6 = vld [vmem:[%s207_s0] sm:$0x1]   ;;  %s135_s24 = smov 88   ;;  %s136_s25 = smov 80  }
   0x4   :  { %4 = vst.msk [vmem:[#allocation0] sm:$0x1] %vm3_vm0, %v2_v6   ;;  %v107_v7 = vld [vmem:[%s207_s0 + $0x9] sm:$0x1]   ;;  %v108_v8 = vld [vmem:[%s207_s0 + $0x8] sm:$0x1]  }
   0x5   :  { %s137_s30 = smov 72   ;;  %s138_s2 = smov 64   ;;  %v109_v9 = vld [vmem:[%s207_s0 + $0x7] sm:$0x1]   ;;  %v110_v10 = vld [vmem:[%s207_s0 + $0x6] sm:$0x1]  }
   0x6   :  { %13 = vrot.lane.b32.xlu0 %v102_v2, %s133_s16  ;;  %25 = vrot.lane.b32.xlu1 %v104_v3, %s134_s17  ;;  %s139_s7 = smov 56   ;;  %s140_s8 = smov 48   ;;  %v111_v11 = vld [vmem:[%s207_s0 + $0x5] sm:$0x1]   ;;  %v112_v12 = vld [vmem:[%s207_s0 + $0x4] sm:$0x1]  }
   0x7   :  { %s141_s13 = smov 40   ;;  %s142_s14 = smov 32   ;;  %v113_v13 = vld [vmem:[%s207_s0 + $0x3] sm:$0x1]   ;;  %v114_v14 = vld [vmem:[%s207_s0 + $0x2] sm:$0x1]  }
   0x8   :  { %s143_s19 = smov 24   ;;  %s144_s20 = smov 16   ;;  %v115_v15 = vld [vmem:[%s207_s0 + $0x1] sm:$0x1]   ;;  %vm27_vm4 = vcmask 851712   ;;  %vm33_vm5 = vcmask 786112  }
   0x9   :  { %s145_s0 = smov 8   ;;  %vm39_vm6 = vcmask 720512   ;;  %vm45_vm7 = vcmask 654912   ;;  %vm51_vm8 = vcmask 589312   ;;  %vm57_vm9 = vcmask 523712  }
   0xa   :  { %31 = vrot.lane.b32.xlu0 %v105_v4, %s135_s24  ;;  %37 = vrot.lane.b32.xlu1 %v106_v5, %s136_s25  ;;  %vm63_vm10 = vcmask 458112   ;;  %vm69_vm11 = vcmask 392512   ;;  %vm75_vm12 = vcmask 326912   ;;  %vm81_vm13 = vcmask 261312  }
   0xb   :  { %vm87_vm14 = vcmask 195712   ;;  %vm93_vm15 = vcmask 130112  }
   0xe   :  { %43 = vrot.lane.b32.xlu0 %v107_v7, %s137_s30  ;;  %49 = vrot.lane.b32.xlu1 %v108_v8, %s138_s2 }
  0x12   :  { %55 = vrot.lane.b32.xlu0 %v109_v9, %s139_s7  ;;  %61 = vrot.lane.b32.xlu1 %v110_v10, %s140_s8 }
  0x16   :  { %67 = vrot.lane.b32.xlu0 %v111_v11, %s141_s13  ;;  %73 = vrot.lane.b32.xlu1 %v112_v12, %s142_s14 }
  0x1a   :  { %79 = vrot.lane.b32.xlu0 %v113_v13, %s143_s19  ;;  %85 = vrot.lane.b32.xlu1 %v114_v14, %s144_s20 }
  0x1e   :  { %91 = vrot.lane.b32.xlu0 %v115_v15, %s145_s0 }
  0x74   :  { %v8_v16 = vpop.permute.xlu0 %7   ;;  %v20_v17 = vpop.permute.xlu1 %19  }
  0x75   :  { %10 = vst.msk [vmem:[#allocation0] sm:$0x1] %vm9_vm1, %v8_v16  }
  0x78   :  { %v14_v18 = vpop.permute.xlu0 %13   ;;  %v26_v19 = vpop.permute.xlu1 %25  }
  0x79   :  { %16 = vst.msk [vmem:[#allocation0] sm:$0x1] %vm15_vm2, %v14_v18  }
  0x7a   :  { %22 = vst.msk [vmem:[#allocation0] sm:$0x1] %vm21_vm3, %v20_v17  }
  0x7b   :  { %28 = vst.msk [vmem:[#allocation0] sm:$0x1] %vm27_vm4, %v26_v19  }
  0x7c   :  { %v32_v20 = vpop.permute.xlu0 %31   ;;  %v38_v21 = vpop.permute.xlu1 %37  }
  0x7d   :  { %34 = vst.msk [vmem:[#allocation0] sm:$0x1] %vm33_vm5, %v32_v20  }
  0x7e   :  { %40 = vst.msk [vmem:[#allocation0] sm:$0x1] %vm39_vm6, %v38_v21  }
  0x80   :  { %v44_v22 = vpop.permute.xlu0 %43   ;;  %v50_v23 = vpop.permute.xlu1 %49  }
  0x81   :  { %46 = vst.msk [vmem:[#allocation0] sm:$0x1] %vm45_vm7, %v44_v22  }
  0x82   :  { %52 = vst.msk [vmem:[#allocation0] sm:$0x1] %vm51_vm8, %v50_v23  }
  0x84   :  { %v56_v24 = vpop.permute.xlu0 %55   ;;  %v62_v25 = vpop.permute.xlu1 %61  }
  0x85   :  { %58 = vst.msk [vmem:[#allocation0] sm:$0x1] %vm57_vm9, %v56_v24  }
  0x86   :  { %64 = vst.msk [vmem:[#allocation0] sm:$0x1] %vm63_vm10, %v62_v25  }
  0x88   :  { %v68_v26 = vpop.permute.xlu0 %67   ;;  %v74_v27 = vpop.permute.xlu1 %73  }
  0x89   :  { %70 = vst.msk [vmem:[#allocation0] sm:$0x1] %vm69_vm11, %v68_v26  }
  0x8a   :  { %76 = vst.msk [vmem:[#allocation0] sm:$0x1] %vm75_vm12, %v74_v27  }
  0x8c   :  { %v80_v28 = vpop.permute.xlu0 %79   ;;  %v86_v29 = vpop.permute.xlu1 %85  }
  0x8d   :  { %82 = vst.msk [vmem:[#allocation0] sm:$0x1] %vm81_vm13, %v80_v28  }
  0x8e   :  { %88 = vst.msk [vmem:[#allocation0] sm:$0x1] %vm87_vm14, %v86_v29  }
  0x90   :  { %v92_v30 = vpop.permute.xlu0 %91  }
  0x91   :  { %94 = vst.msk [vmem:[#allocation0] sm:$0x1] %vm93_vm15, %v92_v30  }
  0x98   :  { %v98_v31 = vld [vmem:[#allocation0] sm:$0x1] }
  0x99   :  { %100 = vst [vmem:[%s208_s1] sm:$0x1] %v98_v31 }

// kernel: encoder_forward.1
= control target key start
LH: loop header
LB: loop body
LE: loop exit
PB: predicated region body
PF: predicated region fallthrough
CT: control target
= control target key end

     0   :  { %s5804_s24 = smov 0   ;;  %s7710_s0 = inlined_call_operand.vmem [shape: f32[256,128], index: 0, kind: input, shape index: {}]   ;;  %s7711_s1 = inlined_call_operand.vmem [shape: bf16[3,128,128], index: 1, kind: input, shape index: {}]   ;;  %s7712_s2 = inlined_call_operand.vmem [shape: f32[1,128], index: 2, kind: input, shape index: {}]   ;;  %s7713_s3 = inlined_call_operand.vmem [shape: f32[1,128], index: 3, kind: input, shape index: {}]   ;;  %s7714_s4 = inlined_call_operand.vmem [shape: bf16[2,3,128,128], index: 4, kind: input, shape index: {}]   ;;  %s7715_s5 = inlined_call_operand.vmem [shape: f32[2,1,128], index: 5, kind: input, shape index: {}]   ;;  %s7716_s6 = inlined_call_operand.vmem [shape: f32[2,1,128], index: 6, kind: input, shape index: {}]   ;;  %s7717_s7 = inlined_call_operand.vmem [shape: bf16[128,256], index: 7, kind: input, shape index: {}]   ;;  %s7718_s8 = inlined_call_operand.vmem [shape: f32[1,256], index: 8, kind: input, shape index: {}]   ;;  %s7719_s9 = inlined_call_operand.vmem [shape: f32[1,256], index: 9, kind: input, shape index: {}]   ;;  %s7720_s10 = inlined_call_operand.vmem [shape: f32[256,128], index: 10, kind: output, shape index: {0}]   ;;  %s7721_s11 = inlined_call_operand.vmem [shape: f32[256,128], index: 11, kind: output, shape index: {1}]   ;;  %s7722_s12 = inlined_call_operand.vmem [shape: f32[256,128], index: 12, kind: output, shape index: {2}]   ;;  %s7723_s13 = inlined_call_operand.vmem [shape: f32[256,128], index: 13, kind: output, shape index: {3}]   ;;  %s7724_s14 = inlined_call_operand.vmem [shape: f32[256,128], index: 14, kind: output, shape index: {4}]   ;;  %s7725_s15 = inlined_call_operand.vmem [shape: f32[256,256], index: 15, kind: output, shape index: {5}]   ;;  %s7726_s16 = inlined_call_operand.vmem [shape: f32[256,256], index: 16, kind: output, shape index: {6}]   ;;  %s7727_s17 = inlined_call_operand.vmem [shape: f32[256,256], index: 17, kind: output, shape index: {7}]  }
   0x1   :  { %7731 = sst [smem:[#allocation3_spill]] %s7710_s0 }
   0x2   :  { %7732 = sst [smem:[#allocation4_spill]] %s7711_s1 }
   0x3 LB: > { %s4415_s25 = sadd.s32 4294967295, %s5710_s24   ;;  %p4419_p0 = scmp.ge.s32.totalorder %s5710_s24, 1  ;;  %s5710_s24 = sphi %s5804_s24, %s28_s24  }
   0x4   : > { %p503_p1 = scmp.lt.s32.totalorder %s5710_s24, 3 }
   0x6   : > { %p504_p2 = pnand %p4419_p0, %p503_p1 }
   0x8   : > { %507 = sbr.rel (%p504_p2) target bundleno = 1304 (0x518), region = 60 }
   0xf   : > { %s7733_s28 = sld [smem:[#allocation4_spill]]  ;;  %s4420_s29 = sshll.u32 %s4415_s25, 4  ;;  %v733_v9 = vlaneseq  ;;  %v5712_v62 = vmov 0.0  }
  0x10   : > { %p594_p3 = scmp.lt.s32.totalorder %s4420_s29, 31  ;;  %s7734_s22 = sld [smem:[#allocation3_spill]] }
  0x11   : > { %v5852_v11 = vshrl.u32 %v733_v9, 7 }
  0x12   : > { %s7750_s29 = smov (!%p594_p3, %s4420_s29), 31 }
  0x13   : > { %s5824_s1 = sshll.u32 %s7750_s29, 3  ;;  %vm1393_vm0 = vcmp.lt.s32.totalorder %v5852_v11, 7  ;;  %v771_v15 = vand.u32 15, %v5852_v11  ;;  %v753_v18 = vadd.s32 16, %v5852_v11  ;;  %v755_v27 = vadd.s32 32, %v5852_v11  ;;  %s7356_s26 = sshll.u32 %s7750_s29, 4 }
  0x14   : > { %v757_v44 = vadd.s32 48, %v5852_v11  ;;  %v759_v47 = vadd.s32 64, %v5852_v11  ;;  %v761_v48 = vadd.s32 80, %v5852_v11  ;;  %v752_v49 = vadd.s32 8, %v5852_v11  ;;  %s6260_s21 = scalar_lea.vmem %s7720_s10, %s5824_s1  ;;  %s6278_s30 = scalar_lea.vmem %s7721_s11, %s5824_s1 }
  0x15   : > { %v5288_v0 = vld [vmem:[%s7733_s28 + $0x40] sm:$0xff]   ;;  %v5289_v1 = vld [vmem:[%s7733_s28 + $0x48] sm:$0xff]   ;;  %v5290_v2 = vld [vmem:[%s7733_s28 + $0x50] sm:$0xff]   ;;  %v959_v23 = vadd.s32 4294967295, %v771_v15  ;;  %v785_v26 = vand.u32 15, %v753_v18  ;;  %vm735_vm2 = vcmp.lt.s32.totalorder %v5852_v11, 1  ;;  %s6398_s20 = scalar_lea.vmem %s7722_s12, %s5824_s1  ;;  %s7367_s19 = scalar_lea.vmem %s7725_s15, %s7356_s26 }
  0x16   : > { %4894 = vmatprep.subr.bf16.mxu0 %v5288_v0  ;;  %s5830_s23 = scalar_lea.vmem %s7734_s22, %s5824_s1  ;;  %v5291_v3 = vld [vmem:[%s7733_s28 + $0x58] sm:$0xff]   ;;  %v5292_v7 = vld [vmem:[%s7733_s28 + $0x60] sm:$0xff]   ;;  %v5293_v8 = vld [vmem:[%s7733_s28 + $0x68] sm:$0xff]   ;;  %v799_v57 = vand.u32 15, %v755_v27  ;;  %v813_v58 = vand.u32 15, %v757_v44  ;;  %v827_v60 = vand.u32 15, %v759_v47 }
  0x17   : > { %4895 = vmatpush3.bf16.msra.mxu0 %v5288_v0  ;;  %v5836_v4 = vld [vmem:[%s5830_s23] sm:$0xff]  ;;  %v5839_v5 = vld [vmem:[%s5830_s23 + $0x8] sm:$0xff]  ;;  %v5294_v10 = vld [vmem:[%s7733_s28 + $0x70] sm:$0xff]   ;;  %vm975_vm1 = vcmp.ge.s32.totalorder %v959_v23, 0  ;;  %v961_v43 = vadd.s32 4294967295, %v785_v26  ;;  %v778_v61 = vand.u32 15, %v752_v49 }
  0x18   : > { %4896 = vmatprep.subr.bf16.mxu0 %v5289_v1  ;;  %v1079_v6 = vpack.c.bf16 %v5839_v5, %v5836_v4  ;;  %v1377_v12 = vrot.slane %v5836_v4, 1  ;;  %v5295_v13 = vld [vmem:[%s7733_s28 + $0x78] sm:$0xff]   ;;  %v1378_v14 = vrot.slane %v5839_v5, 1  ;;  %v5862_v16 = vld [vmem:[%s5830_s23 + $0x10] sm:$0xff]  ;;  %v5296_v20 = vld [vmem:[%s7733_s28] sm:$0xff]   ;;  %v717_v24 = vrot.slane %v5836_v4, 7 }
  0x19   : > { %v5865_v17 = vld [vmem:[%s5830_s23 + $0x18] sm:$0xff]  ;;  %v5880_v21 = vld [vmem:[%s5830_s23 + $0x20] sm:$0xff]  ;;  %v5883_v22 = vld [vmem:[%s5830_s23 + $0x28] sm:$0xff]  ;;  %v718_v28 = vrot.slane %v5839_v5, 7  ;;  %v719_v29 = vrot.slane %v5862_v16, 7  ;;  %v1379_v33 = vrot.slane %v5862_v16, 1 }
  0x1a   : > { %4910 = vmatprep.mubr.bf16.mxu0 %v1079_v6  ;;  %v5874_v19 = vsel %vm1393_vm0, %v1377_v12, %v1378_v14  ;;  %v1080_v25 = vpack.c.bf16 %v5865_v17, %v5862_v16  ;;  %v720_v30 = vrot.slane %v5865_v17, 7  ;;  %v5297_v31 = vld [vmem:[%s7733_s28 + $0x8] sm:$0xff]   ;;  %v1081_v32 = vpack.c.bf16 %v5883_v22, %v5880_v21  ;;  %v5900_v35 = vld [vmem:[%s5830_s23 + $0x30] sm:$0xff]  ;;  %v5903_v36 = vld [vmem:[%s5830_s23 + $0x38] sm:$0xff] }
  0x1b   : > { %4897 = vmatpush3.bf16.msra.mxu0 %v5289_v1  ;;  %v721_v34 = vrot.slane %v5880_v21, 7  ;;  %v722_v37 = vrot.slane %v5883_v22, 7  ;;  %v723_v38 = vrot.slane %v5900_v35, 7  ;;  %v724_v39 = vrot.slane %v5903_v36, 7  ;;  %v5298_v40 = vld [vmem:[%s7733_s28 + $0x10] sm:$0xff]   ;;  %v5912_v41 = vld [vmem:[%s5830_s23 + $0x40] sm:$0xff] }
  0x1c   : > { %4898 = vmatprep.subr.bf16.mxu0 %v5290_v2  ;;  %v5915_v42 = vld [vmem:[%s5830_s23 + $0x48] sm:$0xff]  ;;  %v5919_v45 = vld [vmem:[%s5830_s23 + $0x50] sm:$0xff]  ;;  %v5922_v46 = vld [vmem:[%s5830_s23 + $0x58] sm:$0xff]  ;;  %v725_v50 = vrot.slane %v5912_v41, 7  ;;  %v1082_v54 = vpack.c.bf16 %v5903_v36, %v5900_v35  ;;  %v5944_v63 = vsel %vm975_vm1, 1.0, %v5712_v62  ;;  %vm977_vm3 = vcmp.ge.s32.totalorder %v961_v43, 0 }
  0x1d   : > { %v726_v51 = vrot.slane %v5915_v42, 7  ;;  %v727_v52 = vrot.slane %v5919_v45, 7  ;;  %v728_v53 = vrot.slane %v5922_v46, 7  ;;  %v5299_v55 = vld [vmem:[%s7733_s28 + $0x18] sm:$0xff]   ;;  %v5938_v56 = vld [vmem:[%s5830_s23 + $0x60] sm:$0xff]  ;;  %v1083_v59 = vpack.c.bf16 %v5915_v42, %v5912_v41  ;;  %v5301_v44 = vld [vmem:[%s7733_s28 + $0x28] sm:$0xff]  }
  0x1e   : > { %v841_v0 = vand.u32 15, %v761_v48  ;;  %v763_v1 = vadd.s32 96, %v5852_v11  ;;  %v5300_v6 = vld [vmem:[%s7733_s28 + $0x20] sm:$0xff]   ;;  %v5958_v9 = vld [vmem:[%s5830_s23 + $0x78] sm:$0xff]  ;;  %v1407_v15 = vsel %vm1393_vm0, %v1378_v14, %v1379_v33  ;;  %v967_v18 = vadd.s32 4294967295, %v827_v60  ;;  %v5313_v4 = vld [vmem:[%s7714_s4 + $0x48] sm:$0xff]  }
  0x1f   : > { %4899 = vmatpush3.bf16.msra.mxu0 %v5290_v2  ;;  %v729_v2 = vrot.slane %v5938_v56, 7  ;;  %v732_v23 = vrot.slane %v5958_v9, 7  ;;  %v5983_v47 = vsel %vm977_vm3, 1.0, %v5712_v62 }
  0x20   : > { %4900 = vmatprep.subr.bf16.mxu0 %v5291_v3  ;;  %v855_v26 = vand.u32 15, %v763_v1  ;;  %vm983_vm7 = vcmp.ge.s32.totalorder %v967_v18, 0  ;;  %v750_v1 = vsel %vm735_vm2, %v717_v24, %v718_v28  ;;  %v747_v18 = vsel %vm735_vm2, %v720_v30, %v721_v34 }
  0x21   : > { %v751_v43 = vsel %vm735_vm2, %v732_v23, %v717_v24  ;;  %v6005_v60 = vsel %vm983_vm7, 1.0, %v5712_v62 }
  0x23   : > { %4901 = vmatpush3.bf16.msra.mxu0 %v5291_v3  ;;  %v1411_v3 = vadd.s32 1, %v778_v61  ;;  %v1055_v61 = vmul.f32 %v5944_v63, %v751_v43 }
  0x24   : > { %4902 = vmatprep.subr.bf16.mxu0 %v5292_v7 }
  0x25   : > { %vm1443_vm4 = vcmp.lt.s32.totalorder %v1411_v3, 16  ;;  %v1071_v24 = vpack.c.bf16 %v750_v1, %v1055_v61  ;;  %v742_v61 = vsel %vm735_vm2, %v725_v50, %v726_v51 }
  0x26   : > { %v5969_v27 = vsel %vm1443_vm4, 1.0, %v5712_v62 }
  0x27   : > { %4903 = vmatpush3.bf16.msra.mxu0 %v5292_v7  ;;  %v5952_v7 = vld [vmem:[%s5830_s23 + $0x68] sm:$0xff]  ;;  %v5974_v14 = vmul.f32 %v5969_v27, %v1407_v15  ;;  %v749_v15 = vsel %vm735_vm2, %v718_v28, %v719_v29  ;;  %v5304_v28 = vld [vmem:[%s7733_s28 + $0x80] sm:$0xff]  }
  0x28   : > { %4904 = vmatprep.subr.bf16.mxu0 %v5293_v8  ;;  %v1085_v48 = vpack.c.bf16 %v5952_v7, %v5938_v56  ;;  %v1057_v5 = vmul.f32 %v5983_v47, %v749_v15  ;;  %v5308_v15 = vld [vmem:[%s7733_s28 + $0xa0] sm:$0xff]  }
  0x2b   : > { %4905 = vmatpush3.bf16.msra.mxu0 %v5293_v8  ;;  %v5955_v8 = vld [vmem:[%s5830_s23 + $0x70] sm:$0xff]  ;;  %s7381_s23 = scalar_lea.vmem %s7726_s16, %s7356_s26 }
  0x2c   : > { %4906 = vmatprep.subr.bf16.mxu0 %v5294_v10 }
  0x2f   : > { %4907 = vmatpush3.bf16.msra.mxu0 %v5294_v10  ;;  %v963_v10 = vadd.s32 4294967295, %v799_v57  ;;  %v971_v57 = vadd.s32 4294967295, %v855_v26  ;;  %v748_v26 = vsel %vm735_vm2, %v719_v29, %v720_v30  ;;  %v745_v29 = vsel %vm735_vm2, %v722_v37, %v723_v38 }
  0x30   : > { %4908 = vmatprep.subr.bf16.mxu0 %v5295_v13  ;;  %v743_v30 = vsel %vm735_vm2, %v724_v39, %v725_v50 }
  0x31   : > { %vm979_vm5 = vcmp.ge.s32.totalorder %v963_v10, 0  ;;  %vm987_vm9 = vcmp.ge.s32.totalorder %v971_v57, 0  ;;  %v1086_v10 = vpack.c.bf16 %v5958_v9, %v5955_v8  ;;  %v5306_v57 = vld [vmem:[%s7733_s28 + $0x90] sm:$0xff]  }
  0x33   : > { %4909 = vmatpush3.bf16.msra.mxu0 %v5295_v13  ;;  %v965_v13 = vadd.s32 4294967295, %v813_v58 }
  0x34   : > { %4926 = vmatprep.subr.bf16.mxu0 %v5296_v20 }
  0x35   : > { %vm981_vm6 = vcmp.ge.s32.totalorder %v965_v13, 0  ;;  %v754_v13 = vadd.s32 24, %v5852_v11 }
  0x36   : > { %4911 = vmatmul.mubr.bf16.vlgmr.msra.gmra.mrb[0].mxu0 %v1080_v25  ;;  %v969_v25 = vadd.s32 4294967295, %v841_v0  ;;  %v5999_v58 = vsel %vm981_vm6, 1.0, %v5712_v62 }
  0x37   : > { %4927 = vmatpush3.bf16.msra.mxu0 %v5296_v20  ;;  %4914 = vmatprep.mubr.bf16.mxu0 %v1081_v32  ;;  %v765_v20 = vadd.s32 112, %v5852_v11  ;;  %v731_v32 = vrot.slane %v5955_v8, 7 }
  0x38   : > { %4928 = vmatprep.subr.bf16.mxu0 %v5297_v31  ;;  %vm985_vm8 = vcmp.ge.s32.totalorder %v969_v25, 0  ;;  %v6037_v25 = vsel %vm987_vm9, 1.0, %v5712_v62 }
  0x39   : > { %v869_v49 = vand.u32 15, %v765_v20  ;;  %v6009_v0 = vsel %vm985_vm8, 1.0, %v5712_v62  ;;  %v756_v20 = vadd.s32 40, %v5852_v11  ;;  %7735 = vst [vmem:[#allocation2_spill] sm:$0xff] %v6037_v25 }
  0x3b   : > { %4929 = vmatpush3.bf16.msra.mxu0 %v5297_v31  ;;  %v730_v31 = vrot.slane %v5952_v7, 7  ;;  %v973_v3 = vadd.s32 4294967295, %v869_v49  ;;  %v5305_v49 = vld [vmem:[%s7733_s28 + $0x88] sm:$0xff]  }
  0x3c   : > { %4930 = vmatprep.subr.bf16.mxu0 %v5298_v40 }
  0x3d   : > { %vm989_vm10 = vcmp.ge.s32.totalorder %v973_v3, 0 }
  0x3e   : > { %4915 = vmatmul.mubr.bf16.gmra.mrb[4].mxu0 %v1082_v54  ;;  %v1522_v54 = vpack.c.bf16 %v5974_v14, %v5874_v19 }
  0x3f   : > { %4931 = vmatpush3.bf16.msra.mxu0 %v5298_v40  ;;  %4918 = vmatprep.mubr.bf16.mxu0 %v1083_v59  ;;  %v1084_v40 = vpack.c.bf16 %v5922_v46, %v5919_v45  ;;  %v5302_v59 = vld [vmem:[%s7733_s28 + $0x30] sm:$0xff]  }
  0x40   : > { %4932 = vmatprep.subr.bf16.mxu0 %v5299_v55 }
  0x43   : > { %4933 = vmatpush3.bf16.msra.mxu0 %v5299_v55  ;;  %v5996_v55 = vsel %vm979_vm5, 1.0, %v5712_v62 }
  0x44   : > { %4934 = vmatprep.subr.bf16.mxu0 %v5300_v6 }
  0x46   : > { %4919 = vmatmul.mubr.bf16.gmra.mrb[8].mxu0 %v1084_v40  ;;  %v1059_v40 = vmul.f32 %v5996_v55, %v747_v18  ;;  %v738_v18 = vsel %vm735_vm2, %v729_v2, %v730_v31 }
  0x47   : > { %4935 = vmatpush3.bf16.msra.mxu0 %v5300_v6  ;;  %4922 = vmatprep.mubr.bf16.mxu0 %v1085_v48  ;;  %v5303_v6 = vld [vmem:[%s7733_s28 + $0x38] sm:$0xff]   ;;  %v1072_v48 = vpack.c.bf16 %v748_v26, %v1057_v5  ;;  %v792_v5 = vand.u32 15, %v754_v13  ;;  %v758_v13 = vadd.s32 56, %v5852_v11 }
  0x48   : > { %4936 = vmatprep.subr.bf16.mxu0 %v5301_v44 }
  0x49   : > { %v1413_v3 = vadd.s32 1, %v792_v5  ;;  %v766_v5 = vadd.s32 120, %v5852_v11 }
  0x4b   : > { %4937 = vmatpush3.bf16.msra.mxu0 %v5301_v44  ;;  %v746_v44 = vsel %vm735_vm2, %v721_v34, %v722_v37  ;;  %v1061_v34 = vmul.f32 %v5999_v58, %v745_v29  ;;  %v744_v37 = vsel %vm735_vm2, %v723_v38, %v724_v39  ;;  %v741_v38 = vsel %vm735_vm2, %v726_v51, %v727_v52 }
  0x4c   : > { %4938 = vmatprep.subr.bf16.mxu0 %v5302_v59  ;;  %v1073_v43 = vpack.c.bf16 %v746_v44, %v1059_v40  ;;  %v739_v39 = vsel %vm735_vm2, %v728_v53, %v729_v2  ;;  %v1065_v50 = vmul.f32 %v6009_v0, %v741_v38  ;;  %v740_v51 = vsel %vm735_vm2, %v727_v52, %v728_v53  ;;  %v5309_v2 = vld [vmem:[%s7733_s28 + $0xa8] sm:$0xff]  }
  0x4d   : > { %v1074_v1 = vpack.c.bf16 %v744_v37, %v1061_v34  ;;  %v737_v52 = vsel %vm735_vm2, %v730_v31, %v731_v32  ;;  %v6127_v53 = vsel %vm989_vm10, 1.0, %v5712_v62  ;;  %v760_v44 = vadd.s32 72, %v5852_v11 }
  0x4e   : > { %4923 = vmatmul.mubr.bf16.gmra.mrb[12].mxu0 %v1086_v10  ;;  %v5307_v10 = vld [vmem:[%s7733_s28 + $0x98] sm:$0xff]   ;;  %v1076_v26 = vpack.c.bf16 %v740_v51, %v1065_v50  ;;  %v1381_v31 = vrot.slane %v5880_v21, 1  ;;  %v1382_v29 = vrot.slane %v5883_v22, 1  ;;  %vm1445_vm11 = vcmp.lt.s32.totalorder %v1413_v3, 16 }
  0x4f   : > { %4939 = vmatpush3.bf16.msra.mxu0 %v5302_v59  ;;  %4942 = vmatprep.mubr.bf16.mxu0 %v1071_v24  ;;  %v1063_v59 = vmul.f32 %v6005_v60, %v743_v30  ;;  %v1067_v24 = vmul.f32 %v6037_v25, %v739_v39  ;;  %v1383_v30 = vrot.slane %v5900_v35, 1  ;;  %v820_v21 = vand.u32 15, %v758_v13  ;;  %v5311_v22 = vld [vmem:[%s7733_s28 + $0xb8] sm:$0xff]  }
  0x50   : > { %4940 = vmatprep.subr.bf16.mxu0 %v5303_v6  ;;  %v834_v34 = vand.u32 15, %v760_v44  ;;  %v1385_v39 = vrot.slane %v5912_v41, 1  ;;  %v1386_v50 = vrot.slane %v5915_v42, 1  ;;  %v1404_v41 = vsel %vm1393_vm0, %v1381_v31, %v1382_v29 }
  0x51   : > { %v1077_v40 = vpack.c.bf16 %v738_v18, %v1067_v24  ;;  %v1403_v35 = vsel %vm1393_vm0, %v1382_v29, %v1383_v30 }
  0x52   : > { %v1400_v44 = vsel %vm1393_vm0, %v1385_v39, %v1386_v50 }
  0x53   : > { %4941 = vmatpush3.bf16.msra.mxu0 %v5303_v6  ;;  %v1075_v6 = vpack.c.bf16 %v742_v61, %v1063_v59  ;;  %v1417_v59 = vadd.s32 1, %v820_v21  ;;  %v762_v61 = vadd.s32 88, %v5852_v11 }
  0x54   : > { %4958 = vmatprep.subr.bf16.mxu0 %v5304_v28 }
  0x55   : > { %vm1449_vm13 = vcmp.lt.s32.totalorder %v1417_v59, 16  ;;  %v848_v42 = vand.u32 15, %v762_v61 }
  0x56   : > { %4943 = vmatmul.mubr.bf16.vlgmr.msra.gmra.mrb[0].mxu0 %v1072_v48  ;;  %v1069_v48 = vmul.f32 %v6127_v53, %v737_v52  ;;  %v1389_v52 = vrot.slane %v5938_v56, 1 }
  0x57   : > { %4959 = vmatpush3.bf16.msra.mxu0 %v5304_v28  ;;  %4946 = vmatprep.mubr.bf16.mxu0 %v1073_v43  ;;  %v806_v28 = vand.u32 15, %v756_v20  ;;  %v736_v43 = vsel %vm735_vm2, %v731_v32, %v732_v23  ;;  %v6151_v23 = vsel %vm1445_vm11, 1.0, %v5712_v62 }
  0x58   : > { %4960 = vmatprep.subr.bf16.mxu0 %v5305_v49 }
  0x59   : > { %v1415_v20 = vadd.s32 1, %v806_v28 }
  0x5b   : > { %4961 = vmatpush3.bf16.msra.mxu0 %v5305_v49  ;;  %v1380_v49 = vrot.slane %v5865_v17, 1  ;;  %v5310_v17 = vld [vmem:[%s7733_s28 + $0xb0] sm:$0xff]   ;;  %vm1447_vm12 = vcmp.lt.s32.totalorder %v1415_v20, 16  ;;  %v1391_v20 = vrot.slane %v5955_v8, 1 }
  0x5c   : > { %4962 = vmatprep.subr.bf16.mxu0 %v5306_v57  ;;  %v6159_v32 = vsel %vm1447_vm12, 1.0, %v5712_v62 }
  0x5d   : > { %v1405_v37 = vsel %vm1393_vm0, %v1380_v49, %v1381_v31  ;;  %v1511_v51 = vmul.f32 %v6159_v32, %v1403_v35 }
  0x5e   : > { %4947 = vmatmul.mubr.bf16.gmra.mrb[4].mxu0 %v1074_v1  ;;  %v1419_v1 = vadd.s32 1, %v834_v34  ;;  %v1509_v38 = vmul.f32 %v6151_v23, %v1405_v37 }
  0x5f   : > { %4963 = vmatpush3.bf16.msra.mxu0 %v5306_v57  ;;  %4950 = vmatprep.mubr.bf16.mxu0 %v1075_v6  ;;  %v1078_v57 = vpack.c.bf16 %v736_v43, %v1069_v48  ;;  %v1384_v6 = vrot.slane %v5903_v36, 1  ;;  %v1387_v36 = vrot.slane %v5919_v45, 1  ;;  %v1524_v19 = vpack.c.bf16 %v1511_v51, %v1404_v41 }
  0x60   : > { %4964 = vmatprep.subr.bf16.mxu0 %v5307_v10  ;;  %vm1451_vm14 = vcmp.lt.s32.totalorder %v1419_v1, 16  ;;  %v5312_v1 = vld [vmem:[%s7714_s4 + $0x40] sm:$0xff]  }
  0x61   : > { %v1401_v16 = vsel %vm1393_vm0, %v1384_v6, %v1385_v39  ;;  %v1399_v45 = vsel %vm1393_vm0, %v1386_v50, %v1387_v36  ;;  %v6186_v14 = vsel %vm1451_vm14, 1.0, %v5712_v62  ;;  %v1402_v3 = vsel %vm1393_vm0, %v1383_v30, %v1384_v6  ;;  %4990 = vmatprep.subr.bf16.mxu1 %v5312_v1  ;;  %v5317_v6 = vld [vmem:[%s7714_s4 + $0x68] sm:$0xff]   ;;  %v5319_v39 = vld [vmem:[%s7714_s4 + $0x78] sm:$0xff]   ;;  %v6253_v50 = vld [vmem:[%s7714_s4] sm:$0xff]  }
  0x62   : > { %v1515_v13 = vmul.f32 %v6186_v14, %v1399_v45  ;;  %v1392_v30 = vrot.slane %v5958_v9, 1  ;;  %4991 = vmatpush3.bf16.msra.mxu1 %v5312_v1 }
  0x63   : > { %4965 = vmatpush3.bf16.msra.mxu0 %v5307_v10  ;;  %v764_v10 = vadd.s32 104, %v5852_v11  ;;  %4992 = vmatprep.subr.bf16.mxu1 %v5313_v4 }
  0x64   : > { %4966 = vmatprep.subr.bf16.mxu0 %v5308_v15  ;;  %v1394_v59 = vsel %vm1393_vm0, %v1391_v20, %v1392_v30 }
  0x65   : > { %v862_v24 = vand.u32 15, %v764_v10  ;;  %v5316_v10 = vld [vmem:[%s7714_s4 + $0x60] sm:$0xff]  }
  0x66   : > { %4951 = vmatmul.mubr.bf16.gmra.mrb[8].mxu0 %v1076_v26  ;;  %v1388_v26 = vrot.slane %v5922_v46, 1  ;;  %v876_v46 = vand.u32 15, %v766_v5  ;;  %4993 = vmatpush3.bf16.msra.mxu1 %v5313_v4 }
  0x67   : > { %4967 = vmatpush3.bf16.msra.mxu0 %v5308_v15  ;;  %4954 = vmatprep.mubr.bf16.mxu0 %v1077_v40  ;;  %v1406_v15 = vsel %vm1393_vm0, %v1379_v33, %v1380_v49  ;;  %v6181_v33 = vsel %vm1449_vm13, 1.0, %v5712_v62  ;;  %v1423_v28 = vadd.s32 1, %v862_v24  ;;  %v1526_v49 = vpack.c.bf16 %v1515_v13, %v1400_v44 }
  0x68   : > { %4968 = vmatprep.subr.bf16.mxu0 %v5309_v2  ;;  %v1523_v18 = vpack.c.bf16 %v1509_v38, %v1406_v15  ;;  %v1513_v40 = vmul.f32 %v6181_v33, %v1401_v16  ;;  %v1397_v56 = vsel %vm1393_vm0, %v1388_v26, %v1389_v52  ;;  %v1425_v8 = vadd.s32 1, %v876_v46  ;;  %v5318_v38 = vld [vmem:[%s7714_s4 + $0x70] sm:$0xff]   ;;  %v6265_v15 = vld [vmem:[%s7712_s2] ss:$0 sm:$0xff] }
  0x69   : > { %vm1455_vm1 = vcmp.lt.s32.totalorder %v1423_v28, 16 }
  0x6a   : > { %v1525_v48 = vpack.c.bf16 %v1513_v40, %v1402_v3  ;;  %v6207_v43 = vsel %vm1455_vm1, 1.0, %v5712_v62  ;;  %vm1457_vm3 = vcmp.lt.s32.totalorder %v1425_v8, 16 }
  0x6b   : > { %4969 = vmatpush3.bf16.msra.mxu0 %v5309_v2  ;;  %v1390_v2 = vrot.slane %v5952_v7, 1  ;;  %v6221_v35 = vsel %vm1457_vm3, 1.0, %v5712_v62 }
  0x6c   : > { %4970 = vmatprep.subr.bf16.mxu0 %v5310_v17 }
  0x6d   : > { %v1395_v31 = vsel %vm1393_vm0, %v1390_v2, %v1391_v20  ;;  %v1396_v34 = vsel %vm1393_vm0, %v1389_v52, %v1390_v2 }
  0x6e   : > { %4955 = vmatmul.mubr.bf16.gmra.mrb[12].mxu0 %v1078_v57  ;;  %v1519_v21 = vmul.f32 %v6207_v43, %v1395_v31 }
  0x6f   : > { %4971 = vmatpush3.bf16.msra.mxu0 %v5310_v17  ;;  %4974 = vmatprep.mubr.bf16.mxu0 %v1522_v54  ;;  %v1421_v54 = vadd.s32 1, %v848_v42  ;;  %v1398_v17 = vsel %vm1393_vm0, %v1387_v36, %v1388_v26  ;;  %v6270_v36 = vld [vmem:[%s7713_s3] ss:$0 sm:$0xff] }
  0x70   : > { %4972 = vmatprep.subr.bf16.mxu0 %v5311_v22  ;;  %v1528_v37 = vpack.c.bf16 %v1519_v21, %v1396_v34 }
  0x71   : > { %vm1453_vm15 = vcmp.lt.s32.totalorder %v1421_v54, 16 }
  0x72   : > { %v6202_v7 = vsel %vm1453_vm15, 1.0, %v5712_v62  ;;  %v5315_v62 = vld [vmem:[%s7714_s4 + $0x58] sm:$0xff]  }
  0x73   : > { %4973 = vmatpush3.bf16.msra.mxu0 %v5311_v22  ;;  %v1517_v29 = vmul.f32 %v6202_v7, %v1397_v56  ;;  %v1409_v22 = vsel %vm1393_vm0, %v1392_v30, %v1377_v12  ;;  %v5314_v12 = vld [vmem:[%s7714_s4 + $0x50] sm:$0xff]  }
  0x74   : > { %v1521_v9 = vmul.f32 %v6221_v35, %v1409_v22  ;;  %4994 = vmatprep.subr.bf16.mxu1 %v5314_v12 }
  0x75   : > { %v1527_v57 = vpack.c.bf16 %v1517_v29, %v1398_v17  ;;  %4995 = vmatpush3.bf16.msra.mxu1 %v5314_v12 }
  0x76   : > { %4975 = vmatmul.mubr.bf16.vlgmr.msra.gmra.mrb[0].mxu0 %v1523_v18  ;;  %v1529_v61 = vpack.c.bf16 %v1521_v9, %v1394_v59  ;;  %4996 = vmatprep.subr.bf16.mxu1 %v5315_v62 }
  0x77   : > { %4978 = vmatprep.mubr.bf16.mxu0 %v1524_v19 }
  0x79   : > { %4997 = vmatpush3.bf16.msra.mxu1 %v5315_v62 }
  0x7a   : > { %4998 = vmatprep.subr.bf16.mxu1 %v5316_v10 }
  0x7d   : > { %4999 = vmatpush3.bf16.msra.mxu1 %v5316_v10 }
  0x7e   : > { %4979 = vmatmul.mubr.bf16.gmra.mrb[4].mxu0 %v1525_v48  ;;  %5000 = vmatprep.subr.bf16.mxu1 %v5317_v6 }
  0x7f   : > { %4982 = vmatprep.mubr.bf16.mxu0 %v1526_v49 }
  0x81   : > { %5001 = vmatpush3.bf16.msra.mxu1 %v5317_v6 }
  0x82   : > { %5002 = vmatprep.subr.bf16.mxu1 %v5318_v38 }
  0x85   : > { %5003 = vmatpush3.bf16.msra.mxu1 %v5318_v38 }
  0x86   : > { %4983 = vmatmul.mubr.bf16.gmra.mrb[8].mxu0 %v1527_v57  ;;  %5004 = vmatprep.subr.bf16.mxu1 %v5319_v39 }
  0x87   : > { %4986 = vmatprep.mubr.bf16.mxu0 %v1528_v37 }
  0x89   : > { %5005 = vmatpush3.bf16.msra.mxu1 %v5319_v39 }
  0x8a   : > { %5022 = vmatprep.subr.bf16.mxu1 %v6253_v50 }
  0x8e   : > { %4987 = vmatmul.mubr.bf16.gmra.mrb[12].mxu0 %v1529_v61 }
 0x149   : > { %v4976_v51 = vpop.f32.mrb[0].mxu0 }
 0x14a   : > { %1693 = vst [vmem:[%s6260_s21 + $0x10] sm:$0xff] %v4976_v51  ;;  %v1716_v41 = vmul.f32 %v4976_v51, %v6265_v15  ;;  %v1612_v42 = vpop.f32.mrb[1].mxu0 }
 0x14b   : > { %1691 = vst [vmem:[%s6260_s21] sm:$0xff] %v1612_v42  ;;  %v1714_v24 = vmul.f32 %v6265_v15, %v1612_v42  ;;  %v4977_v18 = vpop.f32.mrb[2].mxu0 }
 0x14c   : > { %v6283_v19 = vadd.f32 %v6270_v36, %v1716_v41  ;;  %1694 = vst [vmem:[%s6260_s21 + $0x18] sm:$0xff] %v4977_v18  ;;  %v1717_v16 = vmul.f32 %v4977_v18, %v6265_v15  ;;  %v1615_v45 = vpop.f32.mrb[3].mxu0 }
 0x14d   : > { %v6288_v54 = vadd.f32 %v6270_v36, %v1714_v24  ;;  %1692 = vst [vmem:[%s6260_s21 + $0x8] sm:$0xff] %v1615_v45  ;;  %v1715_v5 = vmul.f32 %v6265_v15, %v1615_v45 }
 0x14e   : > { %1755 = vst [vmem:[%s6278_s30 + $0x10] sm:$0xff] %v6283_v19  ;;  %v4517_v28 = vmul.f32 -1.442695, %v6283_v19  ;;  %v6296_v26 = vadd.f32 %v6270_v36, %v1717_v16 }
 0x14f   : > { %1753 = vst [vmem:[%s6278_s30] sm:$0xff] %v6288_v54  ;;  %v4515_v40 = vmul.f32 -1.442695, %v6288_v54  ;;  %v6302_v52 = vadd.f32 %v6270_v36, %v1715_v5 }
 0x150   : > { %5384 = vpow2.f32 %v4517_v28  ;;  %1756 = vst [vmem:[%s6278_s30 + $0x18] sm:$0xff] %v6296_v26  ;;  %v4518_v2 = vmul.f32 -1.442695, %v6296_v26 }
 0x151   : > { %5386 = vpow2.f32 %v4515_v40  ;;  %1754 = vst [vmem:[%s6278_s30 + $0x8] sm:$0xff] %v6302_v52  ;;  %v4516_v3 = vmul.f32 -1.442695, %v6302_v52  ;;  %v4980_v13 = vpop.f32.mrb[4].mxu0 }
 0x152   : > { %5388 = vpow2.f32 %v4518_v2  ;;  %1697 = vst [vmem:[%s6260_s21 + $0x30] sm:$0xff] %v4980_v13  ;;  %v1720_v20 = vmul.f32 %v4980_v13, %v6265_v15  ;;  %v1628_v44 = vpop.f32.mrb[5].mxu0 }
 0x153   : > { %5390 = vpow2.f32 %v4516_v3  ;;  %1695 = vst [vmem:[%s6260_s21 + $0x20] sm:$0xff] %v1628_v44  ;;  %v1718_v46 = vmul.f32 %v6265_v15, %v1628_v44  ;;  %v4981_v48 = vpop.f32.mrb[6].mxu0 }
 0x154   : > { %v6315_v49 = vadd.f32 %v6270_v36, %v1720_v20  ;;  %1698 = vst [vmem:[%s6260_s21 + $0x38] sm:$0xff] %v4981_v48  ;;  %v1721_v56 = vmul.f32 %v4981_v48, %v6265_v15  ;;  %v1631_v31 = vpop.f32.mrb[7].mxu0 }
 0x155   : > { %v6320_v8 = vadd.f32 %v6270_v36, %v1718_v46  ;;  %1696 = vst [vmem:[%s6260_s21 + $0x28] sm:$0xff] %v1631_v31  ;;  %v1719_v29 = vmul.f32 %v6265_v15, %v1631_v31 }
 0x156   : > { %1759 = vst [vmem:[%s6278_s30 + $0x30] sm:$0xff] %v6315_v49  ;;  %v4521_v30 = vmul.f32 -1.442695, %v6315_v49  ;;  %v6328_v17 = vadd.f32 %v6270_v36, %v1721_v56 }
 0x157   : > { %1757 = vst [vmem:[%s6278_s30 + $0x20] sm:$0xff] %v6320_v8  ;;  %v4519_v21 = vmul.f32 -1.442695, %v6320_v8  ;;  %v6334_v34 = vadd.f32 %v6270_v36, %v1719_v29 }
 0x158   : > { %5392 = vpow2.f32 %v4521_v30  ;;  %1760 = vst [vmem:[%s6278_s30 + $0x38] sm:$0xff] %v6328_v17  ;;  %v4522_v57 = vmul.f32 -1.442695, %v6328_v17 }
 0x159   : > { %5394 = vpow2.f32 %v4519_v21  ;;  %1758 = vst [vmem:[%s6278_s30 + $0x28] sm:$0xff] %v6334_v34  ;;  %v4520_v37 = vmul.f32 -1.442695, %v6334_v34  ;;  %v4984_v22 = vpop.f32.mrb[8].mxu0 }
 0x15a   : > { %v5385_v9 = vpop.eup %5384  ;;  %5396 = vpow2.f32 %v4522_v57  ;;  %1701 = vst [vmem:[%s6260_s21 + $0x50] sm:$0xff] %v4984_v22  ;;  %v1724_v59 = vmul.f32 %v4984_v22, %v6265_v15  ;;  %v1644_v61 = vpop.f32.mrb[9].mxu0 }
 0x15b   : > { %v5387_v1 = vpop.eup %5386  ;;  %v1819_v4 = vadd.f32 1.0, %v5385_v9  ;;  %5398 = vpow2.f32 %v4520_v37  ;;  %1699 = vst [vmem:[%s6260_s21 + $0x40] sm:$0xff] %v1644_v61  ;;  %v1722_v12 = vmul.f32 %v6265_v15, %v1644_v61  ;;  %v4985_v62 = vpop.f32.mrb[10].mxu0 }
 0x15c   : > { %v5389_v10 = vpop.eup %5388  ;;  %v1817_v6 = vadd.f32 1.0, %v5387_v1  ;;  %v6347_v38 = vadd.f32 %v6270_v36, %v1724_v59  ;;  %1702 = vst [vmem:[%s6260_s21 + $0x58] sm:$0xff] %v4985_v62  ;;  %v1725_v39 = vmul.f32 %v4985_v62, %v6265_v15  ;;  %v1647_v51 = vpop.f32.mrb[11].mxu0 }
 0x15d   : > { %v5391_v41 = vpop.eup %5390  ;;  %5400 = vrcp.f32 %v1819_v4  ;;  %v1820_v42 = vadd.f32 1.0, %v5389_v10  ;;  %v6352_v24 = vadd.f32 %v6270_v36, %v1722_v12  ;;  %1700 = vst [vmem:[%s6260_s21 + $0x48] sm:$0xff] %v1647_v51  ;;  %v1723_v18 = vmul.f32 %v6265_v15, %v1647_v51 }
 0x15e   : > { %5402 = vrcp.f32 %v1817_v6  ;;  %v1818_v16 = vadd.f32 1.0, %v5391_v41  ;;  %1763 = vst [vmem:[%s6278_s30 + $0x50] sm:$0xff] %v6347_v38  ;;  %v4525_v45 = vmul.f32 -1.442695, %v6347_v38  ;;  %v6360_v5 = vadd.f32 %v6270_v36, %v1725_v39 }
 0x15f   : > { %5404 = vrcp.f32 %v1820_v42  ;;  %1761 = vst [vmem:[%s6278_s30 + $0x40] sm:$0xff] %v6352_v24  ;;  %v4523_v28 = vmul.f32 -1.442695, %v6352_v24  ;;  %v6366_v40 = vadd.f32 %v6270_v36, %v1723_v18 }
 0x160   : > { %5406 = vrcp.f32 %v1818_v16  ;;  %1764 = vst [vmem:[%s6278_s30 + $0x58] sm:$0xff] %v6360_v5  ;;  %v4526_v2 = vmul.f32 -1.442695, %v6360_v5 }
 0x161   : > { %5408 = vpow2.f32 %v4525_v45  ;;  %1762 = vst [vmem:[%s6278_s30 + $0x48] sm:$0xff] %v6366_v40  ;;  %v4524_v3 = vmul.f32 -1.442695, %v6366_v40  ;;  %v4988_v13 = vpop.f32.mrb[12].mxu0 }
 0x162   : > { %v5393_v20 = vpop.eup %5392  ;;  %5410 = vpow2.f32 %v4523_v28  ;;  %1705 = vst [vmem:[%s6260_s21 + $0x70] sm:$0xff] %v4988_v13  ;;  %v1728_v44 = vmul.f32 %v4988_v13, %v6265_v15  ;;  %v1660_v46 = vpop.f32.mrb[13].mxu0 }
 0x163   : > { %v5395_v48 = vpop.eup %5394  ;;  %v1823_v56 = vadd.f32 1.0, %v5393_v20  ;;  %5412 = vpow2.f32 %v4526_v2  ;;  %1703 = vst [vmem:[%s6260_s21 + $0x60] sm:$0xff] %v1660_v46  ;;  %v1726_v31 = vmul.f32 %v6265_v15, %v1660_v46  ;;  %v4989_v29 = vpop.f32.mrb[14].mxu0 }
 0x164   : > { %v5397_v30 = vpop.eup %5396  ;;  %v1821_v21 = vadd.f32 1.0, %v5395_v48  ;;  %5414 = vpow2.f32 %v4524_v3  ;;  %v6379_v57 = vadd.f32 %v6270_v36, %v1728_v44  ;;  %1706 = vst [vmem:[%s6260_s21 + $0x78] sm:$0xff] %v4989_v29  ;;  %v1729_v37 = vmul.f32 %v4989_v29, %v6265_v15  ;;  %v1663_v22 = vpop.f32.mrb[15].mxu0 }
 0x165   : > { %v5399_v9 = vpop.eup %5398  ;;  %5416 = vrcp.f32 %v1823_v56  ;;  %v1824_v59 = vadd.f32 1.0, %v5397_v30  ;;  %v6384_v61 = vadd.f32 %v6270_v36, %v1726_v31  ;;  %1704 = vst [vmem:[%s6260_s21 + $0x68] sm:$0xff] %v1663_v22  ;;  %v1727_v1 = vmul.f32 %v6265_v15, %v1663_v22  ;;  %s6844_s21 = scalar_lea.vmem %s7723_s13, %s5824_s1 }
 0x166   : > { %5418 = vrcp.f32 %v1821_v21  ;;  %v1822_v4 = vadd.f32 1.0, %v5399_v9  ;;  %1767 = vst [vmem:[%s6278_s30 + $0x70] sm:$0xff] %v6379_v57  ;;  %v4529_v12 = vmul.f32 -1.442695, %v6379_v57  ;;  %v6392_v62 = vadd.f32 %v6270_v36, %v1729_v37  ;;  %v5321_v37 = vld [vmem:[%s7714_s4 + $0x8] sm:$0xff]  }
 0x167   : > { %v5401_v10 = vpop.eup %5400  ;;  %5420 = vrcp.f32 %v1824_v59  ;;  %1765 = vst [vmem:[%s6278_s30 + $0x60] sm:$0xff] %v6384_v61  ;;  %v4527_v15 = vmul.f32 -1.442695, %v6384_v61  ;;  %v6404_v6 = vadd.f32 %v6270_v36, %v1727_v1 }
 0x168   : > { %v5403_v39 = vpop.eup %5402  ;;  %v6407_v51 = vmul.f32 %v5401_v10, %v6283_v19  ;;  %5422 = vrcp.f32 %v1822_v4  ;;  %1768 = vst [vmem:[%s6278_s30 + $0x78] sm:$0xff] %v6392_v62  ;;  %v4530_v41 = vmul.f32 -1.442695, %v6392_v62 }
 0x169   : > { %v5405_v42 = vpop.eup %5404  ;;  %5424 = vpow2.f32 %v4529_v12  ;;  %1766 = vst [vmem:[%s6278_s30 + $0x68] sm:$0xff] %v6404_v6  ;;  %v4528_v18 = vmul.f32 -1.442695, %v6404_v6  ;;  %v6416_v36 = vmul.f32 %v5403_v39, %v6288_v54 }
 0x16a   : > { %v5407_v16 = vpop.eup %5406  ;;  %1883 = vst [vmem:[%s6398_s20 + $0x10] sm:$0xff] %v6407_v51  ;;  %v1949_v19 = vrot.slane %v6407_v51, 7  ;;  %v6422_v45 = vmul.f32 %v5405_v42, %v6296_v26  ;;  %5426 = vpow2.f32 %v4527_v15  ;;  %v2303_v28 = vrot.slane %v6407_v51, 1 }
 0x16b   : > { %v5409_v2 = vpop.eup %5408  ;;  %5428 = vpow2.f32 %v4530_v41  ;;  %v1866_v3 = vmul.f32 %v5407_v16, %v6302_v52  ;;  %1881 = vst [vmem:[%s6398_s20] sm:$0xff] %v6416_v36  ;;  %v1947_v54 = vrot.slane %v6416_v36, 7  ;;  %v7729_v13 = vrot.slane %v6416_v36, 1 }
 0x16c   : > { %v5411_v20 = vpop.eup %5410  ;;  %1884 = vst [vmem:[%s6398_s20 + $0x18] sm:$0xff] %v6422_v45  ;;  %v1950_v26 = vrot.slane %v6422_v45, 7  ;;  %v2304_v44 = vrot.slane %v6422_v45, 1  ;;  %v1827_v46 = vadd.f32 1.0, %v5409_v2  ;;  %5430 = vpow2.f32 %v4528_v18 }
 0x16d   : > { %v5413_v48 = vpop.eup %5412  ;;  %v1825_v56 = vadd.f32 1.0, %v5411_v20  ;;  %1882 = vst [vmem:[%s6398_s20 + $0x8] sm:$0xff] %v1866_v3  ;;  %v2003_v52 = vpack.c.bf16 %v1866_v3, %v6416_v36  ;;  %v2004_v31 = vpack.c.bf16 %v6422_v45, %v6407_v51  ;;  %v1948_v29 = vrot.slane %v1866_v3, 7  ;;  %v5324_v45 = vld [vmem:[%s7714_s4 + $0x20] sm:$0xff]  }
 0x16e   : > { %v5415_v30 = vpop.eup %5414  ;;  %5432 = vrcp.f32 %v1827_v46  ;;  %v1828_v21 = vadd.f32 1.0, %v5413_v48  ;;  %v6443_v22 = vsel %vm735_vm2, %v1949_v19, %v1950_v26  ;;  %v2302_v9 = vrot.slane %v1866_v3, 1 }
 0x16f   : > { %v5417_v59 = vpop.eup %5416  ;;  %5434 = vrcp.f32 %v1825_v56  ;;  %v1826_v1 = vadd.f32 1.0, %v5415_v30  ;;  %5006 = vmatprep.mubr.bf16.mxu1 %v2003_v52  ;;  %v1976_v4 = vsel %vm735_vm2, %v1948_v29, %v1949_v19  ;;  %v6451_v12 = vsel %vm735_vm2, %v1947_v54, %v1948_v29 }
 0x170   : > { %v5419_v10 = vpop.eup %5418  ;;  %v6454_v15 = vmul.f32 %v5417_v59, %v6315_v49  ;;  %5436 = vrcp.f32 %v1828_v21  ;;  %5007 = vmatmul.mubr.bf16.vlgmr.msra.gmra.mrb[0].mxu1 %v2004_v31  ;;  %v6457_v39 = vmul.f32 %v5983_v47, %v1976_v4  ;;  %v2330_v51 = vsel %vm1393_vm0, %v2302_v9, %v2303_v28 }
 0x171   : > { %v5421_v41 = vpop.eup %5420  ;;  %v6462_v42 = vmul.f32 %v5419_v10, %v6320_v8  ;;  %5438 = vrcp.f32 %v1826_v1  ;;  %5023 = vmatpush3.bf16.msra.mxu1 %v6253_v50  ;;  %v6469_v49 = vsel %vm1393_vm0, %v7729_v13, %v2302_v9  ;;  %v6472_v18 = vmul.f32 %v5969_v27, %v2330_v51  ;;  %v5322_v50 = vld [vmem:[%s7714_s4 + $0x10] sm:$0xff]   ;;  %v5323_v51 = vld [vmem:[%s7714_s4 + $0x18] sm:$0xff]  }
 0x172   : > { %v5423_v16 = vpop.eup %5422  ;;  %1887 = vst [vmem:[%s6398_s20 + $0x30] sm:$0xff] %v6454_v15  ;;  %v6477_v19 = vmul.f32 %v5421_v41, %v6328_v17  ;;  %5024 = vmatprep.subr.bf16.mxu1 %v5321_v37  ;;  %v1953_v2 = vrot.slane %v6454_v15, 7  ;;  %v6489_v3 = vsel %vm1393_vm0, %v2303_v28, %v2304_v44  ;;  %v2307_v30 = vrot.slane %v6454_v15, 1 }
 0x173   : > { %v5425_v20 = vpop.eup %5424  ;;  %1885 = vst [vmem:[%s6398_s20 + $0x20] sm:$0xff] %v6462_v42  ;;  %v2305_v17 = vrot.slane %v6462_v42, 1  ;;  %v1870_v46 = vmul.f32 %v5423_v16, %v6334_v34  ;;  %v1951_v48 = vrot.slane %v6462_v42, 7 }
 0x174   : > { %v5427_v52 = vpop.eup %5426  ;;  %1888 = vst [vmem:[%s6398_s20 + $0x38] sm:$0xff] %v6477_v19  ;;  %v1831_v31 = vadd.f32 1.0, %v5425_v20  ;;  %v2006_v28 = vpack.c.bf16 %v6477_v19, %v6454_v15  ;;  %v1954_v29 = vrot.slane %v6477_v19, 7 }
 0x175   : > { %v5429_v21 = vpop.eup %5428  ;;  %1886 = vst [vmem:[%s6398_s20 + $0x28] sm:$0xff] %v1870_v46  ;;  %v1829_v9 = vadd.f32 1.0, %v5427_v52  ;;  %5025 = vmatpush3.bf16.msra.mxu1 %v5321_v37  ;;  %v2005_v34 = vpack.c.bf16 %v1870_v46, %v6462_v42  ;;  %v1952_v59 = vrot.slane %v1870_v46, 7  ;;  %v1974_v1 = vsel %vm735_vm2, %v1950_v26, %v1951_v48 }
 0x176   : > { %v5431_v4 = vpop.eup %5430  ;;  %5440 = vrcp.f32 %v1831_v31  ;;  %v1832_v10 = vadd.f32 1.0, %v5429_v21  ;;  %5026 = vmatprep.subr.bf16.mxu1 %v5322_v50  ;;  %v6512_v15 = vmul.f32 %v5996_v55, %v1974_v1  ;;  %v6516_v37 = vsel %vm735_vm2, %v1953_v2, %v1954_v29 }
 0x177   : > { %5442 = vrcp.f32 %v1829_v9  ;;  %v1830_v41 = vadd.f32 1.0, %v5431_v4  ;;  %5010 = vmatprep.mubr.bf16.mxu1 %v2005_v34  ;;  %v6520_v26 = vsel %vm735_vm2, %v1951_v48, %v1952_v59  ;;  %v1972_v42 = vsel %vm735_vm2, %v1952_v59, %v1953_v2 }
 0x178   : > { %v5433_v16 = vpop.eup %5432  ;;  %5444 = vrcp.f32 %v1832_v10  ;;  %5011 = vmatmul.mubr.bf16.gmra.mrb[4].mxu1 %v2006_v28  ;;  %v6527_v52 = vmul.f32 %v5999_v58, %v1972_v42  ;;  %v2328_v31 = vsel %vm1393_vm0, %v2304_v44, %v2305_v17  ;;  %v2306_v28 = vrot.slane %v1870_v46, 1 }
 0x179   : > { %v5435_v48 = vpop.eup %5434  ;;  %v6534_v21 = vmul.f32 %v5433_v16, %v6347_v38  ;;  %5446 = vrcp.f32 %v1830_v41  ;;  %5027 = vmatpush3.bf16.msra.mxu1 %v5322_v50  ;;  %v6537_v2 = vmul.f32 %v6151_v23, %v2328_v31  ;;  %v2308_v44 = vrot.slane %v6477_v19, 1 }
 0x17a   : > { %v5437_v9 = vpop.eup %5436  ;;  %v1873_v34 = vmul.f32 %v5435_v48, %v6352_v24  ;;  %5028 = vmatprep.subr.bf16.mxu1 %v5323_v51  ;;  %v2326_v1 = vsel %vm1393_vm0, %v2306_v28, %v2307_v30  ;;  %v6560_v19 = vsel %vm1393_vm0, %v2305_v17, %v2306_v28  ;;  %v5325_v28 = vld [vmem:[%s7714_s4 + $0x28] sm:$0xff]  }
 0x17b   : > { %v5439_v59 = vpop.eup %5438  ;;  %1891 = vst [vmem:[%s6398_s20 + $0x50] sm:$0xff] %v6534_v21  ;;  %v6549_v50 = vmul.f32 %v5437_v9, %v6360_v5  ;;  %v1957_v24 = vrot.slane %v6534_v21, 7  ;;  %v6563_v41 = vmul.f32 %v6159_v32, %v2326_v1  ;;  %v2311_v46 = vrot.slane %v6534_v21, 1 }
 0x17c   : > { %1889 = vst [vmem:[%s6398_s20 + $0x40] sm:$0xff] %v1873_v34  ;;  %v1874_v4 = vmul.f32 %v5439_v59, %v6366_v40  ;;  %v1955_v10 = vrot.slane %v1873_v34, 7  ;;  %v2309_v16 = vrot.slane %v1873_v34, 1  ;;  %v6572_v40 = vsel %vm1393_vm0, %v2307_v30, %v2308_v44 }
 0x17d   : > { %1892 = vst [vmem:[%s6398_s20 + $0x58] sm:$0xff] %v6549_v50  ;;  %5029 = vmatpush3.bf16.msra.mxu1 %v5323_v51  ;;  %v2008_v5 = vpack.c.bf16 %v6549_v50, %v6534_v21  ;;  %v1958_v42 = vrot.slane %v6549_v50, 7 }
 0x17e   : > { %1890 = vst [vmem:[%s6398_s20 + $0x48] sm:$0xff] %v1874_v4  ;;  %v2007_v31 = vpack.c.bf16 %v1874_v4, %v1873_v34  ;;  %5030 = vmatprep.subr.bf16.mxu1 %v5324_v45  ;;  %v1956_v17 = vrot.slane %v1874_v4, 7  ;;  %v1970_v48 = vsel %vm735_vm2, %v1954_v29, %v1955_v10  ;;  %v2324_v34 = vsel %vm1393_vm0, %v2308_v44, %v2309_v16 }
 0x17f   : > { %v6583_v9 = vmul.f32 %v6005_v60, %v1970_v48  ;;  %v6587_v30 = vsel %vm735_vm2, %v1957_v24, %v1958_v42  ;;  %v2310_v59 = vrot.slane %v1874_v4, 1  ;;  %v6598_v48 = vmul.f32 %v6181_v33, %v2324_v34 }
 0x180   : > { %v5441_v1 = vpop.eup %5440  ;;  %5014 = vmatprep.mubr.bf16.mxu1 %v2007_v31  ;;  %v6593_v29 = vsel %vm735_vm2, %v1955_v10, %v1956_v17  ;;  %v1968_v51 = vsel %vm735_vm2, %v1956_v17, %v1957_v24 }
 0x181   : > { %v5443_v56 = vpop.eup %5442  ;;  %v1879_v38 = vmul.f32 %v5441_v1, %v6379_v57  ;;  %5015 = vmatmul.mubr.bf16.gmra.mrb[8].mxu1 %v2008_v5  ;;  %v6605_v4 = vmul.f32 %v6009_v0, %v1968_v51  ;;  %v6609_v24 = vsel %vm1393_vm0, %v2309_v16, %v2310_v59  ;;  %v2322_v57 = vsel %vm1393_vm0, %v2310_v59, %v2311_v46 }
 0x182   : > { %v5445_v10 = vpop.eup %5444  ;;  %v1877_v31 = vmul.f32 %v5443_v56, %v6384_v61  ;;  %5031 = vmatpush3.bf16.msra.mxu1 %v5324_v45  ;;  %v2312_v5 = vrot.slane %v6549_v50, 1  ;;  %v5326_v61 = vld [vmem:[%s7714_s4 + $0x30] sm:$0xff]   ;;  %v6625_v16 = vmul.f32 %v6186_v14, %v2322_v57 }
 0x183   : > { %v5447_v17 = vpop.eup %5446  ;;  %1895 = vst [vmem:[%s6398_s20 + $0x70] sm:$0xff] %v1879_v38  ;;  %v1880_v51 = vmul.f32 %v5445_v10, %v6392_v62  ;;  %5032 = vmatprep.subr.bf16.mxu1 %v5325_v28  ;;  %v1961_v45 = vrot.slane %v1879_v38, 7  ;;  %v2315_v56 = vrot.slane %v1879_v38, 1 }
 0x184   : > { %1893 = vst [vmem:[%s6398_s20 + $0x60] sm:$0xff] %v1877_v31  ;;  %v1878_v50 = vmul.f32 %v5447_v17, %v6404_v6  ;;  %v1959_v34 = vrot.slane %v1877_v31, 7  ;;  %v2313_v59 = vrot.slane %v1877_v31, 1  ;;  %v6631_v62 = vsel %vm1393_vm0, %v2311_v46, %v2312_v5 }
 0x185   : > { %1896 = vst [vmem:[%s6398_s20 + $0x78] sm:$0xff] %v1880_v51  ;;  %v2010_v1 = vpack.c.bf16 %v1880_v51, %v1879_v38  ;;  %v1962_v10 = vrot.slane %v1880_v51, 7  ;;  %v5327_v38 = vld [vmem:[%s7714_s4 + $0x38] sm:$0xff]  }
 0x186   : > { %1894 = vst [vmem:[%s6398_s20 + $0x68] sm:$0xff] %v1878_v50  ;;  %5033 = vmatpush3.bf16.msra.mxu1 %v5325_v28  ;;  %v2009_v57 = vpack.c.bf16 %v1878_v50, %v1877_v31  ;;  %v1960_v44 = vrot.slane %v1878_v50, 7  ;;  %v1966_v6 = vsel %vm735_vm2, %v1958_v42, %v1959_v34  ;;  %v2320_v17 = vsel %vm1393_vm0, %v2312_v5, %v2313_v59  ;;  %s7303_s20 = scalar_lea.vmem %s7724_s14, %s5824_s1  ;;  %s7501_s1 = scalar_lea.vmem %s7727_s17, %s7356_s26 }
 0x187   : > { %5034 = vmatprep.subr.bf16.mxu1 %v5326_v61  ;;  %v1978_v46 = vsel %vm735_vm2, %v1962_v10, %v1947_v54  ;;  %v1991_v28 = vmul.f32 %v6037_v25, %v1966_v6  ;;  %v1963_v31 = vsel %vm735_vm2, %v1961_v45, %v1962_v10  ;;  %v2344_v42 = vmul.f32 %v6202_v7, %v2320_v17 }
 0x188   : > { %5018 = vmatprep.mubr.bf16.mxu1 %v2009_v57  ;;  %v1979_v5 = vmul.f32 %v5944_v63, %v1978_v46  ;;  %v1965_v21 = vsel %vm735_vm2, %v1959_v34, %v1960_v44  ;;  %v1964_v54 = vsel %vm735_vm2, %v1960_v44, %v1961_v45  ;;  %v2314_v20 = vrot.slane %v1878_v50, 1  ;;  %v5328_v44 = vld [vmem:[%s7714_s4 + $0x80] sm:$0xff]  }
 0x189   : > { %5019 = vmatmul.mubr.bf16.gmra.mrb[12].mxu1 %v2010_v1  ;;  %v2001_v8 = vpack.c.bf16 %v1965_v21, %v1991_v28  ;;  %v1993_v13 = vmul.f32 %v6127_v53, %v1964_v54  ;;  %v2354_v6 = vpack.c.bf16 %v2344_v42, %v6631_v62  ;;  %v2316_v25 = vrot.slane %v1880_v51, 1  ;;  %v6764_v46 = vld [vmem:[%s7716_s6] ss:$0 sm:$0xff] }
 0x18a   : > { %5035 = vmatpush3.bf16.msra.mxu1 %v5326_v61  ;;  %v1995_v10 = vpack.c.bf16 %v6451_v12, %v1979_v5  ;;  %v2318_v57 = vsel %vm1393_vm0, %v2314_v20, %v2315_v56  ;;  %v2319_v34 = vsel %vm1393_vm0, %v2313_v59, %v2314_v20  ;;  %v7736_v61 = vrot.slane %v6416_v36, 1 }
 0x18b   : > { %5036 = vmatprep.subr.bf16.mxu1 %v5327_v38  ;;  %v2002_v21 = vpack.c.bf16 %v1963_v31, %v1993_v13  ;;  %v2346_v45 = vmul.f32 %v6207_v43, %v2318_v57  ;;  %v2317_v51 = vsel %vm1393_vm0, %v2315_v56, %v2316_v25  ;;  %v5329_v13 = vld [vmem:[%s7714_s4 + $0x88] sm:$0xff]   ;;  %v7737_v62 = vpack.c.bf16 %v6443_v22, %v6457_v39  ;;  %v5331_v56 = vld [vmem:[%s7714_s4 + $0x98] sm:$0xff]  }
 0x18c   : > { %v2332_v12 = vsel %vm1393_vm0, %v2316_v25, %v7736_v61  ;;  %5038 = vmatprep.mubr.bf16.mxu1 %v1995_v10  ;;  %v7738_v36 = vpack.c.bf16 %v6520_v26, %v6512_v15  ;;  %v5330_v25 = vld [vmem:[%s7714_s4 + $0x90] sm:$0xff]   ;;  %v7739_v22 = vpack.c.bf16 %v6516_v37, %v6527_v52  ;;  %v7740_v39 = vpack.c.bf16 %v6593_v29, %v6583_v9  ;;  %v5332_v15 = vld [vmem:[%s7714_s4 + $0xa0] sm:$0xff]   ;;  %v5333_v26 = vld [vmem:[%s7714_s4 + $0xa8] sm:$0xff]  }
 0x18d   : > { %v2348_v50 = vmul.f32 %v6221_v35, %v2332_v12  ;;  %v2355_v20 = vpack.c.bf16 %v2346_v45, %v2319_v34  ;;  %v7741_v37 = vpack.c.bf16 %v6587_v30, %v6605_v4  ;;  %v5334_v52 = vld [vmem:[%s7714_s4 + $0xb0] sm:$0xff]   ;;  %v5335_v9 = vld [vmem:[%s7714_s4 + $0xb8] sm:$0xff]   ;;  %v7742_v29 = vpack.c.bf16 %v6472_v18, %v6469_v49  ;;  %v5336_v49 = vld [vmem:[%s7714_s4 + $0x100] sm:$0xff]  }
 0x18e   : > { %5037 = vmatpush3.bf16.msra.mxu1 %v5327_v38  ;;  %v7744_v30 = vpack.c.bf16 %v6563_v41, %v6560_v19  ;;  %v7745_v4 = vpack.c.bf16 %v6598_v48, %v6572_v40  ;;  %v7746_v1 = vpack.c.bf16 %v6625_v16, %v6609_v24  ;;  %5086 = vmatprep.subr.bf16.mxu0 %v5336_v49  ;;  %v5337_v18 = vld [vmem:[%s7714_s4 + $0x108] sm:$0xff]   ;;  %v5340_v19 = vld [vmem:[%s7714_s4 + $0x120] sm:$0xff]   ;;  %v5342_v40 = vld [vmem:[%s7714_s4 + $0x130] sm:$0xff]  }
 0x18f   : > { %v2356_v59 = vpack.c.bf16 %v2348_v50, %v2317_v51  ;;  %5054 = vmatprep.subr.bf16.mxu1 %v5328_v44  ;;  %5087 = vmatpush3.bf16.msra.mxu0 %v5336_v49  ;;  %v5341_v41 = vld [vmem:[%s7714_s4 + $0x128] sm:$0xff]   ;;  %v5343_v48 = vld [vmem:[%s7714_s4 + $0x138] sm:$0xff]   ;;  %v6753_v24 = vld [vmem:[%s7714_s4 + $0xc0] sm:$0xff]  }
 0x190   : > { %5088 = vmatprep.subr.bf16.mxu0 %v5337_v18  ;;  %v6759_v16 = vld [vmem:[%s7715_s5] ss:$0 sm:$0xff] }
 0x191   : > { %5039 = vmatmul.mubr.bf16.vlgmr.msra.gmra.mrb[0].mxu1 %v7737_v62 }
 0x192   : > { %5042 = vmatprep.mubr.bf16.mxu1 %v7738_v36  ;;  %5055 = vmatpush3.bf16.msra.mxu1 %v5328_v44 }
 0x193   : > { %5056 = vmatprep.subr.bf16.mxu1 %v5329_v13  ;;  %5089 = vmatpush3.bf16.msra.mxu0 %v5337_v18 }
 0x196   : > { %5057 = vmatpush3.bf16.msra.mxu1 %v5329_v13 }
 0x197   : > { %5058 = vmatprep.subr.bf16.mxu1 %v5330_v25 }
 0x199   : > { %5043 = vmatmul.mubr.bf16.gmra.mrb[4].mxu1 %v7739_v22 }
 0x19a   : > { %5046 = vmatprep.mubr.bf16.mxu1 %v7740_v39  ;;  %5059 = vmatpush3.bf16.msra.mxu1 %v5330_v25 }
 0x19b   : > { %5060 = vmatprep.subr.bf16.mxu1 %v5331_v56 }
 0x19e   : > { %5061 = vmatpush3.bf16.msra.mxu1 %v5331_v56 }
 0x19f   : > { %5062 = vmatprep.subr.bf16.mxu1 %v5332_v15 }
 0x1a1   : > { %5047 = vmatmul.mubr.bf16.gmra.mrb[8].mxu1 %v7741_v37 }
 0x1a2   : > { %5050 = vmatprep.mubr.bf16.mxu1 %v2001_v8  ;;  %5063 = vmatpush3.bf16.msra.mxu1 %v5332_v15  ;;  %v7743_v8 = vpack.c.bf16 %v6537_v2, %v6489_v3  ;;  %v5338_v3 = vld [vmem:[%s7714_s4 + $0x110] sm:$0xff]   ;;  %v5339_v2 = vld [vmem:[%s7714_s4 + $0x118] sm:$0xff]  }
 0x1a3   : > { %5064 = vmatprep.subr.bf16.mxu1 %v5333_v26  ;;  %5090 = vmatprep.subr.bf16.mxu0 %v5338_v3 }
 0x1a4   : > { %5091 = vmatpush3.bf16.msra.mxu0 %v5338_v3 }
 0x1a5   : > { %5092 = vmatprep.subr.bf16.mxu0 %v5339_v2 }
 0x1a6   : > { %5065 = vmatpush3.bf16.msra.mxu1 %v5333_v26 }
 0x1a7   : > { %5066 = vmatprep.subr.bf16.mxu1 %v5334_v52 }
 0x1a8   : > { %5093 = vmatpush3.bf16.msra.mxu0 %v5339_v2 }
 0x1a9   : > { %5051 = vmatmul.mubr.bf16.gmra.mrb[12].mxu1 %v2002_v21  ;;  %5094 = vmatprep.subr.bf16.mxu0 %v5340_v19 }
 0x1aa   : > { %5067 = vmatpush3.bf16.msra.mxu1 %v5334_v52  ;;  %5070 = vmatprep.mubr.bf16.mxu1 %v7742_v29 }
 0x1ab   : > { %5068 = vmatprep.subr.bf16.mxu1 %v5335_v9 }
 0x1ac   : > { %5095 = vmatpush3.bf16.msra.mxu0 %v5340_v19 }
 0x1ad   : > { %5096 = vmatprep.subr.bf16.mxu0 %v5341_v41 }
 0x1ae   : > { %5069 = vmatpush3.bf16.msra.mxu1 %v5335_v9 }
 0x1b0   : > { %5097 = vmatpush3.bf16.msra.mxu0 %v5341_v41 }
 0x1b1   : > { %5071 = vmatmul.mubr.bf16.vlgmr.msra.gmra.mrb[0].mxu1 %v7743_v8  ;;  %5098 = vmatprep.subr.bf16.mxu0 %v5342_v40 }
 0x1b2   : > { %5074 = vmatprep.mubr.bf16.mxu1 %v7744_v30 }
 0x1b4   : > { %5099 = vmatpush3.bf16.msra.mxu0 %v5342_v40 }
 0x1b5   : > { %5100 = vmatprep.subr.bf16.mxu0 %v5343_v48 }
 0x1b8   : > { %5101 = vmatpush3.bf16.msra.mxu0 %v5343_v48 }
 0x1b9   : > { %5075 = vmatmul.mubr.bf16.gmra.mrb[4].mxu1 %v7745_v4  ;;  %5118 = vmatprep.subr.bf16.mxu0 %v6753_v24 }
 0x1ba   : > { %5078 = vmatprep.mubr.bf16.mxu1 %v7746_v1 }
 0x1c1   : > { %5079 = vmatmul.mubr.bf16.gmra.mrb[8].mxu1 %v2354_v6 }
 0x1c2   : > { %5082 = vmatprep.mubr.bf16.mxu1 %v2355_v20 }
 0x1c9   : > { %5083 = vmatmul.mubr.bf16.gmra.mrb[12].mxu1 %v2356_v59 }
 0x284   : > { %v5072_v17 = vpop.f32.mrb[0].mxu1 }
 0x285   : > { %v2527_v38 = vmul.f32 %v5072_v17, %v6759_v16  ;;  %v2439_v28 = vpop.f32.mrb[1].mxu1 }
 0x286   : > { %v2525_v31 = vmul.f32 %v6759_v16, %v2439_v28  ;;  %v5073_v42 = vpop.f32.mrb[2].mxu1 }
 0x287   : > { %v6769_v5 = vadd.f32 %v6764_v46, %v2527_v38  ;;  %v2528_v54 = vmul.f32 %v5073_v42, %v6759_v16  ;;  %v2442_v6 = vpop.f32.mrb[3].mxu1 }
 0x288   : > { %v6773_v10 = vadd.f32 %v6764_v46, %v2525_v31  ;;  %v2526_v57 = vmul.f32 %v6759_v16, %v2442_v6 }
 0x289   : > { %v4591_v34 = vmul.f32 -1.442695, %v6769_v5  ;;  %v6778_v44 = vadd.f32 %v6764_v46, %v2528_v54 }
 0x28a   : > { %v4589_v21 = vmul.f32 -1.442695, %v6773_v10  ;;  %v6782_v45 = vadd.f32 %v6764_v46, %v2526_v57 }
 0x28b   : > { %5448 = vpow2.f32 %v4591_v34  ;;  %v4592_v51 = vmul.f32 -1.442695, %v6778_v44 }
 0x28c   : > { %5450 = vpow2.f32 %v4589_v21  ;;  %v4590_v61 = vmul.f32 -1.442695, %v6782_v45  ;;  %v5076_v12 = vpop.f32.mrb[4].mxu1 }
 0x28d   : > { %5452 = vpow2.f32 %v4592_v51  ;;  %v2531_v50 = vmul.f32 %v5076_v12, %v6759_v16  ;;  %v2455_v20 = vpop.f32.mrb[5].mxu1 }
 0x28e   : > { %5454 = vpow2.f32 %v4590_v61  ;;  %v2529_v59 = vmul.f32 %v6759_v16, %v2455_v20  ;;  %v5077_v13 = vpop.f32.mrb[6].mxu1 }
 0x28f   : > { %v6789_v62 = vadd.f32 %v6764_v46, %v2531_v50  ;;  %v2532_v36 = vmul.f32 %v5077_v13, %v6759_v16  ;;  %v2458_v25 = vpop.f32.mrb[7].mxu1 }
 0x290   : > { %v6793_v56 = vadd.f32 %v6764_v46, %v2529_v59  ;;  %v2530_v22 = vmul.f32 %v6759_v16, %v2458_v25 }
 0x291   : > { %v4595_v39 = vmul.f32 -1.442695, %v6789_v62  ;;  %v6798_v15 = vadd.f32 %v6764_v46, %v2532_v36 }
 0x292   : > { %v4593_v26 = vmul.f32 -1.442695, %v6793_v56  ;;  %v6802_v37 = vadd.f32 %v6764_v46, %v2530_v22 }
 0x293   : > { %5456 = vpow2.f32 %v4595_v39  ;;  %v4596_v52 = vmul.f32 -1.442695, %v6798_v15 }
 0x294   : > { %5458 = vpow2.f32 %v4593_v26  ;;  %v4594_v9 = vmul.f32 -1.442695, %v6802_v37  ;;  %v5080_v29 = vpop.f32.mrb[8].mxu1 }
 0x295   : > { %v5449_v8 = vpop.eup %5448  ;;  %5460 = vpow2.f32 %v4596_v52  ;;  %v2535_v30 = vmul.f32 %v5080_v29, %v6759_v16  ;;  %v2471_v4 = vpop.f32.mrb[9].mxu1 }
 0x296   : > { %v5451_v1 = vpop.eup %5450  ;;  %v2614_v49 = vadd.f32 1.0, %v5449_v8  ;;  %5462 = vpow2.f32 %v4594_v9  ;;  %v2533_v18 = vmul.f32 %v6759_v16, %v2471_v4  ;;  %v5081_v3 = vpop.f32.mrb[10].mxu1 }
 0x297   : > { %v5453_v2 = vpop.eup %5452  ;;  %v2612_v19 = vadd.f32 1.0, %v5451_v1  ;;  %v6809_v41 = vadd.f32 %v6764_v46, %v2535_v30  ;;  %v2536_v40 = vmul.f32 %v5081_v3, %v6759_v16  ;;  %v2474_v48 = vpop.f32.mrb[11].mxu1 }
 0x298   : > { %v5455_v17 = vpop.eup %5454  ;;  %5464 = vrcp.f32 %v2614_v49  ;;  %v2615_v38 = vadd.f32 1.0, %v5453_v2  ;;  %v6813_v28 = vadd.f32 %v6764_v46, %v2533_v18  ;;  %v2534_v31 = vmul.f32 %v6759_v16, %v2474_v48 }
 0x299   : > { %5466 = vrcp.f32 %v2612_v19  ;;  %v2613_v42 = vadd.f32 1.0, %v5455_v17  ;;  %v4599_v54 = vmul.f32 -1.442695, %v6809_v41  ;;  %v6818_v6 = vadd.f32 %v6764_v46, %v2536_v40 }
 0x29a   : > { %5468 = vrcp.f32 %v2615_v38  ;;  %v4597_v57 = vmul.f32 -1.442695, %v6813_v28  ;;  %v6822_v34 = vadd.f32 %v6764_v46, %v2534_v31 }
 0x29b   : > { %5470 = vrcp.f32 %v2613_v42  ;;  %v4600_v21 = vmul.f32 -1.442695, %v6818_v6 }
 0x29c   : > { %5472 = vpow2.f32 %v4599_v54  ;;  %v4598_v51 = vmul.f32 -1.442695, %v6822_v34  ;;  %v5084_v61 = vpop.f32.mrb[12].mxu1 }
 0x29d   : > { %v5457_v12 = vpop.eup %5456  ;;  %5474 = vpow2.f32 %v4597_v57  ;;  %v2539_v50 = vmul.f32 %v5084_v61, %v6759_v16  ;;  %v2487_v20 = vpop.f32.mrb[13].mxu1 }
 0x29e   : > { %v5459_v59 = vpop.eup %5458  ;;  %v2618_v13 = vadd.f32 1.0, %v5457_v12  ;;  %5476 = vpow2.f32 %v4600_v21  ;;  %v2537_v36 = vmul.f32 %v6759_v16, %v2487_v20  ;;  %v5085_v25 = vpop.f32.mrb[14].mxu1 }
 0x29f   : > { %v5461_v22 = vpop.eup %5460  ;;  %v2616_v39 = vadd.f32 1.0, %v5459_v59  ;;  %5478 = vpow2.f32 %v4598_v51  ;;  %v6829_v26 = vadd.f32 %v6764_v46, %v2539_v50  ;;  %v2540_v52 = vmul.f32 %v5085_v25, %v6759_v16  ;;  %v2490_v9 = vpop.f32.mrb[15].mxu1 }
 0x2a0   : > { %v5463_v29 = vpop.eup %5462  ;;  %5480 = vrcp.f32 %v2618_v13  ;;  %v2619_v8 = vadd.f32 1.0, %v5461_v22  ;;  %v6833_v30 = vadd.f32 %v6764_v46, %v2537_v36  ;;  %v2538_v4 = vmul.f32 %v6759_v16, %v2490_v9 }
 0x2a1   : > { %5482 = vrcp.f32 %v2616_v39  ;;  %v2617_v1 = vadd.f32 1.0, %v5463_v29  ;;  %v4603_v49 = vmul.f32 -1.442695, %v6829_v26  ;;  %v6838_v18 = vadd.f32 %v6764_v46, %v2540_v52  ;;  %v5345_v39 = vld [vmem:[%s7714_s4 + $0xc8] sm:$0xff]  }
 0x2a2   : > { %v5465_v3 = vpop.eup %5464  ;;  %5484 = vrcp.f32 %v2619_v8  ;;  %v4601_v2 = vmul.f32 -1.442695, %v6833_v30  ;;  %v6848_v19 = vadd.f32 %v6764_v46, %v2538_v4 }
 0x2a3   : > { %v5467_v16 = vpop.eup %5466  ;;  %v6851_v40 = vmul.f32 %v5465_v3, %v6769_v5  ;;  %5486 = vrcp.f32 %v2617_v1  ;;  %v4604_v48 = vmul.f32 -1.442695, %v6838_v18 }
 0x2a4   : > { %v5469_v17 = vpop.eup %5468  ;;  %v6855_v38 = vmul.f32 %v5467_v16, %v6773_v10  ;;  %5488 = vpow2.f32 %v4603_v49  ;;  %v4602_v31 = vmul.f32 -1.442695, %v6848_v19 }
 0x2a5   : > { %v5471_v42 = vpop.eup %5470  ;;  %2678 = vst [vmem:[%s6844_s21 + $0x10] sm:$0xff] %v6851_v40  ;;  %v2745_v46 = vrot.slane %v6851_v40, 7  ;;  %v6862_v54 = vmul.f32 %v5469_v17, %v6778_v44  ;;  %5490 = vpow2.f32 %v4601_v2  ;;  %v3099_v5 = vrot.slane %v6851_v40, 1 }
 0x2a6   : > { %v5473_v57 = vpop.eup %5472  ;;  %2676 = vst [vmem:[%s6844_s21] sm:$0xff] %v6855_v38  ;;  %v2661_v10 = vmul.f32 %v5471_v42, %v6782_v45  ;;  %5492 = vpow2.f32 %v4604_v48  ;;  %v2743_v21 = vrot.slane %v6855_v38, 7  ;;  %v3097_v51 = vrot.slane %v6855_v38, 1 }
 0x2a7   : > { %v5475_v61 = vpop.eup %5474  ;;  %2679 = vst [vmem:[%s6844_s21 + $0x18] sm:$0xff] %v6862_v54  ;;  %v2746_v44 = vrot.slane %v6862_v54, 7  ;;  %v3100_v12 = vrot.slane %v6862_v54, 1  ;;  %v2622_v50 = vadd.f32 1.0, %v5473_v57  ;;  %5494 = vpow2.f32 %v4602_v31 }
 0x2a8   : > { %v5477_v20 = vpop.eup %5476  ;;  %2677 = vst [vmem:[%s6844_s21 + $0x8] sm:$0xff] %v2661_v10  ;;  %v2620_v59 = vadd.f32 1.0, %v5475_v61  ;;  %v2799_v13 = vpack.c.bf16 %v2661_v10, %v6855_v38  ;;  %v2800_v45 = vpack.c.bf16 %v6862_v54, %v6851_v40  ;;  %v2744_v36 = vrot.slane %v2661_v10, 7  ;;  %v5348_v54 = vld [vmem:[%s7714_s4 + $0xe0] sm:$0xff]  }
 0x2a9   : > { %v5479_v25 = vpop.eup %5478  ;;  %5496 = vrcp.f32 %v2622_v50  ;;  %v2623_v22 = vadd.f32 1.0, %v5477_v20  ;;  %v6883_v52 = vsel %vm735_vm2, %v2745_v46, %v2746_v44  ;;  %v3098_v9 = vrot.slane %v2661_v10, 1  ;;  %v5356_v38 = vld [vmem:[%s7714_s4 + $0x160] sm:$0xff]  }
 0x2aa   : > { %v5481_v29 = vpop.eup %5480  ;;  %5498 = vrcp.f32 %v2620_v59  ;;  %v2621_v8 = vadd.f32 1.0, %v5479_v25  ;;  %5102 = vmatprep.mubr.bf16.mxu0 %v2799_v13  ;;  %v2772_v4 = vsel %vm735_vm2, %v2744_v36, %v2745_v46  ;;  %v6891_v1 = vsel %vm735_vm2, %v2743_v21, %v2744_v36 }
 0x2ab   : > { %v5483_v49 = vpop.eup %5482  ;;  %v6894_v3 = vmul.f32 %v5481_v29, %v6789_v62  ;;  %5500 = vrcp.f32 %v2623_v22  ;;  %5103 = vmatmul.mubr.bf16.vlgmr.msra.gmra.mrb[16].mxu0 %v2800_v45  ;;  %v6897_v2 = vmul.f32 %v5983_v47, %v2772_v4  ;;  %v3126_v16 = vsel %vm1393_vm0, %v3098_v9, %v3099_v5 }
 0x2ac   : > { %v5485_v40 = vpop.eup %5484  ;;  %v6902_v48 = vmul.f32 %v5483_v49, %v6793_v56  ;;  %5502 = vrcp.f32 %v2621_v8  ;;  %5119 = vmatpush3.bf16.msra.mxu0 %v6753_v24  ;;  %v6909_v62 = vsel %vm1393_vm0, %v3097_v51, %v3098_v9  ;;  %v6912_v47 = vmul.f32 %v5969_v27, %v3126_v16  ;;  %v5346_v24 = vld [vmem:[%s7714_s4 + $0xd0] sm:$0xff]   ;;  %v5347_v8 = vld [vmem:[%s7714_s4 + $0xd8] sm:$0xff]  }
 0x2ad   : > { %v5487_v17 = vpop.eup %5486  ;;  %2682 = vst [vmem:[%s6844_s21 + $0x30] sm:$0xff] %v6894_v3  ;;  %v6917_v31 = vmul.f32 %v5485_v40, %v6798_v15  ;;  %5120 = vmatprep.subr.bf16.mxu0 %v5345_v39  ;;  %v2792_v56 = vpack.c.bf16 %v6883_v52, %v6897_v2  ;;  %v2749_v42 = vrot.slane %v6894_v3, 7  ;;  %v6929_v27 = vsel %vm1393_vm0, %v3099_v5, %v3100_v12  ;;  %v5358_v52 = vld [vmem:[%s7714_s4 + $0x170] sm:$0xff]   ;;  %v5359_v2 = vld [vmem:[%s7714_s4 + $0x178] sm:$0xff]  }
 0x2ae   : > { %v5489_v46 = vpop.eup %5488  ;;  %2680 = vst [vmem:[%s6844_s21 + $0x20] sm:$0xff] %v6902_v48  ;;  %v3101_v15 = vrot.slane %v6902_v48, 1  ;;  %v2665_v57 = vmul.f32 %v5487_v17, %v6802_v37  ;;  %v2747_v10 = vrot.slane %v6902_v48, 7  ;;  %v3145_v61 = vpack.c.bf16 %v6912_v47, %v6909_v62  ;;  %v5362_v62 = vld [vmem:[%s7717_s7 + $0x4] ss:$8 sps:$4 sm:$0xff]  }
 0x2af   : > { %v5491_v50 = vpop.eup %5490  ;;  %2683 = vst [vmem:[%s6844_s21 + $0x38] sm:$0xff] %v6917_v31  ;;  %v2626_v20 = vadd.f32 1.0, %v5489_v46  ;;  %v2802_v5 = vpack.c.bf16 %v6917_v31, %v6894_v3  ;;  %v2750_v59 = vrot.slane %v6917_v31, 7  ;;  %v3103_v13 = vrot.slane %v6894_v3, 1  ;;  %v5360_v47 = vld [vmem:[%s7717_s7] ss:$8 sps:$4 sm:$0xff]   ;;  %3594 = vmatprep.subr.bf16.mxu1 %v5362_v62 }
 0x2b0   : > { %v5493_v45 = vpop.eup %5492  ;;  %2681 = vst [vmem:[%s6844_s21 + $0x28] sm:$0xff] %v2665_v57  ;;  %v2624_v36 = vadd.f32 1.0, %v5491_v50  ;;  %5121 = vmatpush3.bf16.msra.mxu0 %v5345_v39  ;;  %v2801_v37 = vpack.c.bf16 %v2665_v57, %v6902_v48  ;;  %v2748_v25 = vrot.slane %v2665_v57, 7  ;;  %v2770_v22 = vsel %vm735_vm2, %v2746_v44, %v2747_v10  ;;  %3595 = vmatpush1.bf16.msra.mxu1 %v5360_v47 }
 0x2b1   : > { %v5495_v9 = vpop.eup %5494  ;;  %5504 = vrcp.f32 %v2626_v20  ;;  %v2627_v29 = vadd.f32 1.0, %v5493_v45  ;;  %5122 = vmatprep.subr.bf16.mxu0 %v5346_v24  ;;  %v6952_v4 = vmul.f32 %v5996_v55, %v2770_v22  ;;  %v6956_v39 = vsel %vm735_vm2, %v2749_v42, %v2750_v59 }
 0x2b2   : > { %5506 = vrcp.f32 %v2624_v36  ;;  %v2625_v49 = vadd.f32 1.0, %v5495_v9  ;;  %5106 = vmatprep.mubr.bf16.mxu0 %v2801_v37  ;;  %v6960_v44 = vsel %vm735_vm2, %v2747_v10, %v2748_v25  ;;  %v2768_v3 = vsel %vm735_vm2, %v2748_v25, %v2749_v42 }
 0x2b3   : > { %v5497_v16 = vpop.eup %5496  ;;  %5508 = vrcp.f32 %v2627_v29  ;;  %5107 = vmatmul.mubr.bf16.gmra.mrb[20].mxu0 %v2802_v5  ;;  %v2793_v55 = vpack.c.bf16 %v6960_v44, %v6952_v4  ;;  %v6967_v40 = vmul.f32 %v5999_v58, %v2768_v3  ;;  %v3124_v48 = vsel %vm1393_vm0, %v3100_v12, %v3101_v15  ;;  %v5349_v29 = vld [vmem:[%s7714_s4 + $0xe8] sm:$0xff]   ;;  %v5371_v44 = vld [vmem:[%s7717_s7 + $0x34] ss:$8 sps:$4 sm:$0xff]  }
 0x2b4   : > { %v5499_v17 = vpop.eup %5498  ;;  %v6974_v46 = vmul.f32 %v5497_v16, %v6809_v41  ;;  %5510 = vrcp.f32 %v2625_v49  ;;  %5123 = vmatpush3.bf16.msra.mxu0 %v5346_v24  ;;  %v6977_v42 = vmul.f32 %v6151_v23, %v3124_v48  ;;  %v3102_v10 = vrot.slane %v2665_v57, 1  ;;  %v5368_v4 = vld [vmem:[%s7717_s7 + $0x24] ss:$8 sps:$4 sm:$0xff]  }
 0x2b5   : > { %v5501_v50 = vpop.eup %5500  ;;  %v2668_v58 = vmul.f32 %v5499_v17, %v6813_v28  ;;  %5124 = vmatprep.subr.bf16.mxu0 %v5347_v8  ;;  %v2794_v41 = vpack.c.bf16 %v6956_v39, %v6967_v40  ;;  %v3104_v12 = vrot.slane %v6917_v31, 1  ;;  %v5366_v39 = vld [vmem:[%s7717_s7 + $0x20] ss:$8 sps:$4 sm:$0xff]   ;;  %v5374_v40 = vld [vmem:[%s7717_s7 + $0x44] ss:$8 sps:$4 sm:$0xff]  }
 0x2b6   : > { %v5503_v20 = vpop.eup %5502  ;;  %2686 = vst [vmem:[%s6844_s21 + $0x50] sm:$0xff] %v6974_v46  ;;  %v6989_v23 = vmul.f32 %v5501_v50, %v6818_v6  ;;  %v2753_v28 = vrot.slane %v6974_v46, 7  ;;  %v3146_v24 = vpack.c.bf16 %v6977_v42, %v6929_v27  ;;  %v3122_v57 = vsel %vm1393_vm0, %v3102_v10, %v3103_v13  ;;  %v5365_v27 = vld [vmem:[%s7717_s7 + $0x14] ss:$8 sps:$4 sm:$0xff]   ;;  %v5372_v42 = vld [vmem:[%s7717_s7 + $0x40] ss:$8 sps:$4 sm:$0xff]  }
 0x2b7   : > { %2684 = vst [vmem:[%s6844_s21 + $0x40] sm:$0xff] %v2668_v58  ;;  %v2669_v5 = vmul.f32 %v5503_v20, %v6822_v34  ;;  %v2751_v45 = vrot.slane %v2668_v58, 7  ;;  %v7000_v31 = vsel %vm1393_vm0, %v3101_v15, %v3102_v10  ;;  %v7003_v36 = vmul.f32 %v6159_v32, %v3122_v57  ;;  %3596 = vmatprep.subr.bf16.mxu1 %v5365_v27 }
 0x2b8   : > { %2687 = vst [vmem:[%s6844_s21 + $0x58] sm:$0xff] %v6989_v23  ;;  %5125 = vmatpush3.bf16.msra.mxu0 %v5347_v8  ;;  %v2804_v6 = vpack.c.bf16 %v6989_v23, %v6974_v46  ;;  %v2754_v37 = vrot.slane %v6989_v23, 7  ;;  %v3105_v25 = vrot.slane %v2668_v58, 1  ;;  %v7012_v34 = vsel %vm1393_vm0, %v3103_v13, %v3104_v12 }
 0x2b9   : > { %2685 = vst [vmem:[%s6844_s21 + $0x48] sm:$0xff] %v2669_v5  ;;  %v2803_v22 = vpack.c.bf16 %v2669_v5, %v2668_v58  ;;  %5126 = vmatprep.subr.bf16.mxu0 %v5348_v54  ;;  %v2752_v15 = vrot.slane %v2669_v5, 7  ;;  %v2766_v32 = vsel %vm735_vm2, %v2750_v59, %v2751_v45  ;;  %v3147_v9 = vpack.c.bf16 %v7003_v36, %v7000_v31  ;;  %v5380_v31 = vld [vmem:[%s7717_s7 + $0x64] ss:$8 sps:$4 sm:$0xff]   ;;  %v5378_v36 = vld [vmem:[%s7717_s7 + $0x60] ss:$8 sps:$4 sm:$0xff]  }
 0x2ba   : > { %v7023_v8 = vmul.f32 %v6005_v60, %v2766_v32  ;;  %v7027_v13 = vsel %vm735_vm2, %v2753_v28, %v2754_v37  ;;  %v3120_v49 = vsel %vm1393_vm0, %v3104_v12, %v3105_v25  ;;  %v3106_v3 = vrot.slane %v2669_v5, 1 }
 0x2bb   : > { %v5505_v16 = vpop.eup %5504  ;;  %5110 = vmatprep.mubr.bf16.mxu0 %v2803_v22  ;;  %v7033_v59 = vsel %vm735_vm2, %v2751_v45, %v2752_v15  ;;  %v2764_v48 = vsel %vm735_vm2, %v2752_v15, %v2753_v28  ;;  %v7038_v60 = vmul.f32 %v6181_v33, %v3120_v49  ;;  %v3107_v17 = vrot.slane %v6974_v46, 1 }
 0x2bc   : > { %v5507_v10 = vpop.eup %5506  ;;  %v2674_v50 = vmul.f32 %v5505_v16, %v6829_v26  ;;  %5111 = vmatmul.mubr.bf16.gmra.mrb[24].mxu0 %v2804_v6  ;;  %v2795_v58 = vpack.c.bf16 %v7033_v59, %v7023_v8  ;;  %v7045_v12 = vmul.f32 %v6009_v0, %v2764_v48  ;;  %v7049_v20 = vsel %vm1393_vm0, %v3105_v25, %v3106_v3 }
 0x2bd   : > { %v5509_v28 = vpop.eup %5508  ;;  %v2672_v33 = vmul.f32 %v5507_v10, %v6833_v30  ;;  %5127 = vmatpush3.bf16.msra.mxu0 %v5348_v54  ;;  %v3148_v46 = vpack.c.bf16 %v7038_v60, %v7012_v34  ;;  %v3118_v26 = vsel %vm1393_vm0, %v3106_v3, %v3107_v17  ;;  %v3108_v57 = vrot.slane %v6989_v23, 1  ;;  %v5350_v30 = vld [vmem:[%s7714_s4 + $0xf0] sm:$0xff]   ;;  %v5351_v10 = vld [vmem:[%s7714_s4 + $0xf8] sm:$0xff]   ;;  %v7223_v60 = vld [vmem:[%s7716_s6 + $0x1] ss:$0 sm:$0xff] }
 0x2be   : > { %v5511_v0 = vpop.eup %5510  ;;  %2690 = vst [vmem:[%s6844_s21 + $0x70] sm:$0xff] %v2674_v50  ;;  %v2675_v5 = vmul.f32 %v5509_v28, %v6838_v18  ;;  %5128 = vmatprep.subr.bf16.mxu0 %v5349_v29  ;;  %v2796_v54 = vpack.c.bf16 %v7027_v13, %v7045_v12  ;;  %v2757_v45 = vrot.slane %v2674_v50, 7  ;;  %v7065_v6 = vmul.f32 %v6186_v14, %v3118_v26  ;;  %v5383_v34 = vld [vmem:[%s7717_s7 + $0x74] ss:$8 sps:$4 sm:$0xff]   ;;  %v7218_v13 = vld [vmem:[%s7715_s5 + $0x1] ss:$0 sm:$0xff] }
 0x2bf   : > { %2688 = vst [vmem:[%s6844_s21 + $0x60] sm:$0xff] %v2672_v33  ;;  %v2673_v23 = vmul.f32 %v5511_v0, %v6848_v19  ;;  %v2755_v25 = vrot.slane %v2672_v33, 7  ;;  %v3109_v22 = vrot.slane %v2672_v33, 1  ;;  %v7071_v18 = vsel %vm1393_vm0, %v3107_v17, %v3108_v57 }
 0x2c0   : > { %2691 = vst [vmem:[%s6844_s21 + $0x78] sm:$0xff] %v2675_v5  ;;  %v2806_v15 = vpack.c.bf16 %v2675_v5, %v2674_v50  ;;  %v2758_v32 = vrot.slane %v2675_v5, 7  ;;  %v3111_v3 = vrot.slane %v2674_v50, 1  ;;  %v7747_v50 = vld [vmem:[#allocation2_spill] sm:$0xff]  ;;  %v5713_v8 = vmov 0  }
 0x2c1   : > { %2689 = vst [vmem:[%s6844_s21 + $0x68] sm:$0xff] %v2673_v23  ;;  %5129 = vmatpush3.bf16.msra.mxu0 %v5349_v29  ;;  %v2805_v14 = vpack.c.bf16 %v2673_v23, %v2672_v33  ;;  %v2756_v16 = vrot.slane %v2673_v23, 7  ;;  %v2762_v19 = vsel %vm735_vm2, %v2754_v37, %v2755_v25  ;;  %v3116_v48 = vsel %vm1393_vm0, %v3108_v57, %v3109_v22 }
 0x2c2   : > { %5130 = vmatprep.subr.bf16.mxu0 %v5350_v30  ;;  %v2774_v17 = vsel %vm735_vm2, %v2758_v32, %v2743_v21  ;;  %v2787_v29 = vmul.f32 %v7747_v50, %v2762_v19  ;;  %v2759_v28 = vsel %vm735_vm2, %v2757_v45, %v2758_v32  ;;  %v3140_v37 = vmul.f32 %v6202_v7, %v3116_v48 }
 0x2c3   : > { %5114 = vmatprep.mubr.bf16.mxu0 %v2805_v14  ;;  %v2775_v33 = vmul.f32 %v5944_v63, %v2774_v17  ;;  %v2761_v26 = vsel %vm735_vm2, %v2755_v25, %v2756_v16  ;;  %v2760_v21 = vsel %vm735_vm2, %v2756_v16, %v2757_v45  ;;  %v3110_v57 = vrot.slane %v2673_v23, 1  ;;  %v5352_v45 = vld [vmem:[%s7714_s4 + $0x140] sm:$0xff]   ;;  %3626 = vmatprep.mubr.bf16.mxu1 %v5713_v8 }
 0x2c4   : > { %5115 = vmatmul.mubr.bf16.gmra.mrb[28].mxu0 %v2806_v15  ;;  %v2797_v0 = vpack.c.bf16 %v2761_v26, %v2787_v29  ;;  %v2789_v49 = vmul.f32 %v6127_v53, %v2760_v21  ;;  %v3150_v19 = vpack.c.bf16 %v3140_v37, %v7071_v18  ;;  %v3112_v50 = vrot.slane %v2675_v5, 1  ;;  %v5353_v15 = vld [vmem:[%s7714_s4 + $0x148] sm:$0xff]  }
 0x2c5   : > { %5131 = vmatpush3.bf16.msra.mxu0 %v5350_v30  ;;  %v2791_v7 = vpack.c.bf16 %v6891_v1, %v2775_v33  ;;  %v3114_v63 = vsel %vm1393_vm0, %v3110_v57, %v3111_v3  ;;  %v3115_v25 = vsel %vm1393_vm0, %v3109_v22, %v3110_v57 }
 0x2c6   : > { %5132 = vmatprep.subr.bf16.mxu0 %v5351_v10  ;;  %v2798_v23 = vpack.c.bf16 %v2759_v28, %v2789_v49  ;;  %v3142_v53 = vmul.f32 %v6207_v43, %v3114_v63  ;;  %v3113_v5 = vsel %vm1393_vm0, %v3111_v3, %v3112_v50  ;;  %v3128_v1 = vsel %vm1393_vm0, %v3112_v50, %v3097_v51  ;;  %v5354_v43 = vld [vmem:[%s7714_s4 + $0x150] sm:$0xff]   ;;  %v5357_v51 = vld [vmem:[%s7714_s4 + $0x168] sm:$0xff]  }
 0x2c7   : > { %5134 = vmatprep.mubr.bf16.mxu0 %v2791_v7  ;;  %v3144_v30 = vmul.f32 %v6221_v35, %v3128_v1  ;;  %v5355_v35 = vld [vmem:[%s7714_s4 + $0x158] sm:$0xff]  }
 0x2c8   : > { %v3151_v22 = vpack.c.bf16 %v3142_v53, %v3115_v25 }
 0x2c9   : > { %5133 = vmatpush3.bf16.msra.mxu0 %v5351_v10  ;;  %v3152_v18 = vpack.c.bf16 %v3144_v30, %v3113_v5 }
 0x2ca   : > { %5150 = vmatprep.subr.bf16.mxu0 %v5352_v45 }
 0x2cc   : > { %5135 = vmatmul.mubr.bf16.vlgmr.msra.gmra.mrb[16].mxu0 %v2792_v56  ;;  %v7748_v56 = vpack.c.bf16 %v7065_v6, %v7049_v20 }
 0x2cd   : > { %5138 = vmatprep.mubr.bf16.mxu0 %v2793_v55  ;;  %5151 = vmatpush3.bf16.msra.mxu0 %v5352_v45  ;;  %v5369_v55 = vld [vmem:[%s7717_s7 + $0x30] ss:$8 sps:$4 sm:$0xff]  }
 0x2ce   : > { %5152 = vmatprep.subr.bf16.mxu0 %v5353_v15 }
 0x2d1   : > { %5153 = vmatpush3.bf16.msra.mxu0 %v5353_v15 }
 0x2d2   : > { %5154 = vmatprep.subr.bf16.mxu0 %v5354_v43 }
 0x2d4   : > { %5139 = vmatmul.mubr.bf16.gmra.mrb[20].mxu0 %v2794_v41  ;;  %v5377_v41 = vld [vmem:[%s7717_s7 + $0x54] ss:$8 sps:$4 sm:$0xff]  }
 0x2d5   : > { %5142 = vmatprep.mubr.bf16.mxu0 %v2795_v58  ;;  %5155 = vmatpush3.bf16.msra.mxu0 %v5354_v43 }
 0x2d6   : > { %5156 = vmatprep.subr.bf16.mxu0 %v5355_v35 }
 0x2d9   : > { %5157 = vmatpush3.bf16.msra.mxu0 %v5355_v35 }
 0x2da   : > { %5158 = vmatprep.subr.bf16.mxu0 %v5356_v38 }
 0x2dc   : > { %5143 = vmatmul.mubr.bf16.gmra.mrb[24].mxu0 %v2796_v54 }
 0x2dd   : > { %5146 = vmatprep.mubr.bf16.mxu0 %v2797_v0  ;;  %5159 = vmatpush3.bf16.msra.mxu0 %v5356_v38 }
 0x2de   : > { %5160 = vmatprep.subr.bf16.mxu0 %v5357_v51 }
 0x2e1   : > { %5161 = vmatpush3.bf16.msra.mxu0 %v5357_v51 }
 0x2e2   : > { %5162 = vmatprep.subr.bf16.mxu0 %v5358_v52 }
 0x2e4   : > { %5147 = vmatmul.mubr.bf16.gmra.mrb[28].mxu0 %v2798_v23 }
 0x2e5   : > { %5163 = vmatpush3.bf16.msra.mxu0 %v5358_v52  ;;  %5166 = vmatprep.mubr.bf16.mxu0 %v3145_v61  ;;  %v5363_v61 = vld [vmem:[%s7717_s7 + $0x10] ss:$8 sps:$4 sm:$0xff]  }
 0x2e6   : > { %5164 = vmatprep.subr.bf16.mxu0 %v5359_v2  ;;  %3597 = vmatpush1.bf16.msra.mxu1 %v5363_v61 }
 0x2e7   : > { %3598 = vmatprep.subr.bf16.mxu1 %v5368_v4 }
 0x2e9   : > { %5165 = vmatpush3.bf16.msra.mxu0 %v5359_v2 }
 0x2ea   : > { %3599 = vmatpush1.bf16.msra.mxu1 %v5366_v39 }
 0x2eb   : > { %3600 = vmatprep.subr.bf16.mxu1 %v5371_v44 }
 0x2ec   : > { %5167 = vmatmul.mubr.bf16.vlgmr.msra.gmra.mrb[16].mxu0 %v3146_v24  ;;  %v5375_v24 = vld [vmem:[%s7717_s7 + $0x50] ss:$8 sps:$4 sm:$0xff]  }
 0x2ed   : > { %5170 = vmatprep.mubr.bf16.mxu0 %v3147_v9  ;;  %v5381_v9 = vld [vmem:[%s7717_s7 + $0x70] ss:$8 sps:$4 sm:$0xff]  }
 0x2ee   : > { %3601 = vmatpush1.bf16.msra.mxu1 %v5369_v55 }
 0x2ef   : > { %3602 = vmatprep.subr.bf16.mxu1 %v5374_v40 }
 0x2f2   : > { %3603 = vmatpush1.bf16.msra.mxu1 %v5372_v42 }
 0x2f3   : > { %3604 = vmatprep.subr.bf16.mxu1 %v5377_v41 }
 0x2f4   : > { %5171 = vmatmul.mubr.bf16.gmra.mrb[20].mxu0 %v3148_v46 }
 0x2f5   : > { %5174 = vmatprep.mubr.bf16.mxu0 %v7748_v56 }
 0x2f6   : > { %3605 = vmatpush1.bf16.msra.mxu1 %v5375_v24 }
 0x2f7   : > { %3606 = vmatprep.subr.bf16.mxu1 %v5380_v31 }
 0x2fa   : > { %3607 = vmatpush1.bf16.msra.mxu1 %v5378_v36 }
 0x2fb   : > { %3608 = vmatprep.subr.bf16.mxu1 %v5383_v34 }
 0x2fc   : > { %5175 = vmatmul.mubr.bf16.gmra.mrb[24].mxu0 %v3150_v19 }
 0x2fd   : > { %5178 = vmatprep.mubr.bf16.mxu0 %v3151_v22 }
 0x2fe   : > { %3609 = vmatpush1.bf16.msra.mxu1 %v5381_v9 }
 0x304   : > { %5179 = vmatmul.mubr.bf16.gmra.mrb[28].mxu0 %v3152_v18 }
 0x3bf   : > { %v5168_v59 = vpop.f32.mrb[16].mxu0 }
 0x3c0   : > { %v3324_v58 = vmul.f32 %v5168_v59, %v7218_v13  ;;  %v3235_v12 = vpop.f32.mrb[17].mxu0 }
 0x3c1   : > { %v3322_v20 = vmul.f32 %v7218_v13, %v3235_v12  ;;  %v5169_v46 = vpop.f32.mrb[18].mxu0 }
 0x3c2   : > { %v7228_v54 = vadd.f32 %v7223_v60, %v3324_v58  ;;  %v3325_v6 = vmul.f32 %v5169_v46, %v7218_v13  ;;  %v3238_v32 = vpop.f32.mrb[19].mxu0 }
 0x3c3   : > { %v7232_v49 = vadd.f32 %v7223_v60, %v3322_v20  ;;  %v3323_v3 = vmul.f32 %v7218_v13, %v3238_v32 }
 0x3c4   : > { %v4683_v14 = vmul.f32 -1.442695, %v7228_v54  ;;  %v7237_v16 = vadd.f32 %v7223_v60, %v3325_v6 }
 0x3c5   : > { %v4681_v48 = vmul.f32 -1.442695, %v7232_v49  ;;  %v7241_v17 = vadd.f32 %v7223_v60, %v3323_v3 }
 0x3c6   : > { %5512 = vpow2.f32 %v4683_v14  ;;  %v4684_v10 = vmul.f32 -1.442695, %v7237_v16 }
 0x3c7   : > { %5514 = vpow2.f32 %v4681_v48  ;;  %v4682_v29 = vmul.f32 -1.442695, %v7241_v17  ;;  %v5172_v28 = vpop.f32.mrb[20].mxu0 }
 0x3c8   : > { %5516 = vpow2.f32 %v4684_v10  ;;  %v3328_v37 = vmul.f32 %v5172_v28, %v7218_v13  ;;  %v3251_v33 = vpop.f32.mrb[21].mxu0 }
 0x3c9   : > { %5518 = vpow2.f32 %v4682_v29  ;;  %v3326_v26 = vmul.f32 %v7218_v13, %v3251_v33  ;;  %v5173_v21 = vpop.f32.mrb[22].mxu0 }
 0x3ca   : > { %v7248_v57 = vadd.f32 %v7223_v60, %v3328_v37  ;;  %v3329_v0 = vmul.f32 %v5173_v21, %v7218_v13  ;;  %v3254_v19 = vpop.f32.mrb[23].mxu0 }
 0x3cb   : > { %v7252_v50 = vadd.f32 %v7223_v60, %v3326_v26  ;;  %v3327_v7 = vmul.f32 %v7218_v13, %v3254_v19 }
 0x3cc   : > { %v4687_v63 = vmul.f32 -1.442695, %v7248_v57  ;;  %v7257_v25 = vadd.f32 %v7223_v60, %v3329_v0 }
 0x3cd   : > { %v4685_v45 = vmul.f32 -1.442695, %v7252_v50  ;;  %v7261_v23 = vadd.f32 %v7223_v60, %v3327_v7 }
 0x3ce   : > { %5520 = vpow2.f32 %v4687_v63  ;;  %v4688_v53 = vmul.f32 -1.442695, %v7257_v25 }
 0x3cf   : > { %5522 = vpow2.f32 %v4685_v45  ;;  %v4686_v5 = vmul.f32 -1.442695, %v7261_v23  ;;  %v5176_v1 = vpop.f32.mrb[24].mxu0 }
 0x3d0   : > { %v5513_v30 = vpop.eup %5512  ;;  %5524 = vpow2.f32 %v4688_v53  ;;  %v3332_v22 = vmul.f32 %v5176_v1, %v7218_v13  ;;  %v3267_v18 = vpop.f32.mrb[25].mxu0 }
 0x3d1   : > { %v5515_v15 = vpop.eup %5514  ;;  %v3412_v43 = vadd.f32 1.0, %v5513_v30  ;;  %5526 = vpow2.f32 %v4686_v5  ;;  %v3330_v35 = vmul.f32 %v7218_v13, %v3267_v18  ;;  %v5177_v38 = vpop.f32.mrb[26].mxu0 }
 0x3d2   : > { %v5517_v51 = vpop.eup %5516  ;;  %v3410_v52 = vadd.f32 1.0, %v5515_v15  ;;  %v7268_v2 = vadd.f32 %v7223_v60, %v3332_v22  ;;  %v3333_v56 = vmul.f32 %v5177_v38, %v7218_v13  ;;  %v3270_v62 = vpop.f32.mrb[27].mxu0 }
 0x3d3   : > { %v5519_v47 = vpop.eup %5518  ;;  %5528 = vrcp.f32 %v3412_v43  ;;  %v3413_v27 = vadd.f32 1.0, %v5517_v51  ;;  %v7272_v61 = vadd.f32 %v7223_v60, %v3330_v35  ;;  %v3331_v4 = vmul.f32 %v7218_v13, %v3270_v62 }
 0x3d4   : > { %5530 = vrcp.f32 %v3410_v52  ;;  %v3411_v39 = vadd.f32 1.0, %v5519_v47  ;;  %v4691_v44 = vmul.f32 -1.442695, %v7268_v2  ;;  %v7277_v55 = vadd.f32 %v7223_v60, %v3333_v56 }
 0x3d5   : > { %5532 = vrcp.f32 %v3413_v27  ;;  %v4689_v40 = vmul.f32 -1.442695, %v7272_v61  ;;  %v7281_v42 = vadd.f32 %v7223_v60, %v3331_v4 }
 0x3d6   : > { %5534 = vrcp.f32 %v3411_v39  ;;  %v4692_v41 = vmul.f32 -1.442695, %v7277_v55 }
 0x3d7   : > { %5536 = vpow2.f32 %v4691_v44  ;;  %v4690_v24 = vmul.f32 -1.442695, %v7281_v42  ;;  %v5180_v31 = vpop.f32.mrb[28].mxu0 }
 0x3d8   : > { %v5521_v36 = vpop.eup %5520  ;;  %5538 = vpow2.f32 %v4689_v40  ;;  %v3336_v34 = vmul.f32 %v5180_v31, %v7218_v13  ;;  %v3283_v9 = vpop.f32.mrb[29].mxu0 }
 0x3d9   : > { %v5523_v59 = vpop.eup %5522  ;;  %v3416_v58 = vadd.f32 1.0, %v5521_v36  ;;  %5540 = vpow2.f32 %v4692_v41  ;;  %v3334_v12 = vmul.f32 %v7218_v13, %v3283_v9  ;;  %v5181_v20 = vpop.f32.mrb[30].mxu0 }
 0x3da   : > { %v5525_v46 = vpop.eup %5524  ;;  %v3414_v6 = vadd.f32 1.0, %v5523_v59  ;;  %5542 = vpow2.f32 %v4690_v24  ;;  %v7288_v32 = vadd.f32 %v7223_v60, %v3336_v34  ;;  %v3337_v3 = vmul.f32 %v5181_v20, %v7218_v13  ;;  %v3286_v14 = vpop.f32.mrb[31].mxu0 }
 0x3db   : > { %v5527_v48 = vpop.eup %5526  ;;  %5544 = vrcp.f32 %v3416_v58  ;;  %v3417_v10 = vadd.f32 1.0, %v5525_v46  ;;  %v7292_v29 = vadd.f32 %v7223_v60, %v3334_v12  ;;  %v3335_v28 = vmul.f32 %v7218_v13, %v3286_v14 }
 0x3dc   : > { %5546 = vrcp.f32 %v3414_v6  ;;  %v3415_v37 = vadd.f32 1.0, %v5527_v48  ;;  %v4695_v33 = vmul.f32 -1.442695, %v7288_v32  ;;  %v7297_v26 = vadd.f32 %v7223_v60, %v3337_v3 }
 0x3dd   : > { %v5529_v21 = vpop.eup %5528  ;;  %5548 = vrcp.f32 %v3417_v10  ;;  %v4693_v0 = vmul.f32 -1.442695, %v7292_v29  ;;  %v7307_v13 = vadd.f32 %v7223_v60, %v3335_v28 }
 0x3de   : > { %v5531_v19 = vpop.eup %5530  ;;  %v3460_v7 = vmul.f32 %v5529_v21, %v7228_v54  ;;  %5550 = vrcp.f32 %v3415_v37  ;;  %v4696_v63 = vmul.f32 -1.442695, %v7297_v26 }
 0x3df   : > { %v5533_v45 = vpop.eup %5532  ;;  %v3458_v53 = vmul.f32 %v5531_v19, %v7232_v49  ;;  %5552 = vpow2.f32 %v4695_v33  ;;  %v4694_v5 = vmul.f32 -1.442695, %v7307_v13 }
 0x3e0   : > { %v5535_v1 = vpop.eup %5534  ;;  %3476 = vst [vmem:[%s7303_s20 + $0x10] sm:$0xff] %v3460_v7  ;;  %v3461_v30 = vmul.f32 %v5533_v45, %v7237_v16  ;;  %5554 = vpow2.f32 %v4693_v0  ;;  %v3783_v0 = vld [vmem:[%s7719_s9] sm:$0x3] }
 0x3e1   : > { %v5537_v60 = vpop.eup %5536  ;;  %3474 = vst [vmem:[%s7303_s20] sm:$0xff] %v3458_v53  ;;  %v3459_v54 = vmul.f32 %v5535_v1, %v7241_v17  ;;  %5556 = vpow2.f32 %v4696_v63 }
 0x3e2   : > { %v5539_v22 = vpop.eup %5538  ;;  %3477 = vst [vmem:[%s7303_s20 + $0x18] sm:$0xff] %v3461_v30  ;;  %v3420_v18 = vadd.f32 1.0, %v5537_v60  ;;  %5558 = vpow2.f32 %v4694_v5  ;;  %v3491_v15 = vpack.c.bf16 %v3461_v30, %v3460_v7 }
 0x3e3   : > { %v5541_v49 = vpop.eup %5540  ;;  %3475 = vst [vmem:[%s7303_s20 + $0x8] sm:$0xff] %v3459_v54  ;;  %v3490_v43 = vpack.c.bf16 %v3459_v54, %v3458_v53  ;;  %v3418_v35 = vadd.f32 1.0, %v5539_v22 }
 0x3e4   : > { %v5543_v38 = vpop.eup %5542  ;;  %5560 = vrcp.f32 %v3420_v18  ;;  %v3421_v51 = vadd.f32 1.0, %v5541_v49 }
 0x3e5   : > { %v5545_v16 = vpop.eup %5544  ;;  %5562 = vrcp.f32 %v3418_v35  ;;  %v3419_v52 = vadd.f32 1.0, %v5543_v38  ;;  %3627 = vmatmul.mubr.bf16.vlgmr.msra.gmra.mrb[16].mxu1 %v3490_v43 }
 0x3e6   : > { %v5547_v17 = vpop.eup %5546  ;;  %v3464_v56 = vmul.f32 %v5545_v16, %v7248_v57  ;;  %5564 = vrcp.f32 %v3421_v51  ;;  %3636 = vmatprep.mubr.bf16.mxu1 %v5713_v8 }
 0x3e7   : > { %v5549_v62 = vpop.eup %5548  ;;  %v3462_v47 = vmul.f32 %v5547_v17, %v7252_v50  ;;  %5566 = vrcp.f32 %v3419_v52 }
 0x3e8   : > { %v5551_v27 = vpop.eup %5550  ;;  %3480 = vst [vmem:[%s7303_s20 + $0x30] sm:$0xff] %v3464_v56  ;;  %v3465_v4 = vmul.f32 %v5549_v62, %v7257_v25 }
 0x3e9   : > { %v5553_v39 = vpop.eup %5552  ;;  %3478 = vst [vmem:[%s7303_s20 + $0x20] sm:$0xff] %v3462_v47  ;;  %v3463_v44 = vmul.f32 %v5551_v27, %v7261_v23 }
 0x3ea   : > { %v5555_v40 = vpop.eup %5554  ;;  %3481 = vst [vmem:[%s7303_s20 + $0x38] sm:$0xff] %v3465_v4  ;;  %v3424_v41 = vadd.f32 1.0, %v5553_v39  ;;  %v3493_v57 = vpack.c.bf16 %v3465_v4, %v3464_v56 }
 0x3eb   : > { %v5557_v24 = vpop.eup %5556  ;;  %3479 = vst [vmem:[%s7303_s20 + $0x28] sm:$0xff] %v3463_v44  ;;  %v3422_v31 = vadd.f32 1.0, %v5555_v40  ;;  %v3492_v36 = vpack.c.bf16 %v3463_v44, %v3462_v47 }
 0x3ec   : > { %v5559_v34 = vpop.eup %5558  ;;  %5568 = vrcp.f32 %v3424_v41  ;;  %v3425_v50 = vadd.f32 1.0, %v5557_v24 }
 0x3ed   : > { %5570 = vrcp.f32 %v3422_v31  ;;  %v3423_v25 = vadd.f32 1.0, %v5559_v34  ;;  %3637 = vmatmul.mubr.bf16.gmra.mrb[20].mxu1 %v3491_v15 }
 0x3ee   : > { %v5561_v9 = vpop.eup %5560  ;;  %5572 = vrcp.f32 %v3425_v50  ;;  %3646 = vmatprep.mubr.bf16.mxu1 %v5713_v8 }
 0x3ef   : > { %v5563_v23 = vpop.eup %5562  ;;  %v3468_v59 = vmul.f32 %v5561_v9, %v7268_v2  ;;  %5574 = vrcp.f32 %v3423_v25 }
 0x3f0   : > { %v5565_v58 = vpop.eup %5564  ;;  %v3466_v12 = vmul.f32 %v5563_v23, %v7272_v61 }
 0x3f1   : > { %v5567_v20 = vpop.eup %5566  ;;  %3484 = vst [vmem:[%s7303_s20 + $0x50] sm:$0xff] %v3468_v59  ;;  %v3469_v46 = vmul.f32 %v5565_v58, %v7277_v55 }
 0x3f2   : > { %3482 = vst [vmem:[%s7303_s20 + $0x40] sm:$0xff] %v3466_v12  ;;  %v3467_v6 = vmul.f32 %v5567_v20, %v7281_v42 }
 0x3f3   : > { %3485 = vst [vmem:[%s7303_s20 + $0x58] sm:$0xff] %v3469_v46  ;;  %v3495_v3 = vpack.c.bf16 %v3469_v46, %v3468_v59 }
 0x3f4   : > { %3483 = vst [vmem:[%s7303_s20 + $0x48] sm:$0xff] %v3467_v6  ;;  %v3494_v14 = vpack.c.bf16 %v3467_v6, %v3466_v12 }
 0x3f5   : > { %3647 = vmatmul.mubr.bf16.gmra.mrb[24].mxu1 %v3492_v36 }
 0x3f6   : > { %v5569_v2 = vpop.eup %5568  ;;  %3656 = vmatprep.mubr.bf16.mxu1 %v5713_v8 }
 0x3f7   : > { %v5571_v61 = vpop.eup %5570  ;;  %v3472_v48 = vmul.f32 %v5569_v2, %v7288_v32  ;;  %v3743_v32 = vsub.s32 0, %v5852_v11 }
 0x3f8   : > { %v5573_v10 = vpop.eup %5572  ;;  %v3470_v55 = vmul.f32 %v5571_v61, %v7292_v29  ;;  %v3739_v29 = vld [vmem:[%s7718_s8] sm:$0x3] }
 0x3f9   : > { %v5575_v28 = vpop.eup %5574  ;;  %3488 = vst [vmem:[%s7303_s20 + $0x70] sm:$0xff] %v3472_v48  ;;  %v3473_v42 = vmul.f32 %v5573_v10, %v7297_v26  ;;  %v3747_v26 = vsub.s32 1, %v5852_v11  ;;  %v7371_v11 = vrot.slane %v3783_v0, %v3743_v32 }
 0x3fa   : > { %3486 = vst [vmem:[%s7303_s20 + $0x60] sm:$0xff] %v3470_v55  ;;  %v3471_v37 = vmul.f32 %v5575_v28, %v7307_v13  ;;  %v7361_v13 = vrot.slane %v3739_v29, %v3743_v32 }
 0x3fb   : > { %3489 = vst [vmem:[%s7303_s20 + $0x78] sm:$0xff] %v3473_v42  ;;  %v3497_v33 = vpack.c.bf16 %v3473_v42, %v3472_v48  ;;  %v7373_v7 = vrot.slane %v3783_v0, %v3747_v26 }
 0x3fc   : > { %3487 = vst [vmem:[%s7303_s20 + $0x68] sm:$0xff] %v3471_v37  ;;  %v3496_v21 = vpack.c.bf16 %v3471_v37, %v3470_v55 }
 0x3fd   : > { %3657 = vmatmul.mubr.bf16.gmra.mrb[28].mxu1 %v3493_v57 }
 0x3fe   : > { %3666 = vmatprep.mubr.bf16.mxu1 %v5713_v8 }
 0x405   : > { %3667 = vmatmul.mubr.bf16.gmra.mrb[32].mxu1 %v3494_v14 }
 0x406   : > { %3676 = vmatprep.mubr.bf16.mxu1 %v5713_v8 }
 0x40d   : > { %3677 = vmatmul.mubr.bf16.gmra.mrb[36].mxu1 %v3495_v3 }
 0x40e   : > { %3686 = vmatprep.mubr.bf16.mxu1 %v5713_v8 }
 0x415   : > { %3687 = vmatmul.mubr.bf16.gmra.mrb[40].mxu1 %v3496_v21 }
 0x416   : > { %3696 = vmatprep.mubr.bf16.mxu1 %v5713_v8  ;;  %v7369_v8 = vrot.slane %v3739_v29, %v3747_v26 }
 0x41d   : > { %3697 = vmatmul.mubr.bf16.gmra.mrb[44].mxu1 %v3497_v33 }
 0x4b8   : > { %v3628_v19 = vpop.f32.mrb[16].mxu1 }
 0x4b9   : > { %3707 = vst [vmem:[%s7367_s19] sm:$0xff] %v3628_v19  ;;  %v3751_v63 = vmul.f32 %v7361_v13, %v3628_v19  ;;  %v3630_v45 = vpop.f32.mrb[17].mxu1 }
 0x4ba   : > { %3708 = vst [vmem:[%s7367_s19 + $0x8] sm:$0xff] %v3630_v45  ;;  %v3752_v53 = vmul.f32 %v7369_v8, %v3630_v45  ;;  %v3632_v5 = vpop.f32.mrb[18].mxu1 }
 0x4bb   : > { %v7386_v1 = vadd.f32 %v7371_v11, %v3751_v63  ;;  %3709 = vst [vmem:[%s7367_s19 + $0x10] sm:$0xff] %v3632_v5  ;;  %v3753_v30 = vmul.f32 %v7361_v13, %v3632_v5  ;;  %v3634_v60 = vpop.f32.mrb[19].mxu1 }
 0x4bc   : > { %v7391_v54 = vadd.f32 %v7373_v7, %v3752_v53  ;;  %3710 = vst [vmem:[%s7367_s19 + $0x18] sm:$0xff] %v3634_v60  ;;  %v3754_v22 = vmul.f32 %v7369_v8, %v3634_v60 }
 0x4bd   : > { %3827 = vst [vmem:[%s7381_s23] sm:$0xff] %v7386_v1  ;;  %v4713_v18 = vmul.f32 -1.442695, %v7386_v1  ;;  %v7399_v15 = vadd.f32 %v7371_v11, %v3753_v30 }
 0x4be   : > { %3828 = vst [vmem:[%s7381_s23 + $0x8] sm:$0xff] %v7391_v54  ;;  %v4714_v49 = vmul.f32 -1.442695, %v7391_v54  ;;  %v7405_v43 = vadd.f32 %v7373_v7, %v3754_v22 }
 0x4bf   : > { %5576 = vpow2.f32 %v4713_v18  ;;  %3829 = vst [vmem:[%s7381_s23 + $0x10] sm:$0xff] %v7399_v15  ;;  %v4715_v35 = vmul.f32 -1.442695, %v7399_v15 }
 0x4c0   : > { %5578 = vpow2.f32 %v4714_v49  ;;  %3830 = vst [vmem:[%s7381_s23 + $0x18] sm:$0xff] %v7405_v43  ;;  %v4716_v38 = vmul.f32 -1.442695, %v7405_v43  ;;  %v3638_v51 = vpop.f32.mrb[20].mxu1 }
 0x4c1   : > { %5580 = vpow2.f32 %v4715_v35  ;;  %3711 = vst [vmem:[%s7367_s19 + $0x20] sm:$0xff] %v3638_v51  ;;  %v3755_v16 = vmul.f32 %v7361_v13, %v3638_v51  ;;  %v3640_v52 = vpop.f32.mrb[21].mxu1 }
 0x4c2   : > { %5582 = vpow2.f32 %v4716_v38  ;;  %3712 = vst [vmem:[%s7367_s19 + $0x28] sm:$0xff] %v3640_v52  ;;  %v3756_v17 = vmul.f32 %v7369_v8, %v3640_v52  ;;  %v3642_v56 = vpop.f32.mrb[22].mxu1 }
 0x4c3   : > { %v7418_v62 = vadd.f32 %v7371_v11, %v3755_v16  ;;  %3713 = vst [vmem:[%s7367_s19 + $0x30] sm:$0xff] %v3642_v56  ;;  %v3757_v47 = vmul.f32 %v7361_v13, %v3642_v56  ;;  %v3644_v27 = vpop.f32.mrb[23].mxu1 }
 0x4c4   : > { %v7423_v4 = vadd.f32 %v7373_v7, %v3756_v17  ;;  %3714 = vst [vmem:[%s7367_s19 + $0x38] sm:$0xff] %v3644_v27  ;;  %v3758_v39 = vmul.f32 %v7369_v8, %v3644_v27 }
 0x4c5   : > { %3831 = vst [vmem:[%s7381_s23 + $0x20] sm:$0xff] %v7418_v62  ;;  %v4717_v44 = vmul.f32 -1.442695, %v7418_v62  ;;  %v7431_v40 = vadd.f32 %v7371_v11, %v3757_v47 }
 0x4c6   : > { %3832 = vst [vmem:[%s7381_s23 + $0x28] sm:$0xff] %v7423_v4  ;;  %v4718_v41 = vmul.f32 -1.442695, %v7423_v4  ;;  %v7437_v57 = vadd.f32 %v7373_v7, %v3758_v39 }
 0x4c7   : > { %5584 = vpow2.f32 %v4717_v44  ;;  %3833 = vst [vmem:[%s7381_s23 + $0x30] sm:$0xff] %v7431_v40  ;;  %v4719_v24 = vmul.f32 -1.442695, %v7431_v40 }
 0x4c8   : > { %5586 = vpow2.f32 %v4718_v41  ;;  %3834 = vst [vmem:[%s7381_s23 + $0x38] sm:$0xff] %v7437_v57  ;;  %v4720_v31 = vmul.f32 -1.442695, %v7437_v57  ;;  %v3648_v36 = vpop.f32.mrb[24].mxu1 }
 0x4c9   : > { %v5577_v34 = vpop.eup %5576  ;;  %5588 = vpow2.f32 %v4719_v24  ;;  %3715 = vst [vmem:[%s7367_s19 + $0x40] sm:$0xff] %v3648_v36  ;;  %v3759_v50 = vmul.f32 %v7361_v13, %v3648_v36  ;;  %v3650_v25 = vpop.f32.mrb[25].mxu1 }
 0x4ca   : > { %v5579_v9 = vpop.eup %5578  ;;  %v3955_v23 = vadd.f32 1.0, %v5577_v34  ;;  %5590 = vpow2.f32 %v4720_v31  ;;  %3716 = vst [vmem:[%s7367_s19 + $0x48] sm:$0xff] %v3650_v25  ;;  %v3760_v59 = vmul.f32 %v7369_v8, %v3650_v25  ;;  %v3652_v58 = vpop.f32.mrb[26].mxu1 }
 0x4cb   : > { %v5581_v12 = vpop.eup %5580  ;;  %v3956_v20 = vadd.f32 1.0, %v5579_v9  ;;  %v7450_v46 = vadd.f32 %v7371_v11, %v3759_v50  ;;  %3717 = vst [vmem:[%s7367_s19 + $0x50] sm:$0xff] %v3652_v58  ;;  %v3761_v6 = vmul.f32 %v7361_v13, %v3652_v58  ;;  %v3654_v3 = vpop.f32.mrb[27].mxu1 }
 0x4cc   : > { %v5583_v14 = vpop.eup %5582  ;;  %5592 = vrcp.f32 %v3955_v23  ;;  %v3957_v2 = vadd.f32 1.0, %v5581_v12  ;;  %v7455_v61 = vadd.f32 %v7373_v7, %v3760_v59  ;;  %3718 = vst [vmem:[%s7367_s19 + $0x58] sm:$0xff] %v3654_v3  ;;  %v3762_v48 = vmul.f32 %v7369_v8, %v3654_v3 }
 0x4cd   : > { %5594 = vrcp.f32 %v3956_v20  ;;  %v3958_v10 = vadd.f32 1.0, %v5583_v14  ;;  %3835 = vst [vmem:[%s7381_s23 + $0x40] sm:$0xff] %v7450_v46  ;;  %v4721_v55 = vmul.f32 -1.442695, %v7450_v46  ;;  %v7463_v28 = vadd.f32 %v7371_v11, %v3761_v6 }
 0x4ce   : > { %5596 = vrcp.f32 %v3957_v2  ;;  %3836 = vst [vmem:[%s7381_s23 + $0x48] sm:$0xff] %v7455_v61  ;;  %v4722_v42 = vmul.f32 -1.442695, %v7455_v61  ;;  %v7469_v37 = vadd.f32 %v7373_v7, %v3762_v48 }
 0x4cf   : > { %5598 = vrcp.f32 %v3958_v10  ;;  %3837 = vst [vmem:[%s7381_s23 + $0x50] sm:$0xff] %v7463_v28  ;;  %v4723_v33 = vmul.f32 -1.442695, %v7463_v28 }
 0x4d0   : > { %5600 = vpow2.f32 %v4721_v55  ;;  %3838 = vst [vmem:[%s7381_s23 + $0x58] sm:$0xff] %v7469_v37  ;;  %v4724_v21 = vmul.f32 -1.442695, %v7469_v37  ;;  %v3658_v32 = vpop.f32.mrb[28].mxu1 }
 0x4d1   : > { %v5585_v29 = vpop.eup %5584  ;;  %5602 = vpow2.f32 %v4722_v42  ;;  %3719 = vst [vmem:[%s7367_s19 + $0x60] sm:$0xff] %v3658_v32  ;;  %v3763_v26 = vmul.f32 %v7361_v13, %v3658_v32  ;;  %v3660_v0 = vpop.f32.mrb[29].mxu1 }
 0x4d2   : > { %v5587_v19 = vpop.eup %5586  ;;  %v3959_v63 = vadd.f32 1.0, %v5585_v29  ;;  %5604 = vpow2.f32 %v4723_v33  ;;  %3720 = vst [vmem:[%s7367_s19 + $0x68] sm:$0xff] %v3660_v0  ;;  %v3764_v45 = vmul.f32 %v7369_v8, %v3660_v0  ;;  %v3662_v53 = vpop.f32.mrb[30].mxu1 }
 0x4d3   : > { %v5589_v5 = vpop.eup %5588  ;;  %v3960_v30 = vadd.f32 1.0, %v5587_v19  ;;  %5606 = vpow2.f32 %v4724_v21  ;;  %v7482_v60 = vadd.f32 %v7371_v11, %v3763_v26  ;;  %3721 = vst [vmem:[%s7367_s19 + $0x70] sm:$0xff] %v3662_v53  ;;  %v3765_v22 = vmul.f32 %v7361_v13, %v3662_v53  ;;  %v3664_v18 = vpop.f32.mrb[31].mxu1 }
 0x4d4   : > { %v5591_v49 = vpop.eup %5590  ;;  %5608 = vrcp.f32 %v3959_v63  ;;  %v3961_v35 = vadd.f32 1.0, %v5589_v5  ;;  %v7487_v38 = vadd.f32 %v7373_v7, %v3764_v45  ;;  %3722 = vst [vmem:[%s7367_s19 + $0x78] sm:$0xff] %v3664_v18  ;;  %v3766_v51 = vmul.f32 %v7369_v8, %v3664_v18 }
 0x4d5   : > { %5610 = vrcp.f32 %v3960_v30  ;;  %v3962_v16 = vadd.f32 1.0, %v5591_v49  ;;  %3839 = vst [vmem:[%s7381_s23 + $0x60] sm:$0xff] %v7482_v60  ;;  %v4725_v52 = vmul.f32 -1.442695, %v7482_v60  ;;  %v7495_v17 = vadd.f32 %v7371_v11, %v3765_v22 }
 0x4d6   : > { %v5593_v56 = vpop.eup %5592  ;;  %5612 = vrcp.f32 %v3961_v35  ;;  %3840 = vst [vmem:[%s7381_s23 + $0x68] sm:$0xff] %v7487_v38  ;;  %v4726_v47 = vmul.f32 -1.442695, %v7487_v38  ;;  %v7507_v27 = vadd.f32 %v7373_v7, %v3766_v51 }
 0x4d7   : > { %v5595_v39 = vpop.eup %5594  ;;  %v4051_v44 = vmul.f32 %v5593_v56, %v7386_v1  ;;  %5614 = vrcp.f32 %v3962_v16  ;;  %3841 = vst [vmem:[%s7381_s23 + $0x70] sm:$0xff] %v7495_v17  ;;  %v4727_v41 = vmul.f32 -1.442695, %v7495_v17 }
 0x4d8   : > { %v5597_v24 = vpop.eup %5596  ;;  %v4052_v31 = vmul.f32 %v5595_v39, %v7391_v54  ;;  %5616 = vpow2.f32 %v4725_v52  ;;  %3842 = vst [vmem:[%s7381_s23 + $0x78] sm:$0xff] %v7507_v27  ;;  %v4728_v36 = vmul.f32 -1.442695, %v7507_v27  ;;  %v3668_v34 = vpop.f32.mrb[32].mxu1 }
 0x4d9   : > { %v5599_v50 = vpop.eup %5598  ;;  %4083 = vst [vmem:[%s7501_s1] sm:$0xff] %v4051_v44  ;;  %v4053_v1 = vmul.f32 %v5597_v24, %v7399_v15  ;;  %5618 = vpow2.f32 %v4726_v47  ;;  %3723 = vst [vmem:[%s7367_s19 + $0x80] sm:$0xff] %v3668_v34  ;;  %v3767_v25 = vmul.f32 %v7361_v13, %v3668_v34  ;;  %v3670_v9 = vpop.f32.mrb[33].mxu1 }
 0x4da   : > { %v5601_v23 = vpop.eup %5600  ;;  %4084 = vst [vmem:[%s7501_s1 + $0x8] sm:$0xff] %v4052_v31  ;;  %v4054_v54 = vmul.f32 %v5599_v50, %v7405_v43  ;;  %5620 = vpow2.f32 %v4727_v41  ;;  %3724 = vst [vmem:[%s7367_s19 + $0x88] sm:$0xff] %v3670_v9  ;;  %v3768_v59 = vmul.f32 %v7369_v8, %v3670_v9  ;;  %v3672_v58 = vpop.f32.mrb[34].mxu1 }
 0x4db   : > { %v5603_v12 = vpop.eup %5602  ;;  %4085 = vst [vmem:[%s7501_s1 + $0x10] sm:$0xff] %v4053_v1  ;;  %v3963_v15 = vadd.f32 1.0, %v5601_v23  ;;  %5622 = vpow2.f32 %v4728_v36  ;;  %v7527_v20 = vadd.f32 %v7371_v11, %v3767_v25  ;;  %3725 = vst [vmem:[%s7367_s19 + $0x90] sm:$0xff] %v3672_v58  ;;  %v3769_v6 = vmul.f32 %v7361_v13, %v3672_v58  ;;  %v3674_v3 = vpop.f32.mrb[35].mxu1 }
 0x4dc   : > { %v5605_v43 = vpop.eup %5604  ;;  %4086 = vst [vmem:[%s7501_s1 + $0x18] sm:$0xff] %v4054_v54  ;;  %v3964_v14 = vadd.f32 1.0, %v5603_v12  ;;  %v7533_v2 = vadd.f32 %v7373_v7, %v3768_v59  ;;  %3726 = vst [vmem:[%s7367_s19 + $0x98] sm:$0xff] %v3674_v3  ;;  %v3770_v48 = vmul.f32 %v7369_v8, %v3674_v3 }
 0x4dd   : > { %v5607_v10 = vpop.eup %5606  ;;  %5624 = vrcp.f32 %v3963_v15  ;;  %v3965_v55 = vadd.f32 1.0, %v5605_v43  ;;  %3843 = vst [vmem:[%s7381_s23 + $0x80] sm:$0xff] %v7527_v20  ;;  %v4729_v42 = vmul.f32 -1.442695, %v7527_v20  ;;  %v7541_v33 = vadd.f32 %v7371_v11, %v3769_v6 }
 0x4de   : > { %v5609_v21 = vpop.eup %5608  ;;  %5626 = vrcp.f32 %v3964_v14  ;;  %v3966_v32 = vadd.f32 1.0, %v5607_v10  ;;  %3844 = vst [vmem:[%s7381_s23 + $0x88] sm:$0xff] %v7533_v2  ;;  %v4730_v29 = vmul.f32 -1.442695, %v7533_v2  ;;  %v7547_v26 = vadd.f32 %v7373_v7, %v3770_v48 }
 0x4df   : > { %v5611_v0 = vpop.eup %5610  ;;  %v4055_v19 = vmul.f32 %v5609_v21, %v7418_v62  ;;  %5628 = vrcp.f32 %v3965_v55  ;;  %3845 = vst [vmem:[%s7381_s23 + $0x90] sm:$0xff] %v7541_v33  ;;  %v4731_v63 = vmul.f32 -1.442695, %v7541_v33 }
 0x4e0   : > { %v5613_v45 = vpop.eup %5612  ;;  %v4056_v53 = vmul.f32 %v5611_v0, %v7423_v4  ;;  %5630 = vrcp.f32 %v3966_v32  ;;  %3846 = vst [vmem:[%s7381_s23 + $0x98] sm:$0xff] %v7547_v26  ;;  %v4732_v5 = vmul.f32 -1.442695, %v7547_v26  ;;  %v3678_v30 = vpop.f32.mrb[36].mxu1 }
 0x4e1   : > { %v5615_v22 = vpop.eup %5614  ;;  %4087 = vst [vmem:[%s7501_s1 + $0x20] sm:$0xff] %v4055_v19  ;;  %v4057_v62 = vmul.f32 %v5613_v45, %v7431_v40  ;;  %5632 = vpow2.f32 %v4729_v42  ;;  %3727 = vst [vmem:[%s7367_s19 + $0xa0] sm:$0xff] %v3678_v30  ;;  %v3771_v18 = vmul.f32 %v7361_v13, %v3678_v30  ;;  %v3680_v49 = vpop.f32.mrb[37].mxu1 }
 0x4e2   : > { %v5617_v35 = vpop.eup %5616  ;;  %4088 = vst [vmem:[%s7501_s1 + $0x28] sm:$0xff] %v4056_v53  ;;  %v4058_v4 = vmul.f32 %v5615_v22, %v7437_v57  ;;  %5634 = vpow2.f32 %v4730_v29  ;;  %3728 = vst [vmem:[%s7367_s19 + $0xa8] sm:$0xff] %v3680_v49  ;;  %v3772_v51 = vmul.f32 %v7369_v8, %v3680_v49  ;;  %v3682_v16 = vpop.f32.mrb[38].mxu1 }
 0x4e3   : > { %v5619_v52 = vpop.eup %5618  ;;  %4089 = vst [vmem:[%s7501_s1 + $0x30] sm:$0xff] %v4057_v62  ;;  %v3967_v40 = vadd.f32 1.0, %v5617_v35  ;;  %5636 = vpow2.f32 %v4731_v63  ;;  %v7567_v56 = vadd.f32 %v7371_v11, %v3771_v18  ;;  %3729 = vst [vmem:[%s7367_s19 + $0xb0] sm:$0xff] %v3682_v16  ;;  %v3773_v47 = vmul.f32 %v7361_v13, %v3682_v16  ;;  %v3684_v39 = vpop.f32.mrb[39].mxu1 }
 0x4e4   : > { %v5621_v57 = vpop.eup %5620  ;;  %4090 = vst [vmem:[%s7501_s1 + $0x38] sm:$0xff] %v4058_v4  ;;  %v3968_v44 = vadd.f32 1.0, %v5619_v52  ;;  %5638 = vpow2.f32 %v4732_v5  ;;  %v7573_v41 = vadd.f32 %v7373_v7, %v3772_v51  ;;  %3730 = vst [vmem:[%s7367_s19 + $0xb8] sm:$0xff] %v3684_v39  ;;  %v3774_v24 = vmul.f32 %v7369_v8, %v3684_v39 }
 0x4e5   : > { %v5623_v31 = vpop.eup %5622  ;;  %5640 = vrcp.f32 %v3967_v40  ;;  %v3969_v36 = vadd.f32 1.0, %v5621_v57  ;;  %3847 = vst [vmem:[%s7381_s23 + $0xa0] sm:$0xff] %v7567_v56  ;;  %v4733_v34 = vmul.f32 -1.442695, %v7567_v56  ;;  %v7581_v50 = vadd.f32 %v7371_v11, %v3773_v47 }
 0x4e6   : > { %5642 = vrcp.f32 %v3968_v44  ;;  %v3970_v1 = vadd.f32 1.0, %v5623_v31  ;;  %3848 = vst [vmem:[%s7381_s23 + $0xa8] sm:$0xff] %v7573_v41  ;;  %v4734_v25 = vmul.f32 -1.442695, %v7573_v41  ;;  %v7587_v9 = vadd.f32 %v7373_v7, %v3774_v24 }
 0x4e7   : > { %v5625_v23 = vpop.eup %5624  ;;  %5644 = vrcp.f32 %v3969_v36  ;;  %3849 = vst [vmem:[%s7381_s23 + $0xb0] sm:$0xff] %v7581_v50  ;;  %v4735_v54 = vmul.f32 -1.442695, %v7581_v50 }
 0x4e8   : > { %v5627_v59 = vpop.eup %5626  ;;  %v4059_v58 = vmul.f32 %v5625_v23, %v7450_v46  ;;  %5646 = vrcp.f32 %v3970_v1  ;;  %3850 = vst [vmem:[%s7381_s23 + $0xb8] sm:$0xff] %v7587_v9  ;;  %v4736_v12 = vmul.f32 -1.442695, %v7587_v9  ;;  %v3688_v15 = vpop.f32.mrb[40].mxu1 }
 0x4e9   : > { %v5629_v6 = vpop.eup %5628  ;;  %v4060_v3 = vmul.f32 %v5627_v59, %v7455_v61  ;;  %5648 = vpow2.f32 %v4733_v34  ;;  %3731 = vst [vmem:[%s7367_s19 + $0xc0] sm:$0xff] %v3688_v15  ;;  %v3775_v43 = vmul.f32 %v7361_v13, %v3688_v15  ;;  %v3690_v14 = vpop.f32.mrb[41].mxu1 }
 0x4ea   : > { %v5631_v48 = vpop.eup %5630  ;;  %4091 = vst [vmem:[%s7501_s1 + $0x40] sm:$0xff] %v4059_v58  ;;  %v4061_v46 = vmul.f32 %v5629_v6, %v7463_v28  ;;  %5650 = vpow2.f32 %v4734_v25  ;;  %3732 = vst [vmem:[%s7367_s19 + $0xc8] sm:$0xff] %v3690_v14  ;;  %v3776_v10 = vmul.f32 %v7369_v8, %v3690_v14  ;;  %v3692_v55 = vpop.f32.mrb[42].mxu1 }
 0x4eb   : > { %v5633_v42 = vpop.eup %5632  ;;  %4092 = vst [vmem:[%s7501_s1 + $0x48] sm:$0xff] %v4060_v3  ;;  %v4062_v61 = vmul.f32 %v5631_v48, %v7469_v37  ;;  %5652 = vpow2.f32 %v4735_v54  ;;  %v7606_v21 = vadd.f32 %v7371_v11, %v3775_v43  ;;  %3733 = vst [vmem:[%s7367_s19 + $0xd0] sm:$0xff] %v3692_v55  ;;  %v3777_v32 = vmul.f32 %v7361_v13, %v3692_v55  ;;  %v3694_v28 = vpop.f32.mrb[43].mxu1 }
 0x4ec   : > { %v5635_v29 = vpop.eup %5634  ;;  %4093 = vst [vmem:[%s7501_s1 + $0x50] sm:$0xff] %v4061_v46  ;;  %v3971_v0 = vadd.f32 1.0, %v5633_v42  ;;  %5654 = vpow2.f32 %v4736_v12  ;;  %v7612_v19 = vadd.f32 %v7373_v7, %v3776_v10  ;;  %3734 = vst [vmem:[%s7367_s19 + $0xd8] sm:$0xff] %v3694_v28  ;;  %v3778_v37 = vmul.f32 %v7369_v8, %v3694_v28 }
 0x4ed   : > { %v5637_v63 = vpop.eup %5636  ;;  %4094 = vst [vmem:[%s7501_s1 + $0x58] sm:$0xff] %v4062_v61  ;;  %v3972_v45 = vadd.f32 1.0, %v5635_v29  ;;  %3851 = vst [vmem:[%s7381_s23 + $0xc0] sm:$0xff] %v7606_v21  ;;  %v7620_v53 = vadd.f32 %v7371_v11, %v3777_v32  ;;  %v4737_v22 = vmul.f32 -1.442695, %v7606_v21 }
 0x4ee   : > { %v5639_v5 = vpop.eup %5638  ;;  %5656 = vrcp.f32 %v3971_v0  ;;  %v3973_v30 = vadd.f32 1.0, %v5637_v63  ;;  %3852 = vst [vmem:[%s7381_s23 + $0xc8] sm:$0xff] %v7612_v19  ;;  %v7626_v62 = vadd.f32 %v7373_v7, %v3778_v37  ;;  %v4738_v35 = vmul.f32 -1.442695, %v7612_v19 }
 0x4ef   : > { %v5641_v18 = vpop.eup %5640  ;;  %5658 = vrcp.f32 %v3972_v45  ;;  %v3974_v49 = vadd.f32 1.0, %v5639_v5  ;;  %3853 = vst [vmem:[%s7381_s23 + $0xd0] sm:$0xff] %v7620_v53  ;;  %v4739_v16 = vmul.f32 -1.442695, %v7620_v53 }
 0x4f0   : > { %v5643_v4 = vpop.eup %5642  ;;  %v4063_v51 = vmul.f32 %v5641_v18, %v7482_v60  ;;  %5660 = vrcp.f32 %v3973_v30  ;;  %3854 = vst [vmem:[%s7381_s23 + $0xd8] sm:$0xff] %v7626_v62  ;;  %v3698_v52 = vpop.f32.mrb[44].mxu1  ;;  %v4740_v39 = vmul.f32 -1.442695, %v7626_v62 }
 0x4f1   : > { %v5645_v40 = vpop.eup %5644  ;;  %v4064_v47 = vmul.f32 %v5643_v4, %v7487_v38  ;;  %5662 = vrcp.f32 %v3974_v49  ;;  %3735 = vst [vmem:[%s7367_s19 + $0xe0] sm:$0xff] %v3698_v52  ;;  %v3779_v57 = vmul.f32 %v7361_v13, %v3698_v52  ;;  %v3700_v44 = vpop.f32.mrb[45].mxu1 }
 0x4f2   : > { %v5647_v60 = vpop.eup %5646  ;;  %4095 = vst [vmem:[%s7501_s1 + $0x60] sm:$0xff] %v4063_v51  ;;  %v4065_v24 = vmul.f32 %v5645_v40, %v7495_v17  ;;  %5664 = vpow2.f32 %v4737_v22  ;;  %3736 = vst [vmem:[%s7367_s19 + $0xe8] sm:$0xff] %v3700_v44  ;;  %v3780_v31 = vmul.f32 %v7369_v8, %v3700_v44  ;;  %v3702_v36 = vpop.f32.mrb[46].mxu1 }
 0x4f3   : > { %v5649_v38 = vpop.eup %5648  ;;  %4096 = vst [vmem:[%s7501_s1 + $0x68] sm:$0xff] %v4064_v47  ;;  %v4066_v34 = vmul.f32 %v5647_v60, %v7507_v27  ;;  %5666 = vpow2.f32 %v4738_v35  ;;  %v7646_v1 = vadd.f32 %v7371_v11, %v3779_v57  ;;  %3737 = vst [vmem:[%s7367_s19 + $0xf0] sm:$0xff] %v3702_v36  ;;  %v3781_v25 = vmul.f32 %v7361_v13, %v3702_v36  ;;  %v3704_v17 = vpop.f32.mrb[47].mxu1 }
 0x4f4   : > { %v5651_v23 = vpop.eup %5650  ;;  %4097 = vst [vmem:[%s7501_s1 + $0x70] sm:$0xff] %v4065_v24  ;;  %v3975_v54 = vadd.f32 1.0, %v5649_v38  ;;  %5668 = vpow2.f32 %v4739_v16  ;;  %v7652_v59 = vadd.f32 %v7373_v7, %v3780_v31  ;;  %3738 = vst [vmem:[%s7367_s19 + $0xf8] sm:$0xff] %v3704_v17  ;;  %v3782_v27 = vmul.f32 %v7369_v8, %v3704_v17 }
 0x4f5   : > { %v5653_v58 = vpop.eup %5652  ;;  %4098 = vst [vmem:[%s7501_s1 + $0x78] sm:$0xff] %v4066_v34  ;;  %v3976_v12 = vadd.f32 1.0, %v5651_v23  ;;  %5670 = vpow2.f32 %v4740_v39  ;;  %3855 = vst [vmem:[%s7381_s23 + $0xe0] sm:$0xff] %v7646_v1  ;;  %v7660_v13 = vadd.f32 %v7371_v11, %v3781_v25  ;;  %v4741_v3 = vmul.f32 -1.442695, %v7646_v1 }
 0x4f6   : > { %v5655_v15 = vpop.eup %5654  ;;  %5672 = vrcp.f32 %v3975_v54  ;;  %v3977_v6 = vadd.f32 1.0, %v5653_v58  ;;  %3856 = vst [vmem:[%s7381_s23 + $0xe8] sm:$0xff] %v7652_v59  ;;  %v7666_v8 = vadd.f32 %v7373_v7, %v3782_v27  ;;  %v4742_v14 = vmul.f32 -1.442695, %v7652_v59 }
 0x4f7   : > { %5674 = vrcp.f32 %v3976_v12  ;;  %v3978_v43 = vadd.f32 1.0, %v5655_v15  ;;  %3857 = vst [vmem:[%s7381_s23 + $0xf0] sm:$0xff] %v7660_v13  ;;  %v4743_v11 = vmul.f32 -1.442695, %v7660_v13 }
 0x4f8   : > { %v5657_v48 = vpop.eup %5656  ;;  %5676 = vrcp.f32 %v3977_v6  ;;  %3858 = vst [vmem:[%s7381_s23 + $0xf8] sm:$0xff] %v7666_v8  ;;  %v4744_v7 = vmul.f32 -1.442695, %v7666_v8 }
 0x4f9   : > { %v5659_v46 = vpop.eup %5658  ;;  %v4067_v10 = vmul.f32 %v5657_v48, %v7527_v20  ;;  %5678 = vrcp.f32 %v3978_v43 }
 0x4fa   : > { %v5661_v55 = vpop.eup %5660  ;;  %v4068_v42 = vmul.f32 %v5659_v46, %v7533_v2  ;;  %5680 = vpow2.f32 %v4741_v3 }
 0x4fb   : > { %v5663_v61 = vpop.eup %5662  ;;  %4099 = vst [vmem:[%s7501_s1 + $0x80] sm:$0xff] %v4067_v10  ;;  %v4069_v32 = vmul.f32 %v5661_v55, %v7541_v33  ;;  %5682 = vpow2.f32 %v4742_v14 }
 0x4fc   : > { %v5665_v28 = vpop.eup %5664  ;;  %4100 = vst [vmem:[%s7501_s1 + $0x88] sm:$0xff] %v4068_v42  ;;  %v4070_v29 = vmul.f32 %v5663_v61, %v7547_v26  ;;  %5684 = vpow2.f32 %v4743_v11 }
 0x4fd   : > { %v5667_v0 = vpop.eup %5666  ;;  %4101 = vst [vmem:[%s7501_s1 + $0x90] sm:$0xff] %v4069_v32  ;;  %v3979_v20 = vadd.f32 1.0, %v5665_v28  ;;  %5686 = vpow2.f32 %v4744_v7 }
 0x4fe   : > { %v5669_v37 = vpop.eup %5668  ;;  %4102 = vst [vmem:[%s7501_s1 + $0x98] sm:$0xff] %v4070_v29  ;;  %v3980_v63 = vadd.f32 1.0, %v5667_v0 }
 0x4ff   : > { %v5671_v2 = vpop.eup %5670  ;;  %5688 = vrcp.f32 %v3979_v20  ;;  %v3981_v45 = vadd.f32 1.0, %v5669_v37 }
 0x500   : > { %v5673_v5 = vpop.eup %5672  ;;  %5690 = vrcp.f32 %v3980_v63  ;;  %v3982_v33 = vadd.f32 1.0, %v5671_v2 }
 0x501   : > { %v5675_v30 = vpop.eup %5674  ;;  %v4071_v26 = vmul.f32 %v5673_v5, %v7567_v56  ;;  %5692 = vrcp.f32 %v3981_v45 }
 0x502   : > { %v5677_v22 = vpop.eup %5676  ;;  %v4072_v18 = vmul.f32 %v5675_v30, %v7573_v41  ;;  %5694 = vrcp.f32 %v3982_v33 }
 0x503   : > { %v5679_v49 = vpop.eup %5678  ;;  %4103 = vst [vmem:[%s7501_s1 + $0xa0] sm:$0xff] %v4071_v26  ;;  %v4073_v35 = vmul.f32 %v5677_v22, %v7581_v50 }
 0x504   : > { %v5681_v4 = vpop.eup %5680  ;;  %4104 = vst [vmem:[%s7501_s1 + $0xa8] sm:$0xff] %v4072_v18  ;;  %v4074_v51 = vmul.f32 %v5679_v49, %v7587_v9 }
 0x505   : > { %v5683_v16 = vpop.eup %5682  ;;  %4105 = vst [vmem:[%s7501_s1 + $0xb0] sm:$0xff] %v4073_v35  ;;  %v3983_v52 = vadd.f32 1.0, %v5681_v4 }
 0x506   : > { %v5685_v40 = vpop.eup %5684  ;;  %4106 = vst [vmem:[%s7501_s1 + $0xb8] sm:$0xff] %v4074_v51  ;;  %v3984_v56 = vadd.f32 1.0, %v5683_v16 }
 0x507   : > { %v5687_v47 = vpop.eup %5686  ;;  %5696 = vrcp.f32 %v3983_v52  ;;  %v3985_v41 = vadd.f32 1.0, %v5685_v40 }
 0x508   : > { %5698 = vrcp.f32 %v3984_v56  ;;  %v3986_v39 = vadd.f32 1.0, %v5687_v47 }
 0x509   : > { %v5689_v50 = vpop.eup %5688  ;;  %5700 = vrcp.f32 %v3985_v41 }
 0x50a   : > { %v5691_v57 = vpop.eup %5690  ;;  %v4075_v9 = vmul.f32 %v5689_v50, %v7606_v21  ;;  %5702 = vrcp.f32 %v3986_v39 }
 0x50b   : > { %v5693_v44 = vpop.eup %5692  ;;  %v4076_v60 = vmul.f32 %v5691_v57, %v7612_v19 }
 0x50c   : > { %v5695_v24 = vpop.eup %5694  ;;  %4107 = vst [vmem:[%s7501_s1 + $0xc0] sm:$0xff] %v4075_v9  ;;  %v4077_v31 = vmul.f32 %v5693_v44, %v7620_v53 }
 0x50d   : > { %4108 = vst [vmem:[%s7501_s1 + $0xc8] sm:$0xff] %v4076_v60  ;;  %v4078_v36 = vmul.f32 %v5695_v24, %v7626_v62 }
 0x50e   : > { %4109 = vst [vmem:[%s7501_s1 + $0xd0] sm:$0xff] %v4077_v31 }
 0x50f   : > { %4110 = vst [vmem:[%s7501_s1 + $0xd8] sm:$0xff] %v4078_v36 }
 0x511   : > { %v5697_v38 = vpop.eup %5696 }
 0x512   : > { %v5699_v34 = vpop.eup %5698  ;;  %v4079_v21 = vmul.f32 %v5697_v38, %v7646_v1 }
 0x513   : > { %v5701_v25 = vpop.eup %5700  ;;  %v4080_v17 = vmul.f32 %v5699_v34, %v7652_v59 }
 0x514   : > { %v5703_v19 = vpop.eup %5702  ;;  %4111 = vst [vmem:[%s7501_s1 + $0xe0] sm:$0xff] %v4079_v21  ;;  %v4081_v23 = vmul.f32 %v5701_v25, %v7660_v13 }
 0x515   : > { %4112 = vst [vmem:[%s7501_s1 + $0xe8] sm:$0xff] %v4080_v17  ;;  %v4082_v53 = vmul.f32 %v5703_v19, %v7666_v8 }
 0x516   : > { %4113 = vst [vmem:[%s7501_s1 + $0xf0] sm:$0xff] %v4081_v23 }
 0x517   : > { %4114 = vst [vmem:[%s7501_s1 + $0xf8] sm:$0xff] %v4082_v53 }
 0x518 PF: > { %s28_s24 = sadd.s32 1, %s5710_s24  }
 0x519   : > { %p25_p4 = scmp.ge.s32.totalorder %s28_s24, 4  }
 0x51b   :  { %27 = sbr.rel (!%p25_p4) target bundleno = 3 (0x3), region = 183 }

</bundles_post_ra>
